<compile_context>
chip_gen: v6e
topology: v6e:2x2x1
jax: 0.10.0
libtpu: 0.0.40
codegen_flags: <defaults>
</compile_context>

<pallas_src>
import functools

import jax
import jax.numpy as jnp
from jax.experimental import pallas as pl
from jax.experimental.pallas import tpu as pltpu

CPAD = 16  # channel padding for the f=10 feature maps (sublane-friendly)


# ---------------------------------------------------------------------------
# Pallas kernels
# ---------------------------------------------------------------------------
def _conv_block_kernel(p_ref, w_ref, e_ref, o_ref, *, n_pool):
    """Fused (optional 2x2 maxpool) + conv + bias + ReLU + BN affine.

    p_ref : (n_pool, Mb, Kp) bf16  flattened patch slabs; for pooled stages the
                                   4 slabs are the 4 stride-2 pooling offsets
                                   and are max-reduced here (pool fused in).
    w_ref : (Kp, Cp)         bf16  conv weight with all taps folded into K
    e_ref : (3, Cp)          f32   row0 = bias, row1 = BN scale, row2 = BN shift
    o_ref : (Mb, Cp)         f32
    """
    if n_pool == 1:
        x = p_ref[0]
    else:
        xf = p_ref[0].astype(jnp.float32)
        for s in range(1, n_pool):
            xf = jnp.maximum(xf, p_ref[s].astype(jnp.float32))
        x = xf.astype(jnp.bfloat16)
    z = jnp.dot(x, w_ref[...], preferred_element_type=jnp.float32)  # one MXU dot
    e = e_ref[...]
    z = jnp.maximum(z + e[0:1, :], 0.0)            # ReLU(conv + bias)
    o_ref[...] = (z * e[1:2, :] + e[2:3, :]).astype(o_ref.dtype)   # BN affine


def _head_kernel(p_ref, w_ref, e_ref, w7_ref, b7_ref, o_ref):
    """Fused branch convs (6a..6e) + ReLU + BN7 + 1x1 conv7 (concat eliminated).

    p_ref : (5, Mb, Kp)   bf16  per-branch patch slabs
    w_ref : (5, Kp, Cp)   bf16  per-branch flattened conv weights
    e_ref : (5, 3, Cp)    f32   row0 branch bias, row1 bn7 scale, row2 bn7 shift
    w7_ref: (5, Cp, n)    f32   per-branch slice of the 1x1 conv7 weight
    b7_ref: (1, n)        f32   conv7 bias
    o_ref : (Mb, n)       f32
    """
    mb = p_ref.shape[1]
    n_out = b7_ref.shape[1]
    acc = jnp.zeros((mb, n_out), jnp.float32)
    for b in range(p_ref.shape[0]):  # static unroll over the 5 branches
        z = jnp.dot(p_ref[b], w_ref[b], preferred_element_type=jnp.float32)
        e = e_ref[b]
        z = jnp.maximum(z + e[0:1, :], 0.0)        # ReLU(branch conv + bias)
        y = z * e[1:2, :] + e[2:3, :]              # BN7 affine (branch slice)
        acc = acc + jnp.dot(y, w7_ref[b], preferred_element_type=jnp.float32)
    o_ref[...] = (acc + b7_ref[...]).astype(o_ref.dtype)


# ---------------------------------------------------------------------------
# pallas_call wrappers (M-axis grid, "parallel" for v7x dual TensorCores)
# ---------------------------------------------------------------------------
def _grid_call_conv(patches, wm, eps):
    n_pool, m, kp = patches.shape
    cp = wm.shape[1]
    mb = 128 if m % 128 == 0 else m
    kern = functools.partial(_conv_block_kernel, n_pool=n_pool)
    return pl.pallas_call(
        kern,
        out_shape=jax.ShapeDtypeStruct((m, cp), jnp.float32),
        grid_spec=pltpu.PrefetchScalarGridSpec(
            num_scalar_prefetch=0,
            grid=(m // mb,),
            in_specs=[
                pl.BlockSpec((n_pool, mb, kp), lambda i: (0, i, 0)),
                pl.BlockSpec((kp, cp), lambda i: (0, 0)),
                pl.BlockSpec((3, cp), lambda i: (0, 0)),
            ],
            out_specs=pl.BlockSpec((mb, cp), lambda i: (i, 0)),
        ),
        compiler_params=pltpu.CompilerParams(
            dimension_semantics=("parallel",)),
    )(patches, wm, eps)


def _grid_call_head(pb, wb, eb, w7b, b7):
    nb, m, kp = pb.shape
    cp = wb.shape[2]
    n_out = w7b.shape[2]
    mb = 128 if m % 128 == 0 else m
    return pl.pallas_call(
        _head_kernel,
        out_shape=jax.ShapeDtypeStruct((m, n_out), jnp.float32),
        grid_spec=pltpu.PrefetchScalarGridSpec(
            num_scalar_prefetch=0,
            grid=(m // mb,),
            in_specs=[
                pl.BlockSpec((nb, mb, kp), lambda i: (0, i, 0)),
                pl.BlockSpec((nb, kp, cp), lambda i: (0, 0, 0)),
                pl.BlockSpec((nb, 3, cp), lambda i: (0, 0, 0)),
                pl.BlockSpec((nb, cp, n_out), lambda i: (0, 0, 0)),
                pl.BlockSpec((1, n_out), lambda i: (0, 0)),
            ],
            out_specs=pl.BlockSpec((mb, n_out), lambda i: (i, 0)),
        ),
        compiler_params=pltpu.CompilerParams(
            dimension_semantics=("parallel",)),
    )(pb, wb, eb, w7b, b7)


# ---------------------------------------------------------------------------
# Layout glue (pure data movement, stays in XLA; weights are tiny)
# ---------------------------------------------------------------------------
# TODO(synk): for larger N/H/W, build the tap layout in-kernel from one VMEM
# tile (avoids materializing T shifted copies in HBM); at (2,1,16,16) the patch
# slabs total ~2 MB so XLA-side layout prep is not a bottleneck.
def _extract_patches_flat(x, kh, kw, pads, k_pad):
    """x: (N,H,W,C) -> bf16 (N*Ho*Wo, k_pad) with taps flattened into K."""
    n, h, w, c = x.shape
    xp = jnp.pad(x, ((0, 0), pads[0], pads[1], (0, 0)))
    ho = h + pads[0][0] + pads[0][1] - kh + 1
    wo = w + pads[1][0] + pads[1][1] - kw + 1
    taps = [xp[:, i:i + ho, j:j + wo, :] for i in range(kh) for j in range(kw)]
    p = jnp.concatenate(taps, axis=-1).reshape(n * ho * wo, kh * kw * c)
    if k_pad > kh * kw * c:
        p = jnp.pad(p, ((0, 0), (0, k_pad - kh * kw * c)))
    return p.astype(jnp.bfloat16)


def _pooled_patches(x, kh, pad, k_pad):
    """Fuse 2x2/stride-2 maxpool + same-conv patching: return the 4 stride-2
    offset patch slabs; the kernel takes their elementwise max (== patches of
    the zero-padded pooled map, since 2*pad keeps windows pad-aligned)."""
    xp = jnp.pad(x, ((0, 0), (2 * pad, 2 * pad), (2 * pad, 2 * pad), (0, 0)))
    slabs = []
    for a in range(2):
        for b in range(2):
            v = xp[:, a::2, b::2, :]
            slabs.append(_extract_patches_flat(v, kh, kh, ((0, 0), (0, 0)), k_pad))
    return jnp.stack(slabs, axis=0)                      # (4, M, k_pad) bf16


def _conv_weight_mat(w, cin_pad, cout_pad, k_pad):
    """Torch (Cout,Cin,KH,KW) -> bf16 (k_pad, cout_pad), taps folded into K."""
    cout, cin, kh, kw = w.shape
    wt = jnp.transpose(w, (2, 3, 1, 0))                  # (KH,KW,Cin,Cout)
    wt = jnp.pad(wt, ((0, 0), (0, 0), (0, cin_pad - cin), (0, cout_pad - cout)))
    wm = wt.reshape(kh * kw * cin_pad, cout_pad)
    if k_pad > wm.shape[0]:
        wm = jnp.pad(wm, ((0, k_pad - wm.shape[0]), (0, 0)))
    return wm.astype(jnp.bfloat16)


def _tconv_patches(x, w, stride, padding, output_padding, k_pad):
    """ConvTranspose2d -> dilate + pad + flipped-kernel conv (patch form)."""
    cin, cout, kh, kw = w.shape
    n, h, wd, c = x.shape
    s, p, op = stride, padding, output_padding
    hd, wdd = (h - 1) * s + 1, (wd - 1) * s + 1
    xd = jnp.zeros((n, hd, wdd, c), x.dtype).at[:, ::s, ::s, :].set(x)
    lo, hi = kh - 1 - p, kh - 1 - p + op
    patches = _extract_patches_flat(xd, kh, kw, ((lo, hi), (lo, hi)), k_pad)
    w_conv = jnp.transpose(jnp.flip(w, axis=(2, 3)), (1, 0, 2, 3))  # (Cout,Cin,K,K)
    wm = _conv_weight_mat(w_conv, c, CPAD, k_pad)
    return patches, wm


def _pad_vec(v, n):
    return jnp.pad(v.astype(jnp.float32), (0, n - v.shape[0]))


def _bn_fold(gamma, beta, mean, var, eps=1e-5):
    scale = gamma * jax.lax.rsqrt(var + eps)
    return scale, beta - mean * scale


# ---------------------------------------------------------------------------
# Network stages
# ---------------------------------------------------------------------------
def _down_stage(x, w, b, gamma, beta, mean, var, *, ksize, pad, pooled):
    n, h, _, c = x.shape
    k_raw = ksize * ksize * c
    k_pad = ((k_raw + 127) // 128) * 128
    if pooled:
        patches = _pooled_patches(x, ksize, pad, k_pad)   # (4, M, Kp)
        ho = h // 2
    else:
        patches = _extract_patches_flat(
            x, ksize, ksize, ((pad, pad), (pad, pad)), k_pad)[None]  # (1, M, Kp)
        ho = h
    wm = _conv_weight_mat(w, c, CPAD, k_pad)
    scale, shift = _bn_fold(gamma, beta, mean, var)
    eps = jnp.stack([_pad_vec(b, CPAD), _pad_vec(scale, CPAD),
                     _pad_vec(shift, CPAD)], axis=0)      # (3, Cp) f32
    out = _grid_call_conv(patches, wm, eps)               # (M, Cp) f32
    return out.reshape(n, ho, ho, CPAD)


def _head_stage(params, x1, x2, x3, x4, x5, n_out, f):
    k_pad = ((3 * 3 * CPAD + 127) // 128) * 128           # 144 -> 256, all branches
    p6a = _extract_patches_flat(x1, 3, 3, ((1, 1), (1, 1)), k_pad)
    w6a = _conv_weight_mat(params["conv6a_w"], CPAD, CPAD, k_pad)
    p6b, w6b = _tconv_patches(x2, params["tconv6b_w"], 2, 1, 1, k_pad)
    p6c, w6c = _tconv_patches(x3, params["tconv6c_w"], 4, 0, 1, k_pad)
    p6d, w6d = _tconv_patches(x4, params["tconv6d_w"], 8, 0, 5, k_pad)
    p6e, w6e = _tconv_patches(x5, params["tconv6e_w"], 16, 0, 13, k_pad)
    pb = jnp.stack([p6a, p6b, p6c, p6d, p6e], axis=0)     # (5, M, Kp)  bf16
    wb = jnp.stack([w6a, w6b, w6c, w6d, w6e], axis=0)     # (5, Kp, Cp) bf16

    s7, t7 = _bn_fold(params["bn7_g"], params["bn7_b"],
                      params["bn7_m"], params["bn7_v"])
    biases = [params["conv6a_b"], params["tconv6b_b"], params["tconv6c_b"],
              params["tconv6d_b"], params["tconv6e_b"]]
    eb = jnp.stack([
        jnp.stack([_pad_vec(biases[i], CPAD),
                   _pad_vec(s7[i * f:(i + 1) * f], CPAD),
                   _pad_vec(t7[i * f:(i + 1) * f], CPAD)], axis=0)
        for i in range(5)], axis=0)                       # (5, 3, Cp) f32

    w7 = params["conv7_w"].reshape(n_out, 5 * f)          # (n, 5f)
    w7b = jnp.stack([
        jnp.pad(jnp.transpose(w7[:, i * f:(i + 1) * f]), ((0, CPAD - f), (0, 0)))
        for i in range(5)], axis=0).astype(jnp.float32)   # (5, Cp, n)
    b7 = params["conv7_b"].reshape(1, n_out).astype(jnp.float32)

    out = _grid_call_head(pb, wb, eb, w7b, b7)            # (M, n) f32
    n, h = x1.shape[0], x1.shape[1]
    return out.reshape(n, h, h, n_out)


def fcn_adf_forward(params, x_nchw, n_out=8, f=10):
    x = jnp.transpose(x_nchw, (0, 2, 3, 1)).astype(jnp.float32)  # NCHW -> NHWC
    # Dropout(p=0.1): identity in inference mode.
    x1 = _down_stage(x, params["conv1_w"], params["conv1_b"],
                     params["bn1_g"], params["bn1_b"], params["bn1_m"],
                     params["bn1_v"], ksize=3, pad=1, pooled=False)  # (N,16,16,16)
    x2 = _down_stage(x1, params["conv2_w"], params["conv2_b"],
                     params["bn2_g"], params["bn2_b"], params["bn2_m"],
                     params["bn2_v"], ksize=3, pad=1, pooled=True)   # (N, 8, 8,16)
    x3 = _down_stage(x2, params["conv3_w"], params["conv3_b"],
                     params["bn3_g"], params["bn3_b"], params["bn3_m"],
                     params["bn3_v"], ksize=5, pad=2, pooled=True)   # (N, 4, 4,16)
    x4 = _down_stage(x3, params["conv4_w"], params["conv4_b"],
                     params["bn4_g"], params["bn4_b"], params["bn4_m"],
                     params["bn4_v"], ksize=5, pad=2, pooled=True)   # (N, 2, 2,16)
    x5 = _down_stage(x4, params["conv5_w"], params["conv5_b"],
                     params["bn5_g"], params["bn5_b"], params["bn5_m"],
                     params["bn5_v"], ksize=7, pad=3, pooled=True)   # (N, 1, 1,16)
    out = _head_stage(params, x1, x2, x3, x4, x5, n_out, f)          # (N,16,16,n)
    return jnp.transpose(out, (0, 3, 1, 2))                          # NHWC -> NCHW


# ---------------------------------------------------------------------------
# Parameters
# ---------------------------------------------------------------------------
def init_params(key, n=8, f=10):
    keys = iter(jax.random.split(key, 64))

    def rnd(shape, scale=0.1):
        return scale * jax.random.normal(next(keys), shape, jnp.float32)

    p = {}
    p["conv1_w"], p["conv1_b"] = rnd((f, 1, 3, 3)), rnd((f,))
    p["conv2_w"], p["conv2_b"] = rnd((f, f, 3, 3)), rnd((f,))
    p["conv3_w"], p["conv3_b"] = rnd((f, f, 5, 5)), rnd((f,))
    p["conv4_w"], p["conv4_b"] = rnd((f, f, 5, 5)), rnd((f,))
    p["conv5_w"], p["conv5_b"] = rnd((f, f, 7, 7)), rnd((f,))
    for i in range(1, 6):
        p[f"bn{i}_g"] = 1.0 + rnd((f,))
        p[f"bn{i}_b"] = rnd((f,))
        p[f"bn{i}_m"] = jnp.zeros((f,), jnp.float32)   # running_mean
        p[f"bn{i}_v"] = jnp.ones((f,), jnp.float32)    # running_var
    p["conv6a_w"], p["conv6a_b"] = rnd((f, f, 3, 3)), rnd((f,))
    p["tconv6b_w"], p["tconv6b_b"] = rnd((f, f, 3, 3)), rnd((f,))
    p["tconv6c_w"], p["tconv6c_b"] = rnd((f, f, 3, 3)), rnd((f,))
    p["tconv6d_w"], p["tconv6d_b"] = rnd((f, f, 3, 3)), rnd((f,))
    p["tconv6e_w"], p["tconv6e_b"] = rnd((f, f, 3, 3)), rnd((f,))
    p["bn7_g"] = 1.0 + rnd((f * 5,))
    p["bn7_b"] = rnd((f * 5,))
    p["bn7_m"] = jnp.zeros((f * 5,), jnp.float32)
    p["bn7_v"] = jnp.ones((f * 5,), jnp.float32)
    p["conv7_w"], p["conv7_b"] = rnd((n, f * 5, 1, 1)), rnd((n,))
    return p


if __name__ == "__main__":
    n_cls, f = 8, 10
    key = jax.random.PRNGKey(0)
    pkey, xkey = jax.random.split(key)
    params = init_params(pkey, n=n_cls, f=f)
    # Input (N, C=1, H, W); H, W divisible by 16 (4 levels of 2x pooling).
    x = jax.random.normal(xkey, (2, 1, 16, 16), jnp.float32)

    fwd = jax.jit(fcn_adf_forward)
    out = jax.block_until_ready(fwd(params, x))
    assert out.shape == (2, n_cls, 16, 16), out.shape
    assert bool(jnp.all(jnp.isfinite(out)))
    print("KERNEL_OK")
</pallas_src>

<mosaic_0001>
module attributes {stable_mosaic.version = 11 : i64} {
  func.func @_conv_block_kernel(%arg0: i32, %arg1: memref<1x128x128xbf16, #tpu.memory_space<vmem>>, %arg2: memref<128x16xbf16, #tpu.memory_space<vmem>>, %arg3: memref<3x16xf32, #tpu.memory_space<vmem>>, %arg4: memref<128x16xf32, #tpu.memory_space<vmem>>) attributes {dimension_semantics = [#tpu.dimension_semantics<parallel>], iteration_bounds = array<i64: 4>, scalar_prefetch = 0 : i64, scratch_operands = 0 : i64, tpu.core_type = #tpu.core_type<tc>, window_params = [{transform_indices = @transform_0, window_bounds = array<i64: 1, 128, 128>}, {pipeline_mode = #tpu.pipeline_mode<synchronous>, transform_indices = @transform_1, window_bounds = array<i64: 128, 16>}, {pipeline_mode = #tpu.pipeline_mode<synchronous>, transform_indices = @transform_2, window_bounds = array<i64: 3, 16>}, {transform_indices = @transform_3, window_bounds = array<i64: 128, 16>}]} {
    %c0 = arith.constant 0 : index
    %c0_0 = arith.constant 0 : index
    %c0_1 = arith.constant 0 : index
    %0 = vector.load %arg1[%c0, %c0_0, %c0_1] : memref<1x128x128xbf16, #tpu.memory_space<vmem>>, vector<1x128x128xbf16>
    %1 = vector.shape_cast %0 : vector<1x128x128xbf16> to vector<128x128xbf16>
    %c0_2 = arith.constant 0 : index
    %c0_3 = arith.constant 0 : index
    %2 = vector.load %arg2[%c0_2, %c0_3] : memref<128x16xbf16, #tpu.memory_space<vmem>>, vector<128x16xbf16>
    %cst = arith.constant dense<0.000000e+00> : vector<128x16xf32>
    %3 = tpu.matmul %1, %2, %cst {dimension_numbers = #tpu.dot_dimension_numbers<[1], [0], [0], [1], [0, 0, 1, 1], [], []>} : vector<128x128xbf16>, vector<128x16xbf16>, vector<128x16xf32> -> vector<128x16xf32>
    %c0_4 = arith.constant 0 : index
    %c0_5 = arith.constant 0 : index
    %4 = vector.load %arg3[%c0_4, %c0_5] : memref<3x16xf32, #tpu.memory_space<vmem>>, vector<3x16xf32>
    %5 = vector.extract_strided_slice %4 {offsets = [0, 0], sizes = [1, 16], strides = [1, 1]} : vector<3x16xf32> to vector<1x16xf32>
    %6 = vector.broadcast %5 : vector<1x16xf32> to vector<128x16xf32>
    %7 = arith.addf %3, %6 : vector<128x16xf32>
    %cst_6 = arith.constant 0.000000e+00 : f32
    %8 = vector.broadcast %cst_6 : f32 to vector<128x16xf32>
    %9 = arith.maximumf %7, %8 : vector<128x16xf32>
    %10 = vector.extract_strided_slice %4 {offsets = [1, 0], sizes = [1, 16], strides = [1, 1]} : vector<3x16xf32> to vector<1x16xf32>
    %11 = vector.broadcast %10 : vector<1x16xf32> to vector<128x16xf32>
    %12 = arith.mulf %9, %11 : vector<128x16xf32>
    %13 = vector.extract_strided_slice %4 {offsets = [2, 0], sizes = [1, 16], strides = [1, 1]} : vector<3x16xf32> to vector<1x16xf32>
    %14 = vector.broadcast %13 : vector<1x16xf32> to vector<128x16xf32>
    %15 = arith.addf %12, %14 : vector<128x16xf32>
    %c0_7 = arith.constant 0 : index
    %c0_8 = arith.constant 0 : index
    %16 = vector.load %arg4[%c0_7, %c0_8] : memref<128x16xf32, #tpu.memory_space<vmem>>, vector<128x16xf32>
    tpu.vector_store %arg4[%c0_7, %c0_8], %15 {strides = array<i32>} : memref<128x16xf32, #tpu.memory_space<vmem>>, vector<128x16xf32>,
    return
  }
  func.func @transform_0(%arg0: i32) -> (i32, i32, i32) {
    %c0_i32 = arith.constant 0 : i32
    %c0_i32_0 = arith.constant 0 : i32
    %c0_i32_1 = arith.constant 0 : i32
    return %c0_i32, %arg0, %c0_i32_0 : i32, i32, i32
  }
  func.func @transform_1(%arg0: i32) -> (i32, i32) {
    %c0_i32 = arith.constant 0 : i32
    %c0_i32_0 = arith.constant 0 : i32
    %c0_i32_1 = arith.constant 0 : i32
    return %c0_i32, %c0_i32_0 : i32, i32
  }
  func.func @transform_2(%arg0: i32) -> (i32, i32) {
    %c0_i32 = arith.constant 0 : i32
    %c0_i32_0 = arith.constant 0 : i32
    %c0_i32_1 = arith.constant 0 : i32
    return %c0_i32, %c0_i32_0 : i32, i32
  }
  func.func @transform_3(%arg0: i32) -> (i32, i32) {
    %c0_i32 = arith.constant 0 : i32
    %c0_i32_0 = arith.constant 0 : i32
    return %arg0, %c0_i32 : i32, i32
  }
}

module attributes {stable_mosaic.version = 11 : i64} {
  func.func @_conv_block_kernel(%arg0: i32, %arg1: memref<4x128x256xbf16, #tpu.memory_space<vmem>>, %arg2: memref<256x16xbf16, #tpu.memory_space<vmem>>, %arg3: memref<3x16xf32, #tpu.memory_space<vmem>>, %arg4: memref<128x16xf32, #tpu.memory_space<vmem>>) attributes {dimension_semantics = [#tpu.dimension_semantics<parallel>], iteration_bounds = array<i64: 1>, scalar_prefetch = 0 : i64, scratch_operands = 0 : i64, tpu.core_type = #tpu.core_type<tc>, window_params = [{transform_indices = @transform_0, window_bounds = array<i64: 4, 128, 256>}, {pipeline_mode = #tpu.pipeline_mode<synchronous>, transform_indices = @transform_1, window_bounds = array<i64: 256, 16>}, {pipeline_mode = #tpu.pipeline_mode<synchronous>, transform_indices = @transform_2, window_bounds = array<i64: 3, 16>}, {transform_indices = @transform_3, window_bounds = array<i64: 128, 16>}]} {
    %c0 = arith.constant 0 : index
    %c0_0 = arith.constant 0 : index
    %c0_1 = arith.constant 0 : index
    %0 = vector.load %arg1[%c0, %c0_0, %c0_1] : memref<4x128x256xbf16, #tpu.memory_space<vmem>>, vector<1x128x256xbf16>
    %1 = vector.shape_cast %0 : vector<1x128x256xbf16> to vector<128x256xbf16>
    %2 = arith.extf %1 : vector<128x256xbf16> to vector<128x256xf32>
    %c1 = arith.constant 1 : index
    %c0_2 = arith.constant 0 : index
    %c0_3 = arith.constant 0 : index
    %3 = vector.load %arg1[%c1, %c0_2, %c0_3] : memref<4x128x256xbf16, #tpu.memory_space<vmem>>, vector<1x128x256xbf16>
    %4 = vector.shape_cast %3 : vector<1x128x256xbf16> to vector<128x256xbf16>
    %5 = arith.extf %4 : vector<128x256xbf16> to vector<128x256xf32>
    %6 = arith.maximumf %2, %5 : vector<128x256xf32>
    %c2 = arith.constant 2 : index
    %c0_4 = arith.constant 0 : index
    %c0_5 = arith.constant 0 : index
    %7 = vector.load %arg1[%c2, %c0_4, %c0_5] : memref<4x128x256xbf16, #tpu.memory_space<vmem>>, vector<1x128x256xbf16>
    %8 = vector.shape_cast %7 : vector<1x128x256xbf16> to vector<128x256xbf16>
    %9 = arith.extf %8 : vector<128x256xbf16> to vector<128x256xf32>
    %10 = arith.maximumf %6, %9 : vector<128x256xf32>
    %c3 = arith.constant 3 : index
    %c0_6 = arith.constant 0 : index
    %c0_7 = arith.constant 0 : index
    %11 = vector.load %arg1[%c3, %c0_6, %c0_7] : memref<4x128x256xbf16, #tpu.memory_space<vmem>>, vector<1x128x256xbf16>
    %12 = vector.shape_cast %11 : vector<1x128x256xbf16> to vector<128x256xbf16>
    %13 = arith.extf %12 : vector<128x256xbf16> to vector<128x256xf32>
    %14 = arith.maximumf %10, %13 : vector<128x256xf32>
    %15 = arith.truncf %14 : vector<128x256xf32> to vector<128x256xbf16>
    %c0_8 = arith.constant 0 : index
    %c0_9 = arith.constant 0 : index
    %16 = vector.load %arg2[%c0_8, %c0_9] : memref<256x16xbf16, #tpu.memory_space<vmem>>, vector<256x16xbf16>
    %cst = arith.constant dense<0.000000e+00> : vector<128x16xf32>
    %17 = tpu.matmul %15, %16, %cst {dimension_numbers = #tpu.dot_dimension_numbers<[1], [0], [0], [1], [0, 0, 1, 1], [], []>} : vector<128x256xbf16>, vector<256x16xbf16>, vector<128x16xf32> -> vector<128x16xf32>
    %c0_10 = arith.constant 0 : index
    %c0_11 = arith.constant 0 : index
    %18 = vector.load %arg3[%c0_10, %c0_11] : memref<3x16xf32, #tpu.memory_space<vmem>>, vector<3x16xf32>
    %19 = vector.extract_strided_slice %18 {offsets = [0, 0], sizes = [1, 16], strides = [1, 1]} : vector<3x16xf32> to vector<1x16xf32>
    %20 = vector.broadcast %19 : vector<1x16xf32> to vector<128x16xf32>
    %21 = arith.addf %17, %20 : vector<128x16xf32>
    %cst_12 = arith.constant 0.000000e+00 : f32
    %22 = vector.broadcast %cst_12 : f32 to vector<128x16xf32>
    %23 = arith.maximumf %21, %22 : vector<128x16xf32>
    %24 = vector.extract_strided_slice %18 {offsets = [1, 0], sizes = [1, 16], strides = [1, 1]} : vector<3x16xf32> to vector<1x16xf32>
    %25 = vector.broadcast %24 : vector<1x16xf32> to vector<128x16xf32>
    %26 = arith.mulf %23, %25 : vector<128x16xf32>
    %27 = vector.extract_strided_slice %18 {offsets = [2, 0], sizes = [1, 16], strides = [1, 1]} : vector<3x16xf32> to vector<1x16xf32>
    %28 = vector.broadcast %27 : vector<1x16xf32> to vector<128x16xf32>
    %29 = arith.addf %26, %28 : vector<128x16xf32>
    %c0_13 = arith.constant 0 : index
    %c0_14 = arith.constant 0 : index
    %30 = vector.load %arg4[%c0_13, %c0_14] : memref<128x16xf32, #tpu.memory_space<vmem>>, vector<128x16xf32>
    tpu.vector_store %arg4[%c0_13, %c0_14], %29 {strides = array<i32>} : memref<128x16xf32, #tpu.memory_space<vmem>>, vector<128x16xf32>,
    return
  }
  func.func @transform_0(%arg0: i32) -> (i32, i32, i32) {
    %c0_i32 = arith.constant 0 : i32
    %c0_i32_0 = arith.constant 0 : i32
    %c0_i32_1 = arith.constant 0 : i32
    return %c0_i32, %arg0, %c0_i32_0 : i32, i32, i32
  }
  func.func @transform_1(%arg0: i32) -> (i32, i32) {
    %c0_i32 = arith.constant 0 : i32
    %c0_i32_0 = arith.constant 0 : i32
    %c0_i32_1 = arith.constant 0 : i32
    return %c0_i32, %c0_i32_0 : i32, i32
  }
  func.func @transform_2(%arg0: i32) -> (i32, i32) {
    %c0_i32 = arith.constant 0 : i32
    %c0_i32_0 = arith.constant 0 : i32
    %c0_i32_1 = arith.constant 0 : i32
    return %c0_i32, %c0_i32_0 : i32, i32
  }
  func.func @transform_3(%arg0: i32) -> (i32, i32) {
    %c0_i32 = arith.constant 0 : i32
    %c0_i32_0 = arith.constant 0 : i32
    return %arg0, %c0_i32 : i32, i32
  }
}

module attributes {stable_mosaic.version = 11 : i64} {
  func.func @_conv_block_kernel(%arg0: i32, %arg1: memref<4x32x512xbf16, #tpu.memory_space<vmem>>, %arg2: memref<512x16xbf16, #tpu.memory_space<vmem>>, %arg3: memref<3x16xf32, #tpu.memory_space<vmem>>, %arg4: memref<32x16xf32, #tpu.memory_space<vmem>>) attributes {dimension_semantics = [#tpu.dimension_semantics<parallel>], iteration_bounds = array<i64: 1>, scalar_prefetch = 0 : i64, scratch_operands = 0 : i64, tpu.core_type = #tpu.core_type<tc>, window_params = [{transform_indices = @transform_0, window_bounds = array<i64: 4, 32, 512>}, {pipeline_mode = #tpu.pipeline_mode<synchronous>, transform_indices = @transform_1, window_bounds = array<i64: 512, 16>}, {pipeline_mode = #tpu.pipeline_mode<synchronous>, transform_indices = @transform_2, window_bounds = array<i64: 3, 16>}, {transform_indices = @transform_3, window_bounds = array<i64: 32, 16>}]} {
    %c0 = arith.constant 0 : index
    %c0_0 = arith.constant 0 : index
    %c0_1 = arith.constant 0 : index
    %0 = vector.load %arg1[%c0, %c0_0, %c0_1] : memref<4x32x512xbf16, #tpu.memory_space<vmem>>, vector<1x32x512xbf16>
    %1 = vector.shape_cast %0 : vector<1x32x512xbf16> to vector<32x512xbf16>
    %2 = arith.extf %1 : vector<32x512xbf16> to vector<32x512xf32>
    %c1 = arith.constant 1 : index
    %c0_2 = arith.constant 0 : index
    %c0_3 = arith.constant 0 : index
    %3 = vector.load %arg1[%c1, %c0_2, %c0_3] : memref<4x32x512xbf16, #tpu.memory_space<vmem>>, vector<1x32x512xbf16>
    %4 = vector.shape_cast %3 : vector<1x32x512xbf16> to vector<32x512xbf16>
    %5 = arith.extf %4 : vector<32x512xbf16> to vector<32x512xf32>
    %6 = arith.maximumf %2, %5 : vector<32x512xf32>
    %c2 = arith.constant 2 : index
    %c0_4 = arith.constant 0 : index
    %c0_5 = arith.constant 0 : index
    %7 = vector.load %arg1[%c2, %c0_4, %c0_5] : memref<4x32x512xbf16, #tpu.memory_space<vmem>>, vector<1x32x512xbf16>
    %8 = vector.shape_cast %7 : vector<1x32x512xbf16> to vector<32x512xbf16>
    %9 = arith.extf %8 : vector<32x512xbf16> to vector<32x512xf32>
    %10 = arith.maximumf %6, %9 : vector<32x512xf32>
    %c3 = arith.constant 3 : index
    %c0_6 = arith.constant 0 : index
    %c0_7 = arith.constant 0 : index
    %11 = vector.load %arg1[%c3, %c0_6, %c0_7] : memref<4x32x512xbf16, #tpu.memory_space<vmem>>, vector<1x32x512xbf16>
    %12 = vector.shape_cast %11 : vector<1x32x512xbf16> to vector<32x512xbf16>
    %13 = arith.extf %12 : vector<32x512xbf16> to vector<32x512xf32>
    %14 = arith.maximumf %10, %13 : vector<32x512xf32>
    %15 = arith.truncf %14 : vector<32x512xf32> to vector<32x512xbf16>
    %c0_8 = arith.constant 0 : index
    %c0_9 = arith.constant 0 : index
    %16 = vector.load %arg2[%c0_8, %c0_9] : memref<512x16xbf16, #tpu.memory_space<vmem>>, vector<512x16xbf16>
    %cst = arith.constant dense<0.000000e+00> : vector<32x16xf32>
    %17 = tpu.matmul %15, %16, %cst {dimension_numbers = #tpu.dot_dimension_numbers<[1], [0], [0], [1], [0, 0, 1, 1], [], []>} : vector<32x512xbf16>, vector<512x16xbf16>, vector<32x16xf32> -> vector<32x16xf32>
    %c0_10 = arith.constant 0 : index
    %c0_11 = arith.constant 0 : index
    %18 = vector.load %arg3[%c0_10, %c0_11] : memref<3x16xf32, #tpu.memory_space<vmem>>, vector<3x16xf32>
    %19 = vector.extract_strided_slice %18 {offsets = [0, 0], sizes = [1, 16], strides = [1, 1]} : vector<3x16xf32> to vector<1x16xf32>
    %20 = vector.broadcast %19 : vector<1x16xf32> to vector<32x16xf32>
    %21 = arith.addf %17, %20 : vector<32x16xf32>
    %cst_12 = arith.constant 0.000000e+00 : f32
    %22 = vector.broadcast %cst_12 : f32 to vector<32x16xf32>
    %23 = arith.maximumf %21, %22 : vector<32x16xf32>
    %24 = vector.extract_strided_slice %18 {offsets = [1, 0], sizes = [1, 16], strides = [1, 1]} : vector<3x16xf32> to vector<1x16xf32>
    %25 = vector.broadcast %24 : vector<1x16xf32> to vector<32x16xf32>
    %26 = arith.mulf %23, %25 : vector<32x16xf32>
    %27 = vector.extract_strided_slice %18 {offsets = [2, 0], sizes = [1, 16], strides = [1, 1]} : vector<3x16xf32> to vector<1x16xf32>
    %28 = vector.broadcast %27 : vector<1x16xf32> to vector<32x16xf32>
    %29 = arith.addf %26, %28 : vector<32x16xf32>
    %c0_13 = arith.constant 0 : index
    %c0_14 = arith.constant 0 : index
    %30 = vector.load %arg4[%c0_13, %c0_14] : memref<32x16xf32, #tpu.memory_space<vmem>>, vector<32x16xf32>
    tpu.vector_store %arg4[%c0_13, %c0_14], %29 {strides = array<i32>} : memref<32x16xf32, #tpu.memory_space<vmem>>, vector<32x16xf32>,
    return
  }
  func.func @transform_0(%arg0: i32) -> (i32, i32, i32) {
    %c0_i32 = arith.constant 0 : i32
    %c0_i32_0 = arith.constant 0 : i32
    %c0_i32_1 = arith.constant 0 : i32
    return %c0_i32, %arg0, %c0_i32_0 : i32, i32, i32
  }
  func.func @transform_1(%arg0: i32) -> (i32, i32) {
    %c0_i32 = arith.constant 0 : i32
    %c0_i32_0 = arith.constant 0 : i32
    %c0_i32_1 = arith.constant 0 : i32
    return %c0_i32, %c0_i32_0 : i32, i32
  }
  func.func @transform_2(%arg0: i32) -> (i32, i32) {
    %c0_i32 = arith.constant 0 : i32
    %c0_i32_0 = arith.constant 0 : i32
    %c0_i32_1 = arith.constant 0 : i32
    return %c0_i32, %c0_i32_0 : i32, i32
  }
  func.func @transform_3(%arg0: i32) -> (i32, i32) {
    %c0_i32 = arith.constant 0 : i32
    %c0_i32_0 = arith.constant 0 : i32
    return %arg0, %c0_i32 : i32, i32
  }
}

module attributes {stable_mosaic.version = 11 : i64} {
  func.func @_conv_block_kernel(%arg0: i32, %arg1: memref<4x8x512xbf16, #tpu.memory_space<vmem>>, %arg2: memref<512x16xbf16, #tpu.memory_space<vmem>>, %arg3: memref<3x16xf32, #tpu.memory_space<vmem>>, %arg4: memref<8x16xf32, #tpu.memory_space<vmem>>) attributes {dimension_semantics = [#tpu.dimension_semantics<parallel>], iteration_bounds = array<i64: 1>, scalar_prefetch = 0 : i64, scratch_operands = 0 : i64, tpu.core_type = #tpu.core_type<tc>, window_params = [{transform_indices = @transform_0, window_bounds = array<i64: 4, 8, 512>}, {pipeline_mode = #tpu.pipeline_mode<synchronous>, transform_indices = @transform_1, window_bounds = array<i64: 512, 16>}, {pipeline_mode = #tpu.pipeline_mode<synchronous>, transform_indices = @transform_2, window_bounds = array<i64: 3, 16>}, {transform_indices = @transform_3, window_bounds = array<i64: 8, 16>}]} {
    %c0 = arith.constant 0 : index
    %c0_0 = arith.constant 0 : index
    %c0_1 = arith.constant 0 : index
    %0 = vector.load %arg1[%c0, %c0_0, %c0_1] : memref<4x8x512xbf16, #tpu.memory_space<vmem>>, vector<1x8x512xbf16>
    %1 = vector.shape_cast %0 : vector<1x8x512xbf16> to vector<8x512xbf16>
    %2 = arith.extf %1 : vector<8x512xbf16> to vector<8x512xf32>
    %c1 = arith.constant 1 : index
    %c0_2 = arith.constant 0 : index
    %c0_3 = arith.constant 0 : index
    %3 = vector.load %arg1[%c1, %c0_2, %c0_3] : memref<4x8x512xbf16, #tpu.memory_space<vmem>>, vector<1x8x512xbf16>
    %4 = vector.shape_cast %3 : vector<1x8x512xbf16> to vector<8x512xbf16>
    %5 = arith.extf %4 : vector<8x512xbf16> to vector<8x512xf32>
    %6 = arith.maximumf %2, %5 : vector<8x512xf32>
    %c2 = arith.constant 2 : index
    %c0_4 = arith.constant 0 : index
    %c0_5 = arith.constant 0 : index
    %7 = vector.load %arg1[%c2, %c0_4, %c0_5] : memref<4x8x512xbf16, #tpu.memory_space<vmem>>, vector<1x8x512xbf16>
    %8 = vector.shape_cast %7 : vector<1x8x512xbf16> to vector<8x512xbf16>
    %9 = arith.extf %8 : vector<8x512xbf16> to vector<8x512xf32>
    %10 = arith.maximumf %6, %9 : vector<8x512xf32>
    %c3 = arith.constant 3 : index
    %c0_6 = arith.constant 0 : index
    %c0_7 = arith.constant 0 : index
    %11 = vector.load %arg1[%c3, %c0_6, %c0_7] : memref<4x8x512xbf16, #tpu.memory_space<vmem>>, vector<1x8x512xbf16>
    %12 = vector.shape_cast %11 : vector<1x8x512xbf16> to vector<8x512xbf16>
    %13 = arith.extf %12 : vector<8x512xbf16> to vector<8x512xf32>
    %14 = arith.maximumf %10, %13 : vector<8x512xf32>
    %15 = arith.truncf %14 : vector<8x512xf32> to vector<8x512xbf16>
    %c0_8 = arith.constant 0 : index
    %c0_9 = arith.constant 0 : index
    %16 = vector.load %arg2[%c0_8, %c0_9] : memref<512x16xbf16, #tpu.memory_space<vmem>>, vector<512x16xbf16>
    %cst = arith.constant dense<0.000000e+00> : vector<8x16xf32>
    %17 = tpu.matmul %15, %16, %cst {dimension_numbers = #tpu.dot_dimension_numbers<[1], [0], [0], [1], [0, 0, 1, 1], [], []>} : vector<8x512xbf16>, vector<512x16xbf16>, vector<8x16xf32> -> vector<8x16xf32>
    %c0_10 = arith.constant 0 : index
    %c0_11 = arith.constant 0 : index
    %18 = vector.load %arg3[%c0_10, %c0_11] : memref<3x16xf32, #tpu.memory_space<vmem>>, vector<3x16xf32>
    %19 = vector.extract_strided_slice %18 {offsets = [0, 0], sizes = [1, 16], strides = [1, 1]} : vector<3x16xf32> to vector<1x16xf32>
    %20 = vector.broadcast %19 : vector<1x16xf32> to vector<8x16xf32>
    %21 = arith.addf %17, %20 : vector<8x16xf32>
    %cst_12 = arith.constant 0.000000e+00 : f32
    %22 = vector.broadcast %cst_12 : f32 to vector<8x16xf32>
    %23 = arith.maximumf %21, %22 : vector<8x16xf32>
    %24 = vector.extract_strided_slice %18 {offsets = [1, 0], sizes = [1, 16], strides = [1, 1]} : vector<3x16xf32> to vector<1x16xf32>
    %25 = vector.broadcast %24 : vector<1x16xf32> to vector<8x16xf32>
    %26 = arith.mulf %23, %25 : vector<8x16xf32>
    %27 = vector.extract_strided_slice %18 {offsets = [2, 0], sizes = [1, 16], strides = [1, 1]} : vector<3x16xf32> to vector<1x16xf32>
    %28 = vector.broadcast %27 : vector<1x16xf32> to vector<8x16xf32>
    %29 = arith.addf %26, %28 : vector<8x16xf32>
    %c0_13 = arith.constant 0 : index
    %c0_14 = arith.constant 0 : index
    %30 = vector.load %arg4[%c0_13, %c0_14] : memref<8x16xf32, #tpu.memory_space<vmem>>, vector<8x16xf32>
    tpu.vector_store %arg4[%c0_13, %c0_14], %29 {strides = array<i32>} : memref<8x16xf32, #tpu.memory_space<vmem>>, vector<8x16xf32>,
    return
  }
  func.func @transform_0(%arg0: i32) -> (i32, i32, i32) {
    %c0_i32 = arith.constant 0 : i32
    %c0_i32_0 = arith.constant 0 : i32
    %c0_i32_1 = arith.constant 0 : i32
    return %c0_i32, %arg0, %c0_i32_0 : i32, i32, i32
  }
  func.func @transform_1(%arg0: i32) -> (i32, i32) {
    %c0_i32 = arith.constant 0 : i32
    %c0_i32_0 = arith.constant 0 : i32
    %c0_i32_1 = arith.constant 0 : i32
    return %c0_i32, %c0_i32_0 : i32, i32
  }
  func.func @transform_2(%arg0: i32) -> (i32, i32) {
    %c0_i32 = arith.constant 0 : i32
    %c0_i32_0 = arith.constant 0 : i32
    %c0_i32_1 = arith.constant 0 : i32
    return %c0_i32, %c0_i32_0 : i32, i32
  }
  func.func @transform_3(%arg0: i32) -> (i32, i32) {
    %c0_i32 = arith.constant 0 : i32
    %c0_i32_0 = arith.constant 0 : i32
    return %arg0, %c0_i32 : i32, i32
  }
}

module attributes {stable_mosaic.version = 11 : i64} {
  func.func @_conv_block_kernel(%arg0: i32, %arg1: memref<4x2x896xbf16, #tpu.memory_space<vmem>>, %arg2: memref<896x16xbf16, #tpu.memory_space<vmem>>, %arg3: memref<3x16xf32, #tpu.memory_space<vmem>>, %arg4: memref<2x16xf32, #tpu.memory_space<vmem>>) attributes {dimension_semantics = [#tpu.dimension_semantics<parallel>], iteration_bounds = array<i64: 1>, scalar_prefetch = 0 : i64, scratch_operands = 0 : i64, tpu.core_type = #tpu.core_type<tc>, window_params = [{transform_indices = @transform_0, window_bounds = array<i64: 4, 2, 896>}, {pipeline_mode = #tpu.pipeline_mode<synchronous>, transform_indices = @transform_1, window_bounds = array<i64: 896, 16>}, {pipeline_mode = #tpu.pipeline_mode<synchronous>, transform_indices = @transform_2, window_bounds = array<i64: 3, 16>}, {transform_indices = @transform_3, window_bounds = array<i64: 2, 16>}]} {
    %c0 = arith.constant 0 : index
    %c0_0 = arith.constant 0 : index
    %c0_1 = arith.constant 0 : index
    %0 = vector.load %arg1[%c0, %c0_0, %c0_1] : memref<4x2x896xbf16, #tpu.memory_space<vmem>>, vector<1x2x896xbf16>
    %1 = vector.shape_cast %0 : vector<1x2x896xbf16> to vector<2x896xbf16>
    %2 = arith.extf %1 : vector<2x896xbf16> to vector<2x896xf32>
    %c1 = arith.constant 1 : index
    %c0_2 = arith.constant 0 : index
    %c0_3 = arith.constant 0 : index
    %3 = vector.load %arg1[%c1, %c0_2, %c0_3] : memref<4x2x896xbf16, #tpu.memory_space<vmem>>, vector<1x2x896xbf16>
    %4 = vector.shape_cast %3 : vector<1x2x896xbf16> to vector<2x896xbf16>
    %5 = arith.extf %4 : vector<2x896xbf16> to vector<2x896xf32>
    %6 = arith.maximumf %2, %5 : vector<2x896xf32>
    %c2 = arith.constant 2 : index
    %c0_4 = arith.constant 0 : index
    %c0_5 = arith.constant 0 : index
    %7 = vector.load %arg1[%c2, %c0_4, %c0_5] : memref<4x2x896xbf16, #tpu.memory_space<vmem>>, vector<1x2x896xbf16>
    %8 = vector.shape_cast %7 : vector<1x2x896xbf16> to vector<2x896xbf16>
    %9 = arith.extf %8 : vector<2x896xbf16> to vector<2x896xf32>
    %10 = arith.maximumf %6, %9 : vector<2x896xf32>
    %c3 = arith.constant 3 : index
    %c0_6 = arith.constant 0 : index
    %c0_7 = arith.constant 0 : index
    %11 = vector.load %arg1[%c3, %c0_6, %c0_7] : memref<4x2x896xbf16, #tpu.memory_space<vmem>>, vector<1x2x896xbf16>
    %12 = vector.shape_cast %11 : vector<1x2x896xbf16> to vector<2x896xbf16>
    %13 = arith.extf %12 : vector<2x896xbf16> to vector<2x896xf32>
    %14 = arith.maximumf %10, %13 : vector<2x896xf32>
    %15 = arith.truncf %14 : vector<2x896xf32> to vector<2x896xbf16>
    %c0_8 = arith.constant 0 : index
    %c0_9 = arith.constant 0 : index
    %16 = vector.load %arg2[%c0_8, %c0_9] : memref<896x16xbf16, #tpu.memory_space<vmem>>, vector<896x16xbf16>
    %cst = arith.constant dense<0.000000e+00> : vector<2x16xf32>
    %17 = tpu.matmul %15, %16, %cst {dimension_numbers = #tpu.dot_dimension_numbers<[1], [0], [0], [1], [0, 0, 1, 1], [], []>} : vector<2x896xbf16>, vector<896x16xbf16>, vector<2x16xf32> -> vector<2x16xf32>
    %c0_10 = arith.constant 0 : index
    %c0_11 = arith.constant 0 : index
    %18 = vector.load %arg3[%c0_10, %c0_11] : memref<3x16xf32, #tpu.memory_space<vmem>>, vector<3x16xf32>
    %19 = vector.extract_strided_slice %18 {offsets = [0, 0], sizes = [1, 16], strides = [1, 1]} : vector<3x16xf32> to vector<1x16xf32>
    %20 = vector.broadcast %19 : vector<1x16xf32> to vector<2x16xf32>
    %21 = arith.addf %17, %20 : vector<2x16xf32>
    %cst_12 = arith.constant 0.000000e+00 : f32
    %22 = vector.broadcast %cst_12 : f32 to vector<2x16xf32>
    %23 = arith.maximumf %21, %22 : vector<2x16xf32>
    %24 = vector.extract_strided_slice %18 {offsets = [1, 0], sizes = [1, 16], strides = [1, 1]} : vector<3x16xf32> to vector<1x16xf32>
    %25 = vector.broadcast %24 : vector<1x16xf32> to vector<2x16xf32>
    %26 = arith.mulf %23, %25 : vector<2x16xf32>
    %27 = vector.extract_strided_slice %18 {offsets = [2, 0], sizes = [1, 16], strides = [1, 1]} : vector<3x16xf32> to vector<1x16xf32>
    %28 = vector.broadcast %27 : vector<1x16xf32> to vector<2x16xf32>
    %29 = arith.addf %26, %28 : vector<2x16xf32>
    %c0_13 = arith.constant 0 : index
    %c0_14 = arith.constant 0 : index
    %30 = vector.load %arg4[%c0_13, %c0_14] : memref<2x16xf32, #tpu.memory_space<vmem>>, vector<2x16xf32>
    tpu.vector_store %arg4[%c0_13, %c0_14], %29 {strides = array<i32>} : memref<2x16xf32, #tpu.memory_space<vmem>>, vector<2x16xf32>,
    return
  }
  func.func @transform_0(%arg0: i32) -> (i32, i32, i32) {
    %c0_i32 = arith.constant 0 : i32
    %c0_i32_0 = arith.constant 0 : i32
    %c0_i32_1 = arith.constant 0 : i32
    return %c0_i32, %arg0, %c0_i32_0 : i32, i32, i32
  }
  func.func @transform_1(%arg0: i32) -> (i32, i32) {
    %c0_i32 = arith.constant 0 : i32
    %c0_i32_0 = arith.constant 0 : i32
    %c0_i32_1 = arith.constant 0 : i32
    return %c0_i32, %c0_i32_0 : i32, i32
  }
  func.func @transform_2(%arg0: i32) -> (i32, i32) {
    %c0_i32 = arith.constant 0 : i32
    %c0_i32_0 = arith.constant 0 : i32
    %c0_i32_1 = arith.constant 0 : i32
    return %c0_i32, %c0_i32_0 : i32, i32
  }
  func.func @transform_3(%arg0: i32) -> (i32, i32) {
    %c0_i32 = arith.constant 0 : i32
    %c0_i32_0 = arith.constant 0 : i32
    return %arg0, %c0_i32 : i32, i32
  }
}

module attributes {stable_mosaic.version = 11 : i64} {
  func.func @_head_kernel(%arg0: i32, %arg1: memref<5x128x256xbf16, #tpu.memory_space<vmem>>, %arg2: memref<5x256x16xbf16, #tpu.memory_space<vmem>>, %arg3: memref<5x3x16xf32, #tpu.memory_space<vmem>>, %arg4: memref<5x16x8xf32, #tpu.memory_space<vmem>>, %arg5: memref<1x8xf32, #tpu.memory_space<vmem>>, %arg6: memref<128x8xf32, #tpu.memory_space<vmem>>) attributes {dimension_semantics = [#tpu.dimension_semantics<parallel>], iteration_bounds = array<i64: 4>, scalar_prefetch = 0 : i64, scratch_operands = 0 : i64, tpu.core_type = #tpu.core_type<tc>, window_params = [{transform_indices = @transform_0, window_bounds = array<i64: 5, 128, 256>}, {pipeline_mode = #tpu.pipeline_mode<synchronous>, transform_indices = @transform_1, window_bounds = array<i64: 5, 256, 16>}, {pipeline_mode = #tpu.pipeline_mode<synchronous>, transform_indices = @transform_2, window_bounds = array<i64: 5, 3, 16>}, {pipeline_mode = #tpu.pipeline_mode<synchronous>, transform_indices = @transform_3, window_bounds = array<i64: 5, 16, 8>}, {pipeline_mode = #tpu.pipeline_mode<synchronous>, transform_indices = @transform_4, window_bounds = array<i64: 1, 8>}, {transform_indices = @transform_5, window_bounds = array<i64: 128, 8>}]} {
    %cst = arith.constant 0.000000e+00 : f32
    %0 = vector.broadcast %cst : f32 to vector<128x8xf32>
    %c0 = arith.constant 0 : index
    %c0_0 = arith.constant 0 : index
    %c0_1 = arith.constant 0 : index
    %1 = vector.load %arg1[%c0, %c0_0, %c0_1] : memref<5x128x256xbf16, #tpu.memory_space<vmem>>, vector<1x128x256xbf16>
    %2 = vector.shape_cast %1 : vector<1x128x256xbf16> to vector<128x256xbf16>
    %c0_2 = arith.constant 0 : index
    %c0_3 = arith.constant 0 : index
    %c0_4 = arith.constant 0 : index
    %3 = vector.load %arg2[%c0_2, %c0_3, %c0_4] : memref<5x256x16xbf16, #tpu.memory_space<vmem>>, vector<1x256x16xbf16>
    %4 = vector.shape_cast %3 : vector<1x256x16xbf16> to vector<256x16xbf16>
    %cst_5 = arith.constant dense<0.000000e+00> : vector<128x16xf32>
    %5 = tpu.matmul %2, %4, %cst_5 {dimension_numbers = #tpu.dot_dimension_numbers<[1], [0], [0], [1], [0, 0, 1, 1], [], []>} : vector<128x256xbf16>, vector<256x16xbf16>, vector<128x16xf32> -> vector<128x16xf32>
    %c0_6 = arith.constant 0 : index
    %c0_7 = arith.constant 0 : index
    %c0_8 = arith.constant 0 : index
    %6 = vector.load %arg3[%c0_6, %c0_7, %c0_8] : memref<5x3x16xf32, #tpu.memory_space<vmem>>, vector<1x3x16xf32>
    %7 = vector.shape_cast %6 : vector<1x3x16xf32> to vector<3x16xf32>
    %8 = vector.extract_strided_slice %7 {offsets = [0, 0], sizes = [1, 16], strides = [1, 1]} : vector<3x16xf32> to vector<1x16xf32>
    %9 = vector.broadcast %8 : vector<1x16xf32> to vector<128x16xf32>
    %10 = arith.addf %5, %9 : vector<128x16xf32>
    %cst_9 = arith.constant 0.000000e+00 : f32
    %11 = vector.broadcast %cst_9 : f32 to vector<128x16xf32>
    %12 = arith.maximumf %10, %11 : vector<128x16xf32>
    %13 = vector.extract_strided_slice %7 {offsets = [1, 0], sizes = [1, 16], strides = [1, 1]} : vector<3x16xf32> to vector<1x16xf32>
    %14 = vector.broadcast %13 : vector<1x16xf32> to vector<128x16xf32>
    %15 = arith.mulf %12, %14 : vector<128x16xf32>
    %16 = vector.extract_strided_slice %7 {offsets = [2, 0], sizes = [1, 16], strides = [1, 1]} : vector<3x16xf32> to vector<1x16xf32>
    %17 = vector.broadcast %16 : vector<1x16xf32> to vector<128x16xf32>
    %18 = arith.addf %15, %17 : vector<128x16xf32>
    %c0_10 = arith.constant 0 : index
    %c0_11 = arith.constant 0 : index
    %c0_12 = arith.constant 0 : index
    %19 = vector.load %arg4[%c0_10, %c0_11, %c0_12] : memref<5x16x8xf32, #tpu.memory_space<vmem>>, vector<1x16x8xf32>
    %20 = vector.shape_cast %19 : vector<1x16x8xf32> to vector<16x8xf32>
    %cst_13 = arith.constant dense<0.000000e+00> : vector<128x8xf32>
    %21 = tpu.matmul %18, %20, %cst_13 {dimension_numbers = #tpu.dot_dimension_numbers<[1], [0], [0], [1], [0, 0, 1, 1], [], []>} : vector<128x16xf32>, vector<16x8xf32>, vector<128x8xf32> -> vector<128x8xf32>
    %22 = arith.addf %0, %21 : vector<128x8xf32>
    %c1 = arith.constant 1 : index
    %c0_14 = arith.constant 0 : index
    %c0_15 = arith.constant 0 : index
    %23 = vector.load %arg1[%c1, %c0_14, %c0_15] : memref<5x128x256xbf16, #tpu.memory_space<vmem>>, vector<1x128x256xbf16>
    %24 = vector.shape_cast %23 : vector<1x128x256xbf16> to vector<128x256xbf16>
    %c1_16 = arith.constant 1 : index
    %c0_17 = arith.constant 0 : index
    %c0_18 = arith.constant 0 : index
    %25 = vector.load %arg2[%c1_16, %c0_17, %c0_18] : memref<5x256x16xbf16, #tpu.memory_space<vmem>>, vector<1x256x16xbf16>
    %26 = vector.shape_cast %25 : vector<1x256x16xbf16> to vector<256x16xbf16>
    %cst_19 = arith.constant dense<0.000000e+00> : vector<128x16xf32>
    %27 = tpu.matmul %24, %26, %cst_19 {dimension_numbers = #tpu.dot_dimension_numbers<[1], [0], [0], [1], [0, 0, 1, 1], [], []>} : vector<128x256xbf16>, vector<256x16xbf16>, vector<128x16xf32> -> vector<128x16xf32>
    %c1_20 = arith.constant 1 : index
    %c0_21 = arith.constant 0 : index
    %c0_22 = arith.constant 0 : index
    %28 = vector.load %arg3[%c1_20, %c0_21, %c0_22] : memref<5x3x16xf32, #tpu.memory_space<vmem>>, vector<1x3x16xf32>
    %29 = vector.shape_cast %28 : vector<1x3x16xf32> to vector<3x16xf32>
    %30 = vector.extract_strided_slice %29 {offsets = [0, 0], sizes = [1, 16], strides = [1, 1]} : vector<3x16xf32> to vector<1x16xf32>
    %31 = vector.broadcast %30 : vector<1x16xf32> to vector<128x16xf32>
    %32 = arith.addf %27, %31 : vector<128x16xf32>
    %cst_23 = arith.constant 0.000000e+00 : f32
    %33 = vector.broadcast %cst_23 : f32 to vector<128x16xf32>
    %34 = arith.maximumf %32, %33 : vector<128x16xf32>
    %35 = vector.extract_strided_slice %29 {offsets = [1, 0], sizes = [1, 16], strides = [1, 1]} : vector<3x16xf32> to vector<1x16xf32>
    %36 = vector.broadcast %35 : vector<1x16xf32> to vector<128x16xf32>
    %37 = arith.mulf %34, %36 : vector<128x16xf32>
    %38 = vector.extract_strided_slice %29 {offsets = [2, 0], sizes = [1, 16], strides = [1, 1]} : vector<3x16xf32> to vector<1x16xf32>
    %39 = vector.broadcast %38 : vector<1x16xf32> to vector<128x16xf32>
    %40 = arith.addf %37, %39 : vector<128x16xf32>
    %c1_24 = arith.constant 1 : index
    %c0_25 = arith.constant 0 : index
    %c0_26 = arith.constant 0 : index
    %41 = vector.load %arg4[%c1_24, %c0_25, %c0_26] : memref<5x16x8xf32, #tpu.memory_space<vmem>>, vector<1x16x8xf32>
    %42 = vector.shape_cast %41 : vector<1x16x8xf32> to vector<16x8xf32>
    %cst_27 = arith.constant dense<0.000000e+00> : vector<128x8xf32>
    %43 = tpu.matmul %40, %42, %cst_27 {dimension_numbers = #tpu.dot_dimension_numbers<[1], [0], [0], [1], [0, 0, 1, 1], [], []>} : vector<128x16xf32>, vector<16x8xf32>, vector<128x8xf32> -> vector<128x8xf32>
    %44 = arith.addf %22, %43 : vector<128x8xf32>
    %c2 = arith.constant 2 : index
    %c0_28 = arith.constant 0 : index
    %c0_29 = arith.constant 0 : index
    %45 = vector.load %arg1[%c2, %c0_28, %c0_29] : memref<5x128x256xbf16, #tpu.memory_space<vmem>>, vector<1x128x256xbf16>
    %46 = vector.shape_cast %45 : vector<1x128x256xbf16> to vector<128x256xbf16>
    %c2_30 = arith.constant 2 : index
    %c0_31 = arith.constant 0 : index
    %c0_32 = arith.constant 0 : index
    %47 = vector.load %arg2[%c2_30, %c0_31, %c0_32] : memref<5x256x16xbf16, #tpu.memory_space<vmem>>, vector<1x256x16xbf16>
    %48 = vector.shape_cast %47 : vector<1x256x16xbf16> to vector<256x16xbf16>
    %cst_33 = arith.constant dense<0.000000e+00> : vector<128x16xf32>
    %49 = tpu.matmul %46, %48, %cst_33 {dimension_numbers = #tpu.dot_dimension_numbers<[1], [0], [0], [1], [0, 0, 1, 1], [], []>} : vector<128x256xbf16>, vector<256x16xbf16>, vector<128x16xf32> -> vector<128x16xf32>
    %c2_34 = arith.constant 2 : index
    %c0_35 = arith.constant 0 : index
    %c0_36 = arith.constant 0 : index
    %50 = vector.load %arg3[%c2_34, %c0_35, %c0_36] : memref<5x3x16xf32, #tpu.memory_space<vmem>>, vector<1x3x16xf32>
    %51 = vector.shape_cast %50 : vector<1x3x16xf32> to vector<3x16xf32>
    %52 = vector.extract_strided_slice %51 {offsets = [0, 0], sizes = [1, 16], strides = [1, 1]} : vector<3x16xf32> to vector<1x16xf32>
    %53 = vector.broadcast %52 : vector<1x16xf32> to vector<128x16xf32>
    %54 = arith.addf %49, %53 : vector<128x16xf32>
    %cst_37 = arith.constant 0.000000e+00 : f32
    %55 = vector.broadcast %cst_37 : f32 to vector<128x16xf32>
    %56 = arith.maximumf %54, %55 : vector<128x16xf32>
    %57 = vector.extract_strided_slice %51 {offsets = [1, 0], sizes = [1, 16], strides = [1, 1]} : vector<3x16xf32> to vector<1x16xf32>
    %58 = vector.broadcast %57 : vector<1x16xf32> to vector<128x16xf32>
    %59 = arith.mulf %56, %58 : vector<128x16xf32>
    %60 = vector.extract_strided_slice %51 {offsets = [2, 0], sizes = [1, 16], strides = [1, 1]} : vector<3x16xf32> to vector<1x16xf32>
    %61 = vector.broadcast %60 : vector<1x16xf32> to vector<128x16xf32>
    %62 = arith.addf %59, %61 : vector<128x16xf32>
    %c2_38 = arith.constant 2 : index
    %c0_39 = arith.constant 0 : index
    %c0_40 = arith.constant 0 : index
    %63 = vector.load %arg4[%c2_38, %c0_39, %c0_40] : memref<5x16x8xf32, #tpu.memory_space<vmem>>, vector<1x16x8xf32>
    %64 = vector.shape_cast %63 : vector<1x16x8xf32> to vector<16x8xf32>
    %cst_41 = arith.constant dense<0.000000e+00> : vector<128x8xf32>
    %65 = tpu.matmul %62, %64, %cst_41 {dimension_numbers = #tpu.dot_dimension_numbers<[1], [0], [0], [1], [0, 0, 1, 1], [], []>} : vector<128x16xf32>, vector<16x8xf32>, vector<128x8xf32> -> vector<128x8xf32>
    %66 = arith.addf %44, %65 : vector<128x8xf32>
    %c3 = arith.constant 3 : index
    %c0_42 = arith.constant 0 : index
    %c0_43 = arith.constant 0 : index
    %67 = vector.load %arg1[%c3, %c0_42, %c0_43] : memref<5x128x256xbf16, #tpu.memory_space<vmem>>, vector<1x128x256xbf16>
    %68 = vector.shape_cast %67 : vector<1x128x256xbf16> to vector<128x256xbf16>
    %c3_44 = arith.constant 3 : index
    %c0_45 = arith.constant 0 : index
    %c0_46 = arith.constant 0 : index
    %69 = vector.load %arg2[%c3_44, %c0_45, %c0_46] : memref<5x256x16xbf16, #tpu.memory_space<vmem>>, vector<1x256x16xbf16>
    %70 = vector.shape_cast %69 : vector<1x256x16xbf16> to vector<256x16xbf16>
    %cst_47 = arith.constant dense<0.000000e+00> : vector<128x16xf32>
    %71 = tpu.matmul %68, %70, %cst_47 {dimension_numbers = #tpu.dot_dimension_numbers<[1], [0], [0], [1], [0, 0, 1, 1], [], []>} : vector<128x256xbf16>, vector<256x16xbf16>, vector<128x16xf32> -> vector<128x16xf32>
    %c3_48 = arith.constant 3 : index
    %c0_49 = arith.constant 0 : index
    %c0_50 = arith.constant 0 : index
    %72 = vector.load %arg3[%c3_48, %c0_49, %c0_50] : memref<5x3x16xf32, #tpu.memory_space<vmem>>, vector<1x3x16xf32>
    %73 = vector.shape_cast %72 : vector<1x3x16xf32> to vector<3x16xf32>
    %74 = vector.extract_strided_slice %73 {offsets = [0, 0], sizes = [1, 16], strides = [1, 1]} : vector<3x16xf32> to vector<1x16xf32>
    %75 = vector.broadcast %74 : vector<1x16xf32> to vector<128x16xf32>
    %76 = arith.addf %71, %75 : vector<128x16xf32>
    %cst_51 = arith.constant 0.000000e+00 : f32
    %77 = vector.broadcast %cst_51 : f32 to vector<128x16xf32>
    %78 = arith.maximumf %76, %77 : vector<128x16xf32>
    %79 = vector.extract_strided_slice %73 {offsets = [1, 0], sizes = [1, 16], strides = [1, 1]} : vector<3x16xf32> to vector<1x16xf32>
    %80 = vector.broadcast %79 : vector<1x16xf32> to vector<128x16xf32>
    %81 = arith.mulf %78, %80 : vector<128x16xf32>
    %82 = vector.extract_strided_slice %73 {offsets = [2, 0], sizes = [1, 16], strides = [1, 1]} : vector<3x16xf32> to vector<1x16xf32>
    %83 = vector.broadcast %82 : vector<1x16xf32> to vector<128x16xf32>
    %84 = arith.addf %81, %83 : vector<128x16xf32>
    %c3_52 = arith.constant 3 : index
    %c0_53 = arith.constant 0 : index
    %c0_54 = arith.constant 0 : index
    %85 = vector.load %arg4[%c3_52, %c0_53, %c0_54] : memref<5x16x8xf32, #tpu.memory_space<vmem>>, vector<1x16x8xf32>
    %86 = vector.shape_cast %85 : vector<1x16x8xf32> to vector<16x8xf32>
    %cst_55 = arith.constant dense<0.000000e+00> : vector<128x8xf32>
    %87 = tpu.matmul %84, %86, %cst_55 {dimension_numbers = #tpu.dot_dimension_numbers<[1], [0], [0], [1], [0, 0, 1, 1], [], []>} : vector<128x16xf32>, vector<16x8xf32>, vector<128x8xf32> -> vector<128x8xf32>
    %88 = arith.addf %66, %87 : vector<128x8xf32>
    %c4 = arith.constant 4 : index
    %c0_56 = arith.constant 0 : index
    %c0_57 = arith.constant 0 : index
    %89 = vector.load %arg1[%c4, %c0_56, %c0_57] : memref<5x128x256xbf16, #tpu.memory_space<vmem>>, vector<1x128x256xbf16>
    %90 = vector.shape_cast %89 : vector<1x128x256xbf16> to vector<128x256xbf16>
    %c4_58 = arith.constant 4 : index
    %c0_59 = arith.constant 0 : index
    %c0_60 = arith.constant 0 : index
    %91 = vector.load %arg2[%c4_58, %c0_59, %c0_60] : memref<5x256x16xbf16, #tpu.memory_space<vmem>>, vector<1x256x16xbf16>
    %92 = vector.shape_cast %91 : vector<1x256x16xbf16> to vector<256x16xbf16>
    %cst_61 = arith.constant dense<0.000000e+00> : vector<128x16xf32>
    %93 = tpu.matmul %90, %92, %cst_61 {dimension_numbers = #tpu.dot_dimension_numbers<[1], [0], [0], [1], [0, 0, 1, 1], [], []>} : vector<128x256xbf16>, vector<256x16xbf16>, vector<128x16xf32> -> vector<128x16xf32>
    %c4_62 = arith.constant 4 : index
    %c0_63 = arith.constant 0 : index
    %c0_64 = arith.constant 0 : index
    %94 = vector.load %arg3[%c4_62, %c0_63, %c0_64] : memref<5x3x16xf32, #tpu.memory_space<vmem>>, vector<1x3x16xf32>
    %95 = vector.shape_cast %94 : vector<1x3x16xf32> to vector<3x16xf32>
    %96 = vector.extract_strided_slice %95 {offsets = [0, 0], sizes = [1, 16], strides = [1, 1]} : vector<3x16xf32> to vector<1x16xf32>
    %97 = vector.broadcast %96 : vector<1x16xf32> to vector<128x16xf32>
    %98 = arith.addf %93, %97 : vector<128x16xf32>
    %cst_65 = arith.constant 0.000000e+00 : f32
    %99 = vector.broadcast %cst_65 : f32 to vector<128x16xf32>
    %100 = arith.maximumf %98, %99 : vector<128x16xf32>
    %101 = vector.extract_strided_slice %95 {offsets = [1, 0], sizes = [1, 16], strides = [1, 1]} : vector<3x16xf32> to vector<1x16xf32>
    %102 = vector.broadcast %101 : vector<1x16xf32> to vector<128x16xf32>
    %103 = arith.mulf %100, %102 : vector<128x16xf32>
    %104 = vector.extract_strided_slice %95 {offsets = [2, 0], sizes = [1, 16], strides = [1, 1]} : vector<3x16xf32> to vector<1x16xf32>
    %105 = vector.broadcast %104 : vector<1x16xf32> to vector<128x16xf32>
    %106 = arith.addf %103, %105 : vector<128x16xf32>
    %c4_66 = arith.constant 4 : index
    %c0_67 = arith.constant 0 : index
    %c0_68 = arith.constant 0 : index
    %107 = vector.load %arg4[%c4_66, %c0_67, %c0_68] : memref<5x16x8xf32, #tpu.memory_space<vmem>>, vector<1x16x8xf32>
    %108 = vector.shape_cast %107 : vector<1x16x8xf32> to vector<16x8xf32>
    %cst_69 = arith.constant dense<0.000000e+00> : vector<128x8xf32>
    %109 = tpu.matmul %106, %108, %cst_69 {dimension_numbers = #tpu.dot_dimension_numbers<[1], [0], [0], [1], [0, 0, 1, 1], [], []>} : vector<128x16xf32>, vector<16x8xf32>, vector<128x8xf32> -> vector<128x8xf32>
    %110 = arith.addf %88, %109 : vector<128x8xf32>
    %c0_70 = arith.constant 0 : index
    %c0_71 = arith.constant 0 : index
    %111 = vector.load %arg5[%c0_70, %c0_71] : memref<1x8xf32, #tpu.memory_space<vmem>>, vector<1x8xf32>
    %112 = vector.broadcast %111 : vector<1x8xf32> to vector<128x8xf32>
    %113 = arith.addf %110, %112 : vector<128x8xf32>
    %c0_72 = arith.constant 0 : index
    %c0_73 = arith.constant 0 : index
    %114 = vector.load %arg6[%c0_72, %c0_73] : memref<128x8xf32, #tpu.memory_space<vmem>>, vector<128x8xf32>
    tpu.vector_store %arg6[%c0_72, %c0_73], %113 {strides = array<i32>} : memref<128x8xf32, #tpu.memory_space<vmem>>, vector<128x8xf32>,
    return
  }
  func.func @transform_0(%arg0: i32) -> (i32, i32, i32) {
    %c0_i32 = arith.constant 0 : i32
    %c0_i32_0 = arith.constant 0 : i32
    %c0_i32_1 = arith.constant 0 : i32
    return %c0_i32, %arg0, %c0_i32_0 : i32, i32, i32
  }
  func.func @transform_1(%arg0: i32) -> (i32, i32, i32) {
    %c0_i32 = arith.constant 0 : i32
    %c0_i32_0 = arith.constant 0 : i32
    %c0_i32_1 = arith.constant 0 : i32
    %c0_i32_2 = arith.constant 0 : i32
    return %c0_i32, %c0_i32_0, %c0_i32_1 : i32, i32, i32
  }
  func.func @transform_2(%arg0: i32) -> (i32, i32, i32) {
    %c0_i32 = arith.constant 0 : i32
    %c0_i32_0 = arith.constant 0 : i32
    %c0_i32_1 = arith.constant 0 : i32
    %c0_i32_2 = arith.constant 0 : i32
    return %c0_i32, %c0_i32_0, %c0_i32_1 : i32, i32, i32
  }
  func.func @transform_3(%arg0: i32) -> (i32, i32, i32) {
    %c0_i32 = arith.constant 0 : i32
    %c0_i32_0 = arith.constant 0 : i32
    %c0_i32_1 = arith.constant 0 : i32
    %c0_i32_2 = arith.constant 0 : i32
    return %c0_i32, %c0_i32_0, %c0_i32_1 : i32, i32, i32
  }
  func.func @transform_4(%arg0: i32) -> (i32, i32) {
    %c0_i32 = arith.constant 0 : i32
    %c0_i32_0 = arith.constant 0 : i32
    %c0_i32_1 = arith.constant 0 : i32
    return %c0_i32, %c0_i32_0 : i32, i32
  }
  func.func @transform_5(%arg0: i32) -> (i32, i32) {
    %c0_i32 = arith.constant 0 : i32
    %c0_i32_0 = arith.constant 0 : i32
    return %arg0, %c0_i32 : i32, i32
  }
}

</mosaic_0001>

<bundles_post_ra>
// kernel: fcn_adf_forward.6
= control target key start
LH: loop header
LB: loop body
LE: loop exit
PB: predicated region body
PF: predicated region fallthrough
CT: control target
= control target key end

     0   :  { %s677_s12 = smov 0   ;;  %s823_s0 = inlined_call_operand.vmem [shape: bf16[1,512,128], index: 0, kind: input, shape index: {}]   ;;  %s824_s1 = inlined_call_operand.vmem [shape: bf16[128,16], index: 1, kind: input, shape index: {}]   ;;  %s825_s2 = inlined_call_operand.vmem [shape: f32[3,16], index: 2, kind: input, shape index: {}]   ;;  %s826_s3 = inlined_call_operand.vmem [shape: f32[512,16], index: 3, kind: output, shape index: {}]  }
   0x1 LB: > { %s534_s13 = sadd.s32 4294967295, %s655_s12   ;;  %p538_p0 = scmp.ge.s32.totalorder %s655_s12, 1  ;;  %s655_s12 = sphi %s677_s12, %s13_s12  }
   0x2   : > { %p138_p1 = scmp.lt.s32.totalorder %s655_s12, 5 }
   0x4   : > { %p139_p2 = pnand %p538_p0, %p138_p1 }
   0x5   : > { %s539_s16 = sshll.u32 (!%p139_p2), %s534_s13, 4 }
   0x6   : > { %142 = sbr.rel (%p139_p2) target bundleno = 262 (0x106), region = 32  ;;  %p163_p3 = scmp.lt.s32.totalorder (!%p139_p2), %s539_s16, 63 }
   0xb   : > { %v633_v0 = vld [vmem:[%s824_s1 + $0x38] sm:$0xff]   ;;  %v634_v1 = vld [vmem:[%s824_s1 + $0x30] sm:$0xff]   ;;  %s828_s16 = smov (!%p163_p3, %s539_s16), 63  ;;  %v635_v2 = vld [vmem:[%s824_s1 + $0x28] sm:$0xff]   ;;  %v208_v16 = vlaneseq  ;;  %vm461_vm0 = vcmask 130048  }
   0xc   : > { %577 = vmatprep.subr.bf16.mxu0 %v633_v0  ;;  %609 = vmatprep.subr.bf16.mxu1 %v633_v0  ;;  %s540_s21 = sshll.u32 %s828_s16, 2  ;;  %v636_v3 = vld [vmem:[%s824_s1 + $0x20] sm:$0xff]   ;;  %v637_v6 = vld [vmem:[%s824_s1 + $0x18] sm:$0xff]   ;;  %v638_v7 = vld [vmem:[%s824_s1 + $0x10] sm:$0xff]   ;;  %s542_s10 = sshll.u32 %s828_s16, 3 }
   0xd   : > { %578 = vmatpush3.bf16.msra.mxu0 %v633_v0  ;;  %617 = vmatpush3.bf16.msra.mxu1 %v633_v0  ;;  %s700_s24 = scalar_lea.vmem %s823_s0, %s540_s21  ;;  %v639_v8 = vld [vmem:[%s824_s1 + $0x8] sm:$0xff]   ;;  %v640_v9 = vld [vmem:[%s824_s1] sm:$0xff]   ;;  %v209_v17 = vshrl.u32 %v208_v16, 7  ;;  %s744_s14 = scalar_lea.vmem %s826_s3, %s542_s10 }
   0xe   : > { %579 = vmatprep.subr.bf16.mxu0 %v634_v1  ;;  %610 = vmatprep.subr.bf16.mxu1 %v634_v1  ;;  %v641_v4 = vld [vmem:[%s700_s24] sm:$0xff]   ;;  %v643_v10 = vld [vmem:[%s700_s24 + $0x8] sm:$0xff]   ;;  %v645_v12 = vld [vmem:[%s700_s24 + $0x10] sm:$0xff]  }
   0xf   : > { %v642_v5 = vld [vmem:[%s700_s24 + $0x20] sm:$0xff]   ;;  %593 = vmatprep.mubr.bf16.mxu0 %v641_v4  ;;  %v644_v11 = vld [vmem:[%s700_s24 + $0x28] sm:$0xff]   ;;  %v646_v13 = vld [vmem:[%s700_s24 + $0x30] sm:$0xff]   ;;  %v210_v18 = vsub.s32 0, %v209_v17  ;;  %v423_v21 = vsub.s32 1, %v209_v17  ;;  %v443_v22 = vsub.s32 2, %v209_v17 }
  0x10   : > { %601 = vmatprep.mubr.bf16.mxu1 %v642_v5  ;;  %v647_v14 = vld [vmem:[%s700_s24 + $0x18] sm:$0xff]   ;;  %v207_v19 = vld [vmem:[%s825_s2] sm:$0x7] }
  0x11   : > { %580 = vmatpush3.bf16.msra.mxu0 %v634_v1  ;;  %618 = vmatpush3.bf16.msra.mxu1 %v634_v1  ;;  %v648_v15 = vld [vmem:[%s700_s24 + $0x38] sm:$0xff]   ;;  %v728_v20 = vrot.slane %v207_v19, %v210_v18  ;;  %v731_v26 = vrot.slane %v207_v19, %v423_v21  ;;  %v734_v28 = vrot.slane %v207_v19, %v443_v22 }
  0x12   : > { %581 = vmatprep.subr.bf16.mxu0 %v635_v2  ;;  %611 = vmatprep.subr.bf16.mxu1 %v635_v2 }
  0x15   : > { %582 = vmatpush3.bf16.msra.mxu0 %v635_v2  ;;  %619 = vmatpush3.bf16.msra.mxu1 %v635_v2 }
  0x16   : > { %583 = vmatprep.subr.bf16.mxu0 %v636_v3  ;;  %612 = vmatprep.subr.bf16.mxu1 %v636_v3 }
  0x19   : > { %584 = vmatpush3.bf16.msra.mxu0 %v636_v3  ;;  %620 = vmatpush3.bf16.msra.mxu1 %v636_v3 }
  0x1a   : > { %585 = vmatprep.subr.bf16.mxu0 %v637_v6  ;;  %613 = vmatprep.subr.bf16.mxu1 %v637_v6 }
  0x1d   : > { %586 = vmatpush3.bf16.msra.mxu0 %v637_v6  ;;  %621 = vmatpush3.bf16.msra.mxu1 %v637_v6 }
  0x1e   : > { %587 = vmatprep.subr.bf16.mxu0 %v638_v7  ;;  %614 = vmatprep.subr.bf16.mxu1 %v638_v7 }
  0x21   : > { %588 = vmatpush3.bf16.msra.mxu0 %v638_v7  ;;  %622 = vmatpush3.bf16.msra.mxu1 %v638_v7 }
  0x22   : > { %589 = vmatprep.subr.bf16.mxu0 %v639_v8  ;;  %615 = vmatprep.subr.bf16.mxu1 %v639_v8 }
  0x25   : > { %590 = vmatpush3.bf16.msra.mxu0 %v639_v8  ;;  %623 = vmatpush3.bf16.msra.mxu1 %v639_v8 }
  0x26   : > { %591 = vmatprep.subr.bf16.mxu0 %v640_v9  ;;  %616 = vmatprep.subr.bf16.mxu1 %v640_v9 }
  0x29   : > { %592 = vmatpush3.bf16.msra.mxu0 %v640_v9  ;;  %624 = vmatpush3.bf16.msra.mxu1 %v640_v9 }
  0x2c   : > { %594 = vmatmul.mubr.bf16.vlgmr.msra.gmra.mxu0 %v643_v10  ;;  %602 = vmatmul.mubr.bf16.vlgmr.msra.gmra.mxu1 %v644_v11 }
  0x2d   : > { %597 = vmatprep.mubr.bf16.mxu0 %v645_v12  ;;  %605 = vmatprep.mubr.bf16.mxu1 %v646_v13 }
  0x34   : > { %598 = vmatmul.mubr.bf16.gmra.mxu0 %v647_v14  ;;  %606 = vmatmul.mubr.bf16.gmra.mxu1 %v648_v15 }
  0xec   : > { %v595_v23 = vpop.f32.mrf.mxu0  ;;  %v603_v24 = vpop.f32.mrf.mxu1 }
  0xed   : > { %v351_v25 = vadd.f32 %v595_v23, %v728_v20  ;;  %v383_v27 = vadd.f32 %v603_v24, %v728_v20 }
  0xee   : > { %v342_v29 = vpop.f32.mrf.mxu0  ;;  %v374_v30 = vpop.f32.mrf.mxu1 }
  0xef   : > { %v407_v31 = vmax.f32 %v351_v25, 0.0  ;;  %v415_v32 = vmax.f32 %v383_v27, 0.0  ;;  %v343_v33 = vadd.f32 %v342_v29, %v728_v20  ;;  %v375_v34 = vadd.f32 %v374_v30, %v728_v20 }
  0xf0   : > { %v596_v35 = vpop.f32.mrf.mxu0  ;;  %v604_v36 = vpop.f32.mrf.mxu1 }
  0xf1   : > { %v427_v37 = vmul.f32 %v731_v26, %v407_v31  ;;  %v435_v38 = vmul.f32 %v731_v26, %v415_v32  ;;  %v405_v39 = vmax.f32 %v343_v33, 0.0  ;;  %v413_v40 = vmax.f32 %v375_v34, 0.0 }
  0xf2   : > { %v354_v41 = vadd.f32 %v596_v35, %v728_v20  ;;  %v386_v42 = vadd.f32 %v604_v36, %v728_v20  ;;  %v345_v43 = vpop.f32.mrf.mxu0  ;;  %v377_v44 = vpop.f32.mrf.mxu1 }
  0xf3   : > { %v447_v45 = vadd.f32 %v734_v28, %v427_v37  ;;  %v455_v46 = vadd.f32 %v734_v28, %v435_v38  ;;  %v425_v47 = vmul.f32 %v731_v26, %v405_v39  ;;  %v433_v48 = vmul.f32 %v731_v26, %v413_v40 }
  0xf4   : > { %v408_v49 = vmax.f32 %v354_v41, 0.0  ;;  %v416_v50 = vmax.f32 %v386_v42, 0.0  ;;  %v346_v51 = vadd.f32 %v345_v43, %v728_v20  ;;  %v378_v52 = vadd.f32 %v377_v44, %v728_v20  ;;  %v599_v53 = vpop.f32.mrf.mxu0  ;;  %v607_v54 = vpop.f32.mrf.mxu1 }
  0xf5   : > { %464 = vst.msk [vmem:[%s744_s14 + $0x10] sm:$0xff] %vm461_vm0, %v447_v45  ;;  %472 = vst.msk [vmem:[%s744_s14 + $0x50] sm:$0xff] %vm461_vm0, %v455_v46  ;;  %v445_v55 = vadd.f32 %v734_v28, %v425_v47  ;;  %v453_v56 = vadd.f32 %v734_v28, %v433_v48  ;;  %v367_v57 = vadd.f32 %v599_v53, %v728_v20 }
  0xf6   : > { %v399_v58 = vadd.f32 %v607_v54, %v728_v20  ;;  %v428_v59 = vmul.f32 %v731_v26, %v408_v49  ;;  %v436_v60 = vmul.f32 %v731_v26, %v416_v50  ;;  %v406_v61 = vmax.f32 %v346_v51, 0.0  ;;  %v358_v63 = vpop.f32.mrf.mxu0  ;;  %v390_v0 = vpop.f32.mrf.mxu1 }
  0xf7   : > { %v414_v62 = vmax.f32 %v378_v52, 0.0  ;;  %462 = vst.msk [vmem:[%s744_s14] sm:$0xff] %vm461_vm0, %v445_v55  ;;  %470 = vst.msk [vmem:[%s744_s14 + $0x40] sm:$0xff] %vm461_vm0, %v453_v56  ;;  %v411_v1 = vmax.f32 %v367_v57, 0.0  ;;  %v359_v3 = vadd.f32 %v358_v63, %v728_v20  ;;  %v391_v4 = vadd.f32 %v390_v0, %v728_v20 }
  0xf8   : > { %v419_v2 = vmax.f32 %v399_v58, 0.0  ;;  %v448_v5 = vadd.f32 %v734_v28, %v428_v59  ;;  %v456_v6 = vadd.f32 %v734_v28, %v436_v60  ;;  %v426_v7 = vmul.f32 %v731_v26, %v406_v61  ;;  %v600_v9 = vpop.f32.mrf.mxu0  ;;  %v608_v10 = vpop.f32.mrf.mxu1 }
  0xf9   : > { %v434_v8 = vmul.f32 %v731_v26, %v414_v62  ;;  %v431_v11 = vmul.f32 %v731_v26, %v411_v1  ;;  %v409_v13 = vmax.f32 %v359_v3, 0.0  ;;  %v417_v14 = vmax.f32 %v391_v4, 0.0 }
  0xfa   : > { %v439_v12 = vmul.f32 %v731_v26, %v419_v2  ;;  %465 = vst.msk [vmem:[%s744_s14 + $0x18] sm:$0xff] %vm461_vm0, %v448_v5  ;;  %473 = vst.msk [vmem:[%s744_s14 + $0x58] sm:$0xff] %vm461_vm0, %v456_v6  ;;  %v446_v15 = vadd.f32 %v734_v28, %v426_v7  ;;  %v370_v17 = vadd.f32 %v600_v9, %v728_v20  ;;  %v361_v19 = vpop.f32.mrf.mxu0  ;;  %v393_v21 = vpop.f32.mrf.mxu1 }
  0xfb   : > { %v454_v16 = vadd.f32 %v734_v28, %v434_v8  ;;  %v402_v18 = vadd.f32 %v608_v10, %v728_v20  ;;  %v451_v22 = vadd.f32 %v734_v28, %v431_v11  ;;  %v429_v24 = vmul.f32 %v731_v26, %v409_v13 }
  0xfc   : > { %v459_v23 = vadd.f32 %v734_v28, %v439_v12  ;;  %v437_v25 = vmul.f32 %v731_v26, %v417_v14  ;;  %463 = vst.msk [vmem:[%s744_s14 + $0x8] sm:$0xff] %vm461_vm0, %v446_v15  ;;  %v412_v27 = vmax.f32 %v370_v17, 0.0  ;;  %v362_v30 = vadd.f32 %v361_v19, %v728_v20 }
  0xfd   : > { %471 = vst.msk [vmem:[%s744_s14 + $0x48] sm:$0xff] %vm461_vm0, %v454_v16  ;;  %v420_v29 = vmax.f32 %v402_v18, 0.0  ;;  %v394_v31 = vadd.f32 %v393_v21, %v728_v20  ;;  %468 = vst.msk [vmem:[%s744_s14 + $0x30] sm:$0xff] %vm461_vm0, %v451_v22  ;;  %v449_v32 = vadd.f32 %v734_v28, %v429_v24 }
  0xfe   : > { %476 = vst.msk [vmem:[%s744_s14 + $0x70] sm:$0xff] %vm461_vm0, %v459_v23  ;;  %v457_v33 = vadd.f32 %v734_v28, %v437_v25  ;;  %v432_v34 = vmul.f32 %v731_v26, %v412_v27  ;;  %v410_v36 = vmax.f32 %v362_v30, 0.0 }
  0xff   : > { %v440_v35 = vmul.f32 %v731_v26, %v420_v29  ;;  %v418_v37 = vmax.f32 %v394_v31, 0.0  ;;  %466 = vst.msk [vmem:[%s744_s14 + $0x20] sm:$0xff] %vm461_vm0, %v449_v32 }
 0x100   : > { %474 = vst.msk [vmem:[%s744_s14 + $0x60] sm:$0xff] %vm461_vm0, %v457_v33  ;;  %v452_v20 = vadd.f32 %v734_v28, %v432_v34  ;;  %v430_v39 = vmul.f32 %v731_v26, %v410_v36 }
 0x101   : > { %v460_v38 = vadd.f32 %v734_v28, %v440_v35  ;;  %v438_v40 = vmul.f32 %v731_v26, %v418_v37 }
 0x102   : > { %469 = vst.msk [vmem:[%s744_s14 + $0x38] sm:$0xff] %vm461_vm0, %v452_v20  ;;  %v450_v41 = vadd.f32 %v734_v28, %v430_v39 }
 0x103   : > { %477 = vst.msk [vmem:[%s744_s14 + $0x78] sm:$0xff] %vm461_vm0, %v460_v38  ;;  %v458_v42 = vadd.f32 %v734_v28, %v438_v40 }
 0x104   : > { %467 = vst.msk [vmem:[%s744_s14 + $0x28] sm:$0xff] %vm461_vm0, %v450_v41 }
 0x105   : > { %475 = vst.msk [vmem:[%s744_s14 + $0x68] sm:$0xff] %vm461_vm0, %v458_v42 }
 0x106 PF: > { %s13_s12 = sadd.s32 1, %s655_s12  }
 0x107   : > { %p10_p4 = scmp.ge.s32.totalorder %s13_s12, 6  }
 0x109   :  { %12 = sbr.rel (!%p10_p4) target bundleno = 1 (0x1), region = 62 }

// kernel: fcn_adf_forward.7
= control target key start
LH: loop header
LB: loop body
LE: loop exit
PB: predicated region body
PF: predicated region fallthrough
CT: control target
= control target key end

     0   :  { %vm608_vm0 = vcmask 130048   ;;  %s1374_s1 = inlined_call_operand.vmem [shape: bf16[256,16], index: 1, kind: input, shape index: {}]   ;;  %s1375_s0 = inlined_call_operand.vmem [shape: bf16[4,128,256], index: 0, kind: input, shape index: {}]   ;;  %s1376_s2 = inlined_call_operand.vmem [shape: f32[3,16], index: 2, kind: input, shape index: {}]   ;;  %s1377_s3 = inlined_call_operand.vmem [shape: f32[128,16], index: 3, kind: output, shape index: {}]  }
   0x1   :  { %v773_v0 = vld [vmem:[%s1374_s1 + $0x78] sm:$0xff]   ;;  %v775_v2 = vld [vmem:[%s1374_s1 + $0x70] sm:$0xff]   ;;  %v777_v4 = vld [vmem:[%s1374_s1 + $0x68] sm:$0xff]  }
   0x2   :  { %v774_v1 = vld [vmem:[%s1374_s1 + $0x38] sm:$0xff]   ;;  %693 = vmatprep.subr.bf16.mxu0 %v773_v0  ;;  %757 = vmatprep.subr.bf16.mxu1 %v773_v0  ;;  %v776_v3 = vld [vmem:[%s1374_s1 + $0x30] sm:$0xff]   ;;  %v778_v5 = vld [vmem:[%s1374_s1 + $0x28] sm:$0xff]  }
   0x3   :  { %694 = vmatpush3.bf16.msra.mxu0 %v774_v1  ;;  %765 = vmatpush3.bf16.msra.mxu1 %v774_v1  ;;  %v779_v6 = vld [vmem:[%s1374_s1 + $0x60] sm:$0xff]   ;;  %v781_v8 = vld [vmem:[%s1374_s1 + $0x58] sm:$0xff]   ;;  %v783_v10 = vld [vmem:[%s1374_s1 + $0x50] sm:$0xff]  }
   0x4   :  { %695 = vmatprep.subr.bf16.mxu0 %v775_v2  ;;  %758 = vmatprep.subr.bf16.mxu1 %v775_v2  ;;  %v780_v7 = vld [vmem:[%s1374_s1 + $0x20] sm:$0xff]   ;;  %v782_v9 = vld [vmem:[%s1374_s1 + $0x18] sm:$0xff]   ;;  %v850_v12 = vld [vmem:[%s1375_s0 + $0x8] sm:$0xff] }
   0x5   :  { %v845_v11 = vld [vmem:[%s1375_s0] sm:$0xff]  ;;  %v33_v16 = vunpack.c.l.bf16 %v850_v12  ;;  %v34_v17 = vunpack.c.h.bf16 %v850_v12  ;;  %v864_v18 = vld [vmem:[%s1375_s0 + $0x88] sm:$0xff]  ;;  %v784_v28 = vld [vmem:[%s1374_s1 + $0x10] sm:$0xff]  }
   0x6   :  { %v855_v13 = vld [vmem:[%s1375_s0 + $0x80] sm:$0xff]  ;;  %v31_v14 = vunpack.c.l.bf16 %v845_v11  ;;  %v32_v15 = vunpack.c.h.bf16 %v845_v11  ;;  %v874_v20 = vld [vmem:[%s1375_s0 + $0x108] sm:$0xff]  ;;  %v82_v23 = vunpack.c.l.bf16 %v864_v18  ;;  %v83_v24 = vunpack.c.h.bf16 %v864_v18  ;;  %v968_v11 = vld [vmem:[%s1375_s0 + $0x98] sm:$0xff] }
   0x7   :  { %696 = vmatpush3.bf16.msra.mxu0 %v776_v3  ;;  %766 = vmatpush3.bf16.msra.mxu1 %v776_v3  ;;  %v869_v19 = vld [vmem:[%s1375_s0 + $0x100] sm:$0xff]  ;;  %v80_v21 = vunpack.c.l.bf16 %v855_v13  ;;  %v81_v22 = vunpack.c.h.bf16 %v855_v13  ;;  %v888_v26 = vld [vmem:[%s1375_s0 + $0x188] sm:$0xff]  ;;  %v163_v31 = vunpack.c.l.bf16 %v874_v20  ;;  %v164_v32 = vunpack.c.h.bf16 %v874_v20  ;;  %v941_v3 = vld [vmem:[%s1375_s0 + $0x10] sm:$0xff] }
   0x8   :  { %697 = vmatprep.subr.bf16.mxu0 %v777_v4  ;;  %759 = vmatprep.subr.bf16.mxu1 %v777_v4  ;;  %v883_v25 = vld [vmem:[%s1375_s0 + $0x180] sm:$0xff]  ;;  %v161_v29 = vunpack.c.l.bf16 %v869_v19  ;;  %v162_v30 = vunpack.c.h.bf16 %v869_v19  ;;  %v24_v33 = vld [vmem:[%s1375_s0 + $0x48] sm:$0xff]  ;;  %v115_v36 = vmax.f32 %v34_v17, %v83_v24  ;;  %v244_v41 = vunpack.c.l.bf16 %v888_v26  ;;  %v958_v24 = vld [vmem:[%s1375_s0 + $0x90] sm:$0xff] }
   0x9   :  { %v893_v27 = vld [vmem:[%s1375_s0 + $0x40] sm:$0xff]  ;;  %v785_v34 = vld [vmem:[%s1374_s1 + $0x48] sm:$0xff]   ;;  %v113_v35 = vmax.f32 %v32_v15, %v81_v22  ;;  %v242_v37 = vunpack.c.l.bf16 %v883_v25  ;;  %v243_v38 = vunpack.c.h.bf16 %v883_v25  ;;  %v245_v42 = vunpack.c.h.bf16 %v888_v26  ;;  %v973_v13 = vld [vmem:[%s1375_s0 + $0x110] sm:$0xff] }
   0xa   :  { %v637_v39 = vld [vmem:[%s1375_s0 + $0xc0] sm:$0xff]  ;;  %v638_v40 = vld [vmem:[%s1375_s0 + $0xc8] sm:$0xff]  ;;  %v47_v43 = vunpack.c.l.bf16 %v893_v27  ;;  %v48_v44 = vunpack.c.h.bf16 %v893_v27  ;;  %v196_v47 = vmax.f32 %v115_v36, %v164_v32  ;;  %v49_v48 = vunpack.c.l.bf16 %v24_v33  ;;  %v989_v36 = vld [vmem:[%s1375_s0 + $0x190] sm:$0xff] }
   0xb   :  { %698 = vmatpush3.bf16.msra.mxu0 %v778_v5  ;;  %767 = vmatpush3.bf16.msra.mxu1 %v778_v5  ;;  %v653_v45 = vld [vmem:[%s1375_s0 + $0x140] sm:$0xff]  ;;  %v194_v46 = vmax.f32 %v113_v35, %v162_v30  ;;  %v50_v49 = vunpack.c.h.bf16 %v24_v33  ;;  %v654_v50 = vld [vmem:[%s1375_s0 + $0x148] sm:$0xff]  ;;  %v96_v52 = vunpack.c.l.bf16 %v637_v39  ;;  %v97_v53 = vunpack.c.h.bf16 %v637_v39  ;;  %v984_v35 = vld [vmem:[%s1375_s0 + $0x118] sm:$0xff] }
   0xc   :  { %699 = vmatprep.subr.bf16.mxu0 %v779_v6  ;;  %760 = vmatprep.subr.bf16.mxu1 %v779_v6  ;;  %v786_v51 = vld [vmem:[%s1374_s1 + $0x8] sm:$0xff]   ;;  %v98_v54 = vunpack.c.l.bf16 %v638_v40  ;;  %v99_v55 = vunpack.c.h.bf16 %v638_v40  ;;  %v669_v56 = vld [vmem:[%s1375_s0 + $0x1c0] sm:$0xff]  ;;  %v277_v60 = vmax.f32 %v196_v47, %v245_v42  ;;  %v177_v61 = vunpack.c.l.bf16 %v653_v45  ;;  %v994_v19 = vld [vmem:[%s1375_s0 + $0x198] sm:$0xff] }
   0xd   :  { %v670_v57 = vld [vmem:[%s1375_s0 + $0x1c8] sm:$0xff]  ;;  %v787_v58 = vld [vmem:[%s1374_s1 + $0x40] sm:$0xff]   ;;  %v275_v59 = vmax.f32 %v194_v46, %v243_v38  ;;  %v178_v62 = vunpack.c.h.bf16 %v653_v45  ;;  %v129_v63 = vmax.f32 %v48_v44, %v97_v53  ;;  %v179_v1 = vunpack.c.l.bf16 %v654_v50  ;;  %v1003_v39 = vld [vmem:[%s1375_s0 + $0x50] sm:$0xff] }
   0xe   :  { %v131_v0 = vmax.f32 %v50_v49, %v99_v55  ;;  %v180_v2 = vunpack.c.h.bf16 %v654_v50  ;;  %v258_v5 = vunpack.c.l.bf16 %v669_v56  ;;  %v259_v6 = vunpack.c.h.bf16 %v669_v56  ;;  %v1010_v25 = vld [vmem:[%s1375_s0 + $0x58] sm:$0xff]  ;;  %v1036_v50 = vld [vmem:[%s1375_s0 + $0x1d0] sm:$0xff] }
   0xf   :  { %700 = vmatpush3.bf16.msra.mxu0 %v780_v7  ;;  %768 = vmatpush3.bf16.msra.mxu1 %v780_v7  ;;  %v307_v4 = vpack.c.bf16 %v277_v60, %v275_v59  ;;  %v260_v7 = vunpack.c.l.bf16 %v670_v57  ;;  %v261_v17 = vunpack.c.h.bf16 %v670_v57  ;;  %v112_v22 = vmax.f32 %v31_v14, %v80_v21  ;;  %v1018_v45 = vld [vmem:[%s1375_s0 + $0xd8] sm:$0xff] }
  0x10   :  { %701 = vmatprep.subr.bf16.mxu0 %v781_v8  ;;  %761 = vmatprep.subr.bf16.mxu1 %v781_v8  ;;  %v946_v8 = vld [vmem:[%s1375_s0 + $0x18] sm:$0xff]  ;;  %v212_v15 = vmax.f32 %v131_v0, %v180_v2  ;;  %v114_v27 = vmax.f32 %v33_v16, %v82_v23  ;;  %v130_v30 = vmax.f32 %v49_v48, %v98_v54  ;;  %v36_v32 = vunpack.c.h.bf16 %v941_v3  ;;  %v1026_v48 = vld [vmem:[%s1375_s0 + $0x150] sm:$0xff] }
  0x11   :  { %487 = vmatprep.mubr.bf16.mxu0 %v307_v4  ;;  %v193_v12 = vmax.f32 %v112_v22, %v161_v29  ;;  %v38_v16 = vunpack.c.h.bf16 %v946_v8  ;;  %v166_v38 = vunpack.c.h.bf16 %v973_v13  ;;  %v247_v46 = vunpack.c.h.bf16 %v989_v36  ;;  %v1031_v49 = vld [vmem:[%s1375_s0 + $0x158] sm:$0xff] }
  0x12   :  { %v293_v18 = vmax.f32 %v212_v15, %v261_v17  ;;  %v195_v21 = vmax.f32 %v114_v27, %v163_v31  ;;  %v211_v33 = vmax.f32 %v130_v30, %v179_v1  ;;  %v87_v31 = vunpack.c.h.bf16 %v968_v11  ;;  %v1042_v55 = vld [vmem:[%s1375_s0 + $0x1d8] sm:$0xff] }
  0x13   :  { %702 = vmatpush3.bf16.msra.mxu0 %v782_v9  ;;  %769 = vmatpush3.bf16.msra.mxu1 %v782_v9  ;;  %v788_v9 = vld [vmem:[%s1374_s1] sm:$0xff]   ;;  %v274_v29 = vmax.f32 %v193_v12, %v242_v37  ;;  %v639_v37 = vld [vmem:[%s1375_s0 + $0xd0] sm:$0xff]  ;;  %v249_v47 = vunpack.c.h.bf16 %v994_v19  ;;  %v52_v54 = vunpack.c.h.bf16 %v1003_v39  ;;  %v54_v57 = vunpack.c.h.bf16 %v1010_v25 }
  0x14   :  { %703 = vmatprep.subr.bf16.mxu0 %v783_v10  ;;  %762 = vmatprep.subr.bf16.mxu1 %v783_v10  ;;  %v210_v10 = vmax.f32 %v129_v63, %v178_v62  ;;  %v276_v40 = vmax.f32 %v195_v21, %v244_v41  ;;  %v119_v26 = vmax.f32 %v38_v16, %v87_v31  ;;  %v168_v41 = vunpack.c.h.bf16 %v984_v35  ;;  %v1068_v21 = vld [vmem:[%s1375_s0 + $0x28] sm:$0xff] }
  0x15   :  { %v103_v59 = vunpack.c.h.bf16 %v1018_v45  ;;  %v184_v62 = vunpack.c.h.bf16 %v1031_v49  ;;  %v263_v63 = vunpack.c.h.bf16 %v1036_v50  ;;  %v265_v4 = vunpack.c.h.bf16 %v1042_v55 }
  0x16   :  { %v291_v14 = vmax.f32 %v210_v10, %v259_v6  ;;  %v200_v56 = vmax.f32 %v119_v26, %v168_v41  ;;  %v37_v6 = vunpack.c.l.bf16 %v946_v8  ;;  %v165_v22 = vunpack.c.l.bf16 %v973_v13  ;;  %v1063_v13 = vld [vmem:[%s1375_s0 + $0x20] sm:$0xff] }
  0x17   :  { %704 = vmatpush3.bf16.msra.mxu0 %v784_v28  ;;  %770 = vmatpush3.bf16.msra.mxu1 %v784_v28  ;;  %v128_v28 = vmax.f32 %v47_v43, %v96_v52  ;;  %v292_v43 = vmax.f32 %v211_v33, %v260_v7  ;;  %v135_v2 = vmax.f32 %v54_v57, %v103_v59  ;;  %v84_v7 = vunpack.c.l.bf16 %v958_v24 }
  0x18   :  { %705 = vmatprep.subr.bf16.mxu0 %v785_v34  ;;  %763 = vmatprep.subr.bf16.mxu1 %v785_v34  ;;  %v85_v34 = vunpack.c.h.bf16 %v958_v24  ;;  %v315_v20 = vpack.c.bf16 %v293_v18, %v291_v14  ;;  %v281_v0 = vmax.f32 %v200_v56, %v249_v47  ;;  %v167_v30 = vunpack.c.l.bf16 %v984_v35  ;;  %v1133_v56 = vld [vmem:[%s1375_s0 + $0x160] sm:$0xff] }
  0x19   :  { %v209_v23 = vmax.f32 %v128_v28, %v177_v61  ;;  %v182_v61 = vunpack.c.h.bf16 %v1026_v48  ;;  %v216_v17 = vmax.f32 %v135_v2, %v184_v62  ;;  %v248_v8 = vunpack.c.l.bf16 %v994_v19  ;;  %v1081_v19 = vld [vmem:[%s1375_s0 + $0xa8] sm:$0xff]  ;;  %v1144_v62 = vld [vmem:[%s1375_s0 + $0x1e0] sm:$0xff] }
  0x1a   :  { %v117_v44 = vmax.f32 %v36_v32, %v85_v34  ;;  %519 = vmatprep.mubr.bf16.mxu1 %v315_v20  ;;  %v246_v32 = vunpack.c.l.bf16 %v989_v36  ;;  %v51_v24 = vunpack.c.l.bf16 %v1003_v39  ;;  %v53_v12 = vunpack.c.l.bf16 %v1010_v25  ;;  %v1076_v36 = vld [vmem:[%s1375_s0 + $0xa0] sm:$0xff] }
  0x1b   :  { %706 = vmatpush3.bf16.msra.mxu0 %v786_v51  ;;  %771 = vmatpush3.bf16.msra.mxu1 %v786_v51  ;;  %v290_v42 = vmax.f32 %v209_v23, %v258_v5  ;;  %v306_v51 = vpack.c.bf16 %v276_v40, %v274_v29  ;;  %v35_v5 = vunpack.c.l.bf16 %v941_v3  ;;  %v297_v3 = vmax.f32 %v216_v17, %v265_v4  ;;  %v1087_v39 = vld [vmem:[%s1375_s0 + $0x120] sm:$0xff]  ;;  %v1092_v40 = vld [vmem:[%s1375_s0 + $0x128] sm:$0xff] }
  0x1c   :  { %707 = vmatprep.subr.bf16.mxu0 %v787_v58  ;;  %764 = vmatprep.subr.bf16.mxu1 %v787_v58  ;;  %v198_v53 = vmax.f32 %v117_v44, %v166_v38  ;;  %v101_v58 = vunpack.c.h.bf16 %v639_v37  ;;  %v100_v16 = vunpack.c.l.bf16 %v639_v37  ;;  %v102_v33 = vunpack.c.l.bf16 %v1018_v45  ;;  %v1105_v45 = vld [vmem:[%s1375_s0 + $0x1a8] sm:$0xff] }
  0x1d   :  { %v314_v52 = vpack.c.bf16 %v292_v43, %v290_v42  ;;  %v116_v27 = vmax.f32 %v35_v5, %v84_v7  ;;  %v181_v34 = vunpack.c.l.bf16 %v1026_v48  ;;  %v183_v35 = vunpack.c.l.bf16 %v1031_v49  ;;  %v1097_v42 = vld [vmem:[%s1375_s0 + $0x1a0] sm:$0xff]  ;;  %v1117_v49 = vld [vmem:[%s1375_s0 + $0x68] sm:$0xff] }
  0x1e   :  { %v279_v60 = vmax.f32 %v198_v53, %v247_v46  ;;  %v133_v1 = vmax.f32 %v52_v54, %v101_v58  ;;  %v132_v31 = vmax.f32 %v51_v24, %v100_v16  ;;  %v262_v38 = vunpack.c.l.bf16 %v1036_v50  ;;  %v1112_v48 = vld [vmem:[%s1375_s0 + $0x60] sm:$0xff]  ;;  %v1152_v4 = vld [vmem:[%s1375_s0 + $0x1e8] sm:$0xff] }
  0x1f   :  { %708 = vmatpush3.bf16.msra.mxu0 %v788_v9  ;;  %772 = vmatpush3.bf16.msra.mxu1 %v788_v9  ;;  %v86_v9 = vunpack.c.l.bf16 %v968_v11  ;;  %v197_v18 = vmax.f32 %v116_v27, %v165_v22  ;;  %v134_v43 = vmax.f32 %v53_v12, %v102_v33  ;;  %v264_v44 = vunpack.c.l.bf16 %v1042_v55  ;;  %v1122_v50 = vld [vmem:[%s1375_s0 + $0xe0] sm:$0xff]  ;;  %v642_v55 = vld [vmem:[%s1375_s0 + $0xe8] sm:$0xff] }
  0x20   :  { %v309_v10 = vpack.c.bf16 %v281_v0, %v279_v60  ;;  %v214_v15 = vmax.f32 %v133_v1, %v182_v61  ;;  %v40_v25 = vunpack.c.h.bf16 %v1063_v13  ;;  %v42_v37 = vunpack.c.h.bf16 %v1068_v21  ;;  %v1139_v61 = vld [vmem:[%s1375_s0 + $0x168] sm:$0xff] }
  0x21   :  { %v118_v28 = vmax.f32 %v37_v6, %v86_v9  ;;  %v278_v20 = vmax.f32 %v197_v18, %v246_v32  ;;  %v213_v41 = vmax.f32 %v132_v31, %v181_v34  ;;  %v89_v46 = vunpack.c.h.bf16 %v1076_v36 }
  0x22   :  { %488 = vmatmul.mubr.bf16.vlgmr.msra.gmra.mxu0 %v306_v51  ;;  %520 = vmatmul.mubr.bf16.vlgmr.msra.gmra.mxu1 %v314_v52  ;;  %v295_v14 = vmax.f32 %v214_v15, %v263_v63  ;;  %v91_v47 = vunpack.c.h.bf16 %v1081_v19  ;;  %v215_v51 = vmax.f32 %v134_v43, %v183_v35  ;;  %v170_v52 = vunpack.c.h.bf16 %v1087_v39 }
  0x23   :  { %495 = vmatprep.mubr.bf16.mxu0 %v309_v10  ;;  %v199_v11 = vmax.f32 %v118_v28, %v167_v30  ;;  %v172_v53 = vunpack.c.h.bf16 %v1092_v40  ;;  %v251_v54 = vunpack.c.h.bf16 %v1097_v42  ;;  %v294_v57 = vmax.f32 %v213_v41, %v262_v38 }
  0x24   :  { %v317_v23 = vpack.c.bf16 %v297_v3, %v295_v14  ;;  %v121_v58 = vmax.f32 %v40_v25, %v89_v46  ;;  %v123_v59 = vmax.f32 %v42_v37, %v91_v47  ;;  %v253_v60 = vunpack.c.h.bf16 %v1105_v45  ;;  %v1184_v37 = vld [vmem:[%s1375_s0 + $0xb0] sm:$0xff] }
  0x25   :  { %v280_v29 = vmax.f32 %v199_v11, %v248_v8  ;;  %v296_v63 = vmax.f32 %v215_v51, %v264_v44  ;;  %v56_v0 = vunpack.c.h.bf16 %v1112_v48  ;;  %v58_v1 = vunpack.c.h.bf16 %v1117_v49 }
  0x26   :  { %527 = vmatprep.mubr.bf16.mxu1 %v317_v23  ;;  %v105_v2 = vunpack.c.h.bf16 %v1122_v50  ;;  %v202_v5 = vmax.f32 %v121_v58, %v170_v52  ;;  %v204_v6 = vmax.f32 %v123_v59, %v172_v53  ;;  %v107_v7 = vunpack.c.h.bf16 %v642_v55 }
  0x27   :  { %v308_v26 = vpack.c.bf16 %v280_v29, %v278_v20  ;;  %v186_v9 = vunpack.c.h.bf16 %v1133_v56  ;;  %v316_v10 = vpack.c.bf16 %v296_v63, %v294_v57  ;;  %v188_v17 = vunpack.c.h.bf16 %v1139_v61 }
  0x28   :  { %v137_v15 = vmax.f32 %v56_v0, %v105_v2  ;;  %v267_v22 = vunpack.c.h.bf16 %v1144_v62  ;;  %v283_v27 = vmax.f32 %v202_v5, %v251_v54  ;;  %v285_v28 = vmax.f32 %v204_v6, %v253_v60  ;;  %v29_v60 = vld [vmem:[%s1375_s0 + $0x70] sm:$0xff] }
  0x29   :  { %v139_v30 = vmax.f32 %v58_v1, %v107_v7  ;;  %v269_v32 = vunpack.c.h.bf16 %v1152_v4  ;;  %v39_v3 = vunpack.c.l.bf16 %v1063_v13  ;;  %v41_v8 = vunpack.c.l.bf16 %v1068_v21 }
  0x2a   :  { %496 = vmatmul.mubr.bf16.gmra.mxu0 %v308_v26  ;;  %528 = vmatmul.mubr.bf16.gmra.mxu1 %v316_v10  ;;  %v218_v14 = vmax.f32 %v137_v15, %v186_v9  ;;  %v88_v24 = vunpack.c.l.bf16 %v1076_v36  ;;  %v311_v18 = vpack.c.bf16 %v285_v28, %v283_v27  ;;  %v90_v12 = vunpack.c.l.bf16 %v1081_v19  ;;  %v659_v10 = vld [vmem:[%s1375_s0 + $0x170] sm:$0xff]  ;;  %v660_v15 = vld [vmem:[%s1375_s0 + $0x178] sm:$0xff] }
  0x2b   :  { %v220_v11 = vmax.f32 %v139_v30, %v188_v17  ;;  %v169_v16 = vunpack.c.l.bf16 %v1087_v39  ;;  %v171_v34 = vunpack.c.l.bf16 %v1092_v40  ;;  %v250_v35 = vunpack.c.l.bf16 %v1097_v42  ;;  %v1172_v39 = vld [vmem:[%s1375_s0 + $0x30] sm:$0xff]  ;;  %v1177_v40 = vld [vmem:[%s1375_s0 + $0x38] sm:$0xff] }
  0x2c   :  { %v299_v23 = vmax.f32 %v218_v14, %v267_v22  ;;  %v120_v33 = vmax.f32 %v39_v3, %v88_v24  ;;  %503 = vmatprep.mubr.bf16.mxu0 %v311_v18  ;;  %v122_v29 = vmax.f32 %v41_v8, %v90_v12  ;;  %v252_v13 = vunpack.c.l.bf16 %v1105_v45  ;;  %v1189_v45 = vld [vmem:[%s1375_s0 + $0xb8] sm:$0xff]  ;;  %v675_v17 = vld [vmem:[%s1375_s0 + $0x1f0] sm:$0xff] }
  0x2d   :  { %v301_v20 = vmax.f32 %v220_v11, %v269_v32  ;;  %v55_v21 = vunpack.c.l.bf16 %v1112_v48  ;;  %v57_v31 = vunpack.c.l.bf16 %v1117_v49  ;;  %v104_v19 = vunpack.c.l.bf16 %v1122_v50  ;;  %v1195_v48 = vld [vmem:[%s1375_s0 + $0x130] sm:$0xff]  ;;  %v1200_v49 = vld [vmem:[%s1375_s0 + $0x138] sm:$0xff] }
  0x2e   :  { %v201_v36 = vmax.f32 %v120_v33, %v169_v16  ;;  %v106_v38 = vunpack.c.l.bf16 %v642_v55  ;;  %v203_v43 = vmax.f32 %v122_v29, %v171_v34  ;;  %v185_v44 = vunpack.c.l.bf16 %v1133_v56  ;;  %v1205_v50 = vld [vmem:[%s1375_s0 + $0x1b0] sm:$0xff]  ;;  %v1213_v55 = vld [vmem:[%s1375_s0 + $0x1b8] sm:$0xff] }
  0x2f   :  { %v319_v42 = vpack.c.bf16 %v301_v20, %v299_v23  ;;  %v187_v25 = vunpack.c.l.bf16 %v1139_v61  ;;  %v136_v41 = vmax.f32 %v55_v21, %v104_v19  ;;  %v266_v47 = vunpack.c.l.bf16 %v1144_v62  ;;  %v30_v61 = vld [vmem:[%s1375_s0 + $0x78] sm:$0xff]  ;;  %v643_v62 = vld [vmem:[%s1375_s0 + $0xf0] sm:$0xff] }
  0x30   :  { %v282_v26 = vmax.f32 %v201_v36, %v250_v35  ;;  %v138_v46 = vmax.f32 %v57_v31, %v106_v38  ;;  %v284_v51 = vmax.f32 %v203_v43, %v252_v13  ;;  %v268_v52 = vunpack.c.l.bf16 %v1152_v4  ;;  %v644_v4 = vld [vmem:[%s1375_s0 + $0xf8] sm:$0xff] }
  0x31   :  { %535 = vmatprep.mubr.bf16.mxu1 %v319_v42  ;;  %v44_v53 = vunpack.c.h.bf16 %v1172_v39  ;;  %v46_v54 = vunpack.c.h.bf16 %v1177_v40  ;;  %v217_v56 = vmax.f32 %v136_v41, %v185_v44  ;;  %v93_v58 = vunpack.c.h.bf16 %v1184_v37  ;;  %v676_v32 = vld [vmem:[%s1375_s0 + $0x1f8] sm:$0xff] }
  0x32   :  { %v219_v57 = vmax.f32 %v138_v46, %v187_v25  ;;  %v95_v59 = vunpack.c.h.bf16 %v1189_v45  ;;  %v310_v63 = vpack.c.bf16 %v284_v51, %v282_v26  ;;  %v174_v0 = vunpack.c.h.bf16 %v1195_v48 }
  0x33   :  { %v176_v1 = vunpack.c.h.bf16 %v1200_v49  ;;  %v255_v2 = vunpack.c.h.bf16 %v1205_v50  ;;  %v298_v5 = vmax.f32 %v217_v56, %v266_v47  ;;  %v125_v7 = vmax.f32 %v44_v53, %v93_v58 }
  0x34   :  { %v300_v6 = vmax.f32 %v219_v57, %v268_v52  ;;  %v127_v9 = vmax.f32 %v46_v54, %v95_v59  ;;  %504 = vmatmul.mubr.bf16.gmra.mxu0 %v310_v63  ;;  %v257_v22 = vunpack.c.h.bf16 %v1213_v55  ;;  %v60_v27 = vunpack.c.h.bf16 %v29_v60 }
  0x35   :  { %v62_v28 = vunpack.c.h.bf16 %v30_v61  ;;  %v109_v30 = vunpack.c.h.bf16 %v643_v62  ;;  %v206_v3 = vmax.f32 %v125_v7, %v174_v0  ;;  %v111_v24 = vunpack.c.h.bf16 %v644_v4 }
  0x36   :  { %v318_v14 = vpack.c.bf16 %v300_v6, %v298_v5  ;;  %v208_v8 = vmax.f32 %v127_v9, %v176_v1  ;;  %v190_v11 = vunpack.c.h.bf16 %v659_v10  ;;  %v192_v12 = vunpack.c.h.bf16 %v660_v15 }
  0x37   :  { %v141_v18 = vmax.f32 %v60_v27, %v109_v30  ;;  %v271_v16 = vunpack.c.h.bf16 %v675_v17  ;;  %v287_v23 = vmax.f32 %v206_v3, %v255_v2  ;;  %v143_v34 = vmax.f32 %v62_v28, %v111_v24 }
  0x38   :  { %536 = vmatmul.mubr.bf16.gmra.mxu1 %v318_v14  ;;  %v289_v33 = vmax.f32 %v208_v8, %v257_v22  ;;  %v273_v35 = vunpack.c.h.bf16 %v676_v32  ;;  %v43_v29 = vunpack.c.l.bf16 %v1172_v39  ;;  %v45_v13 = vunpack.c.l.bf16 %v1177_v40 }
  0x39   :  { %v222_v20 = vmax.f32 %v141_v18, %v190_v11  ;;  %v92_v21 = vunpack.c.l.bf16 %v1184_v37  ;;  %v224_v31 = vmax.f32 %v143_v34, %v192_v12  ;;  %v94_v19 = vunpack.c.l.bf16 %v1189_v45 }
  0x3a   :  { %v313_v36 = vpack.c.bf16 %v289_v33, %v287_v23  ;;  %v173_v38 = vunpack.c.l.bf16 %v1195_v48  ;;  %v175_v44 = vunpack.c.l.bf16 %v1200_v49  ;;  %v254_v25 = vunpack.c.l.bf16 %v1205_v50 }
  0x3b   :  { %v303_v42 = vmax.f32 %v222_v20, %v271_v16  ;;  %v124_v43 = vmax.f32 %v43_v29, %v92_v21  ;;  %v305_v26 = vmax.f32 %v224_v31, %v273_v35  ;;  %v126_v41 = vmax.f32 %v45_v13, %v94_v19 }
  0x3c   :  { %511 = vmatprep.mubr.bf16.mxu0 %v313_v36  ;;  %v256_v39 = vunpack.c.l.bf16 %v1213_v55  ;;  %v59_v40 = vunpack.c.l.bf16 %v29_v60  ;;  %v61_v37 = vunpack.c.l.bf16 %v30_v61  ;;  %v108_v47 = vunpack.c.l.bf16 %v643_v62 }
  0x3d   :  { %v205_v46 = vmax.f32 %v124_v43, %v173_v38  ;;  %v110_v51 = vunpack.c.l.bf16 %v644_v4  ;;  %v321_v52 = vpack.c.bf16 %v305_v26, %v303_v42  ;;  %v207_v45 = vmax.f32 %v126_v41, %v175_v44  ;;  %v354_v4 = vld [vmem:[%s1376_s2] sm:$0x7] }
  0x3e   :  { %v189_v53 = vunpack.c.l.bf16 %v659_v10  ;;  %v191_v48 = vunpack.c.l.bf16 %v660_v15  ;;  %v140_v56 = vmax.f32 %v59_v40, %v108_v47  ;;  %v270_v49 = vunpack.c.l.bf16 %v675_v17 }
  0x3f   :  { %v286_v54 = vmax.f32 %v205_v46, %v254_v25  ;;  %v142_v57 = vmax.f32 %v61_v37, %v110_v51  ;;  %543 = vmatprep.mubr.bf16.mxu1 %v321_v52  ;;  %v288_v50 = vmax.f32 %v207_v45, %v256_v39  ;;  %v272_v58 = vunpack.c.l.bf16 %v676_v32 }
  0x40   :  { %v221_v59 = vmax.f32 %v140_v56, %v189_v53  ;;  %v355_v62 = vlaneseq }
  0x41   :  { %v223_v63 = vmax.f32 %v142_v57, %v191_v48  ;;  %v312_v0 = vpack.c.bf16 %v288_v50, %v286_v54 }
  0x42   :  { %v302_v55 = vmax.f32 %v221_v59, %v270_v49  ;;  %v356_v1 = vshrl.u32 %v355_v62, 7 }
  0x43   :  { %v304_v60 = vmax.f32 %v223_v63, %v272_v58  ;;  %512 = vmatmul.mubr.bf16.gmra.mxu0 %v312_v0 }
  0x44   :  { %v357_v2 = vsub.s32 0, %v356_v1  ;;  %v570_v9 = vsub.s32 1, %v356_v1  ;;  %v590_v15 = vsub.s32 2, %v356_v1 }
  0x45   :  { %v320_v61 = vpack.c.bf16 %v304_v60, %v302_v55 }
  0x46   :  { %v1256_v7 = vrot.slane %v354_v4, %v357_v2  ;;  %v1259_v14 = vrot.slane %v354_v4, %v570_v9  ;;  %v1262_v8 = vrot.slane %v354_v4, %v590_v15 }
  0x47   :  { %544 = vmatmul.mubr.bf16.gmra.mxu1 %v320_v61 }
  0xe2   :  { %v709_v5 = vpop.f32.mrf.mxu0  ;;  %v733_v6 = vpop.f32.mrf.mxu1 }
  0xe4   :  { %v710_v10 = vpop.f32.mrf.mxu0  ;;  %v734_v17 = vpop.f32.mrf.mxu1 }
  0xe5   :  { %v711_v22 = vadd.f32 %v710_v10, %v709_v5  ;;  %v735_v27 = vadd.f32 %v734_v17, %v733_v6 }
  0xe6   :  { %v712_v28 = vpop.f32.mrf.mxu0  ;;  %v736_v30 = vpop.f32.mrf.mxu1 }
  0xe7   :  { %v490_v32 = vadd.f32 %v711_v22, %v1256_v7  ;;  %v522_v3 = vadd.f32 %v735_v27, %v1256_v7 }
  0xe8   :  { %v713_v24 = vpop.f32.mrf.mxu0  ;;  %v737_v18 = vpop.f32.mrf.mxu1 }
  0xe9   :  { %v552_v11 = vmax.f32 %v490_v32, 0.0  ;;  %v560_v12 = vmax.f32 %v522_v3, 0.0  ;;  %v714_v16 = vadd.f32 %v713_v24, %v712_v28  ;;  %v738_v23 = vadd.f32 %v737_v18, %v736_v30 }
  0xea   :  { %v715_v31 = vpop.f32.mrf.mxu0  ;;  %v739_v41 = vpop.f32.mrf.mxu1 }
  0xeb   :  { %v572_v33 = vmul.f32 %v1259_v14, %v552_v11  ;;  %v580_v34 = vmul.f32 %v1259_v14, %v560_v12  ;;  %v493_v35 = vadd.f32 %v714_v16, %v1256_v7  ;;  %v525_v20 = vadd.f32 %v738_v23, %v1256_v7 }
  0xec   :  { %v716_v42 = vpop.f32.mrf.mxu0  ;;  %v740_v37 = vpop.f32.mrf.mxu1 }
  0xed   :  { %v592_v29 = vadd.f32 %v1262_v8, %v572_v33  ;;  %v600_v13 = vadd.f32 %v1262_v8, %v580_v34  ;;  %v553_v21 = vmax.f32 %v493_v35, 0.0  ;;  %v561_v36 = vmax.f32 %v525_v20, 0.0 }
  0xee   :  { %v717_v25 = vadd.f32 %v716_v42, %v715_v31  ;;  %v718_v26 = vpop.f32.mrf.mxu0  ;;  %v741_v51 = vadd.f32 %v740_v37, %v739_v41  ;;  %v742_v45 = vpop.f32.mrf.mxu1 }
  0xef   :  { %609 = vst.msk [vmem:[%s1377_s3] sm:$0xff] %vm608_vm0, %v592_v29  ;;  %617 = vst.msk [vmem:[%s1377_s3 + $0x40] sm:$0xff] %vm608_vm0, %v600_v13  ;;  %v573_v19 = vmul.f32 %v1259_v14, %v553_v21  ;;  %v581_v38 = vmul.f32 %v1259_v14, %v561_v36 }
  0xf0   :  { %v498_v39 = vadd.f32 %v717_v25, %v1256_v7  ;;  %v719_v40 = vpop.f32.mrf.mxu0  ;;  %v530_v48 = vadd.f32 %v741_v51, %v1256_v7  ;;  %v743_v57 = vpop.f32.mrf.mxu1 }
  0xf1   :  { %v593_v43 = vadd.f32 %v1262_v8, %v573_v19  ;;  %v601_v44 = vadd.f32 %v1262_v8, %v581_v38  ;;  %v720_v47 = vadd.f32 %v719_v40, %v718_v26  ;;  %v744_v50 = vadd.f32 %v743_v57, %v742_v45 }
  0xf2   :  { %v554_v46 = vmax.f32 %v498_v39, 0.0  ;;  %v562_v49 = vmax.f32 %v530_v48, 0.0 }
  0xf3   :  { %610 = vst.msk [vmem:[%s1377_s3 + $0x8] sm:$0xff] %vm608_vm0, %v593_v43  ;;  %618 = vst.msk [vmem:[%s1377_s3 + $0x48] sm:$0xff] %vm608_vm0, %v601_v44  ;;  %v501_v53 = vadd.f32 %v720_v47, %v1256_v7  ;;  %v533_v63 = vadd.f32 %v744_v50, %v1256_v7 }
  0xf4   :  { %v574_v52 = vmul.f32 %v1259_v14, %v554_v46  ;;  %v582_v59 = vmul.f32 %v1259_v14, %v562_v49  ;;  %v721_v61 = vpop.f32.mrf.mxu0 }
  0xf5   :  { %v555_v56 = vmax.f32 %v501_v53, 0.0  ;;  %v563_v60 = vmax.f32 %v533_v63, 0.0 }
  0xf6   :  { %v594_v54 = vadd.f32 %v1262_v8, %v574_v52  ;;  %v602_v55 = vadd.f32 %v1262_v8, %v582_v59  ;;  %v722_v1 = vpop.f32.mrf.mxu0 }
  0xf7   :  { %v575_v58 = vmul.f32 %v1259_v14, %v555_v56  ;;  %v583_v62 = vmul.f32 %v1259_v14, %v563_v60  ;;  %v723_v4 = vadd.f32 %v722_v1, %v721_v61 }
  0xf8   :  { %611 = vst.msk [vmem:[%s1377_s3 + $0x10] sm:$0xff] %vm608_vm0, %v594_v54  ;;  %619 = vst.msk [vmem:[%s1377_s3 + $0x50] sm:$0xff] %vm608_vm0, %v602_v55  ;;  %v745_v2 = vpop.f32.mrf.mxu1  ;;  %v724_v6 = vpop.f32.mrf.mxu0 }
  0xf9   :  { %v595_v0 = vadd.f32 %v1262_v8, %v575_v58  ;;  %v603_v5 = vadd.f32 %v1262_v8, %v583_v62  ;;  %v506_v9 = vadd.f32 %v723_v4, %v1256_v7 }
  0xfa   :  { %v746_v10 = vpop.f32.mrf.mxu1  ;;  %v725_v17 = vpop.f32.mrf.mxu0 }
  0xfb   :  { %612 = vst.msk [vmem:[%s1377_s3 + $0x18] sm:$0xff] %vm608_vm0, %v595_v0  ;;  %620 = vst.msk [vmem:[%s1377_s3 + $0x58] sm:$0xff] %vm608_vm0, %v603_v5  ;;  %v747_v15 = vadd.f32 %v746_v10, %v745_v2  ;;  %v556_v22 = vmax.f32 %v506_v9, 0.0  ;;  %v726_v28 = vadd.f32 %v725_v17, %v724_v6 }
  0xfc   :  { %v748_v27 = vpop.f32.mrf.mxu1 }
  0xfd   :  { %v538_v30 = vadd.f32 %v747_v15, %v1256_v7  ;;  %v576_v32 = vmul.f32 %v1259_v14, %v556_v22  ;;  %v509_v3 = vadd.f32 %v726_v28, %v1256_v7 }
  0xfe   :  { %v749_v24 = vpop.f32.mrf.mxu1 }
  0xff   :  { %v564_v18 = vmax.f32 %v538_v30, 0.0  ;;  %v750_v11 = vadd.f32 %v749_v24, %v748_v27  ;;  %v596_v12 = vadd.f32 %v1262_v8, %v576_v32  ;;  %v557_v16 = vmax.f32 %v509_v3, 0.0 }
 0x101   :  { %v584_v23 = vmul.f32 %v1259_v14, %v564_v18  ;;  %v541_v33 = vadd.f32 %v750_v11, %v1256_v7  ;;  %613 = vst.msk [vmem:[%s1377_s3 + $0x20] sm:$0xff] %vm608_vm0, %v596_v12  ;;  %v577_v34 = vmul.f32 %v1259_v14, %v557_v16 }
 0x103   :  { %v604_v35 = vadd.f32 %v1262_v8, %v584_v23  ;;  %v565_v20 = vmax.f32 %v541_v33, 0.0  ;;  %v597_v29 = vadd.f32 %v1262_v8, %v577_v34  ;;  %v727_v13 = vpop.f32.mrf.mxu0 }
 0x105   :  { %621 = vst.msk [vmem:[%s1377_s3 + $0x60] sm:$0xff] %vm608_vm0, %v604_v35  ;;  %v585_v21 = vmul.f32 %v1259_v14, %v565_v20  ;;  %614 = vst.msk [vmem:[%s1377_s3 + $0x28] sm:$0xff] %vm608_vm0, %v597_v29  ;;  %v728_v36 = vpop.f32.mrf.mxu0 }
 0x106   :  { %v729_v38 = vadd.f32 %v728_v36, %v727_v13 }
 0x107   :  { %v605_v31 = vadd.f32 %v1262_v8, %v585_v21  ;;  %v751_v19 = vpop.f32.mrf.mxu1  ;;  %v730_v42 = vpop.f32.mrf.mxu0 }
 0x108   :  { %v514_v43 = vadd.f32 %v729_v38, %v1256_v7 }
 0x109   :  { %622 = vst.msk [vmem:[%s1377_s3 + $0x68] sm:$0xff] %vm608_vm0, %v605_v31  ;;  %v752_v44 = vpop.f32.mrf.mxu1  ;;  %v731_v26 = vpop.f32.mrf.mxu0 }
 0x10a   :  { %v753_v25 = vadd.f32 %v752_v44, %v751_v19  ;;  %v558_v41 = vmax.f32 %v514_v43, 0.0  ;;  %v732_v40 = vadd.f32 %v731_v26, %v730_v42 }
 0x10b   :  { %v754_v39 = vpop.f32.mrf.mxu1 }
 0x10c   :  { %v546_v46 = vadd.f32 %v753_v25, %v1256_v7  ;;  %v578_v37 = vmul.f32 %v1259_v14, %v558_v41  ;;  %v517_v47 = vadd.f32 %v732_v40, %v1256_v7 }
 0x10d   :  { %v755_v51 = vpop.f32.mrf.mxu1 }
 0x10e   :  { %v566_v52 = vmax.f32 %v546_v46, 0.0  ;;  %v756_v45 = vadd.f32 %v755_v51, %v754_v39  ;;  %v598_v53 = vadd.f32 %v1262_v8, %v578_v37  ;;  %v559_v48 = vmax.f32 %v517_v47, 0.0 }
 0x110   :  { %v586_v54 = vmul.f32 %v1259_v14, %v566_v52  ;;  %v549_v56 = vadd.f32 %v756_v45, %v1256_v7  ;;  %615 = vst.msk [vmem:[%s1377_s3 + $0x30] sm:$0xff] %vm608_vm0, %v598_v53  ;;  %v579_v57 = vmul.f32 %v1259_v14, %v559_v48 }
 0x112   :  { %v606_v49 = vadd.f32 %v1262_v8, %v586_v54  ;;  %v567_v50 = vmax.f32 %v549_v56, 0.0  ;;  %v599_v58 = vadd.f32 %v1262_v8, %v579_v57 }
 0x114   :  { %623 = vst.msk [vmem:[%s1377_s3 + $0x70] sm:$0xff] %vm608_vm0, %v606_v49  ;;  %v587_v59 = vmul.f32 %v1259_v14, %v567_v50  ;;  %616 = vst.msk [vmem:[%s1377_s3 + $0x38] sm:$0xff] %vm608_vm0, %v599_v58 }
 0x116   :  { %v607_v7 = vadd.f32 %v1262_v8, %v587_v59 }
 0x118   :  { %624 = vst.msk [vmem:[%s1377_s3 + $0x78] sm:$0xff] %vm608_vm0, %v607_v7 }

// kernel: fcn_adf_forward.8
= control target key start
LH: loop header
LB: loop body
LE: loop exit
PB: predicated region body
PF: predicated region fallthrough
CT: control target
= control target key end

     0   :  { %vm549_vm0 = vcmask 130048   ;;  %s985_s1 = inlined_call_operand.vmem [shape: bf16[512,16], index: 1, kind: input, shape index: {}]   ;;  %s986_s0 = inlined_call_operand.vmem [shape: bf16[4,32,512], index: 0, kind: input, shape index: {}]   ;;  %s987_s2 = inlined_call_operand.vmem [shape: f32[3,16], index: 2, kind: input, shape index: {}]   ;;  %s988_s3 = inlined_call_operand.vmem [shape: f32[32,16], index: 3, kind: output, shape index: {}]  }
   0x1   :  { %v670_v0 = vld [vmem:[%s985_s1 + $0x78] sm:$0xff]   ;;  %v674_v4 = vld [vmem:[%s985_s1 + $0x70] sm:$0xff]   ;;  %v678_v8 = vld [vmem:[%s985_s1 + $0x68] sm:$0xff]  }
   0x2   :  { %v671_v1 = vld [vmem:[%s985_s1 + $0xf8] sm:$0xff]   ;;  %614 = vmatprep.subr.bf16.mxu0 %v670_v0  ;;  %v675_v5 = vld [vmem:[%s985_s1 + $0xf0] sm:$0xff]   ;;  %v679_v9 = vld [vmem:[%s985_s1 + $0xe8] sm:$0xff]  }
   0x3   :  { %v672_v2 = vld [vmem:[%s985_s1 + $0x38] sm:$0xff]   ;;  %642 = vmatprep.subr.bf16.mxu1 %v671_v1  ;;  %v676_v6 = vld [vmem:[%s985_s1 + $0x30] sm:$0xff]   ;;  %v680_v10 = vld [vmem:[%s985_s1 + $0x28] sm:$0xff]  }
   0x4   :  { %v673_v3 = vld [vmem:[%s985_s1 + $0xb8] sm:$0xff]   ;;  %615 = vmatpush3.bf16.msra.mxu0 %v672_v2  ;;  %v677_v7 = vld [vmem:[%s985_s1 + $0xb0] sm:$0xff]   ;;  %v681_v11 = vld [vmem:[%s985_s1 + $0xa8] sm:$0xff]  }
   0x5   :  { %643 = vmatpush3.bf16.msra.mxu1 %v673_v3  ;;  %616 = vmatprep.subr.bf16.mxu0 %v674_v4  ;;  %v682_v12 = vld [vmem:[%s985_s1 + $0x60] sm:$0xff]   ;;  %v686_v16 = vld [vmem:[%s985_s1 + $0x58] sm:$0xff]   ;;  %v690_v20 = vld [vmem:[%s985_s1 + $0x50] sm:$0xff]  }
   0x6   :  { %644 = vmatprep.subr.bf16.mxu1 %v675_v5  ;;  %v683_v13 = vld [vmem:[%s985_s1 + $0xe0] sm:$0xff]   ;;  %v687_v17 = vld [vmem:[%s985_s1 + $0xd8] sm:$0xff]   ;;  %v691_v21 = vld [vmem:[%s985_s1 + $0xd0] sm:$0xff]  }
   0x7   :  { %v684_v14 = vld [vmem:[%s985_s1 + $0x20] sm:$0xff]   ;;  %v688_v18 = vld [vmem:[%s985_s1 + $0x18] sm:$0xff]   ;;  %v692_v22 = vld [vmem:[%s985_s1 + $0x10] sm:$0xff]  }
   0x8   :  { %617 = vmatpush3.bf16.msra.mxu0 %v676_v6  ;;  %v685_v15 = vld [vmem:[%s985_s1 + $0xa0] sm:$0xff]   ;;  %v689_v19 = vld [vmem:[%s985_s1 + $0x98] sm:$0xff]   ;;  %v693_v23 = vld [vmem:[%s985_s1 + $0x90] sm:$0xff]  }
   0x9   :  { %645 = vmatpush3.bf16.msra.mxu1 %v677_v7  ;;  %618 = vmatprep.subr.bf16.mxu0 %v678_v8  ;;  %v694_v24 = vld [vmem:[%s985_s1 + $0x48] sm:$0xff]   ;;  %v698_v28 = vld [vmem:[%s985_s1 + $0x40] sm:$0xff]   ;;  %v826_v33 = vld [vmem:[%s986_s0 + $0x10] sm:$0xff] }
   0xa   :  { %646 = vmatprep.subr.bf16.mxu1 %v679_v9  ;;  %v695_v25 = vld [vmem:[%s985_s1 + $0xc8] sm:$0xff]   ;;  %v699_v29 = vld [vmem:[%s985_s1 + $0xc0] sm:$0xff]   ;;  %v27_v37 = vunpack.c.l.bf16 %v826_v33  ;;  %v28_v38 = vunpack.c.h.bf16 %v826_v33  ;;  %v560_v39 = vld [vmem:[%s986_s0 + $0x50] sm:$0xff] }
   0xb   :  { %v696_v26 = vld [vmem:[%s985_s1 + $0x8] sm:$0xff]   ;;  %v700_v30 = vld [vmem:[%s985_s1] sm:$0xff]   ;;  %v846_v41 = vld [vmem:[%s986_s0 + $0x90] sm:$0xff]  ;;  %v52_v44 = vunpack.c.l.bf16 %v560_v39  ;;  %v53_v45 = vunpack.c.h.bf16 %v560_v39 }
   0xc   :  { %619 = vmatpush3.bf16.msra.mxu0 %v680_v10  ;;  %v697_v27 = vld [vmem:[%s985_s1 + $0x88] sm:$0xff]   ;;  %v701_v31 = vld [vmem:[%s985_s1 + $0x80] sm:$0xff]   ;;  %v856_v47 = vld [vmem:[%s986_s0 + $0xd0] sm:$0xff]  ;;  %v93_v51 = vunpack.c.l.bf16 %v846_v41  ;;  %v94_v52 = vunpack.c.h.bf16 %v846_v41 }
   0xd   :  { %647 = vmatpush3.bf16.msra.mxu1 %v681_v11  ;;  %620 = vmatprep.subr.bf16.mxu0 %v682_v12  ;;  %v821_v32 = vld [vmem:[%s986_s0] sm:$0xff]  ;;  %v16_v48 = vld [vmem:[%s986_s0 + $0x8] sm:$0xff]  ;;  %v18_v53 = vld [vmem:[%s986_s0 + $0x18] sm:$0xff]  ;;  %v69_v55 = vmax.f32 %v28_v38, %v53_v45  ;;  %v134_v60 = vunpack.c.l.bf16 %v856_v47  ;;  %v135_v61 = vunpack.c.h.bf16 %v856_v47 }
   0xe   :  { %648 = vmatprep.subr.bf16.mxu1 %v683_v13  ;;  %v558_v34 = vld [vmem:[%s986_s0 + $0x40] sm:$0xff]  ;;  %v23_v35 = vunpack.c.l.bf16 %v821_v32  ;;  %v24_v36 = vunpack.c.h.bf16 %v821_v32  ;;  %v559_v58 = vld [vmem:[%s986_s0 + $0x48] sm:$0xff]  ;;  %v561_v59 = vld [vmem:[%s986_s0 + $0x58] sm:$0xff]  ;;  %v25_v62 = vunpack.c.l.bf16 %v16_v48  ;;  %v26_v63 = vunpack.c.h.bf16 %v16_v48 }
   0xf   :  { %v841_v40 = vld [vmem:[%s986_s0 + $0x80] sm:$0xff]  ;;  %v48_v42 = vunpack.c.l.bf16 %v558_v34  ;;  %v49_v43 = vunpack.c.h.bf16 %v558_v34  ;;  %v567_v0 = vld [vmem:[%s986_s0 + $0x88] sm:$0xff]  ;;  %v110_v2 = vmax.f32 %v69_v55, %v94_v52  ;;  %v29_v3 = vunpack.c.l.bf16 %v18_v53  ;;  %v569_v5 = vld [vmem:[%s986_s0 + $0x98] sm:$0xff] }
  0x10   :  { %621 = vmatpush3.bf16.msra.mxu0 %v684_v14  ;;  %v851_v46 = vld [vmem:[%s986_s0 + $0xc0] sm:$0xff]  ;;  %v89_v49 = vunpack.c.l.bf16 %v841_v40  ;;  %v90_v50 = vunpack.c.h.bf16 %v841_v40  ;;  %v30_v4 = vunpack.c.h.bf16 %v18_v53  ;;  %v50_v6 = vunpack.c.l.bf16 %v559_v58  ;;  %v575_v10 = vld [vmem:[%s986_s0 + $0xc8] sm:$0xff]  ;;  %v577_v11 = vld [vmem:[%s986_s0 + $0xd8] sm:$0xff] }
  0x11   :  { %649 = vmatpush3.bf16.msra.mxu1 %v685_v15  ;;  %622 = vmatprep.subr.bf16.mxu0 %v686_v16  ;;  %v65_v54 = vmax.f32 %v24_v36, %v49_v43  ;;  %v130_v56 = vunpack.c.l.bf16 %v851_v46  ;;  %v131_v57 = vunpack.c.h.bf16 %v851_v46  ;;  %v51_v7 = vunpack.c.h.bf16 %v559_v58  ;;  %v564_v36 = vld [vmem:[%s986_s0 + $0x70] sm:$0xff]  ;;  %v912_v38 = vld [vmem:[%s986_s0 + $0xa0] sm:$0xff]  ;;  %v933_v52 = vld [vmem:[%s986_s0 + $0x28] sm:$0xff] }
  0x12   :  { %650 = vmatprep.subr.bf16.mxu1 %v687_v17  ;;  %v54_v8 = vunpack.c.l.bf16 %v561_v59  ;;  %v55_v9 = vunpack.c.h.bf16 %v561_v59  ;;  %v151_v13 = vmax.f32 %v110_v2, %v135_v61  ;;  %v91_v14 = vunpack.c.l.bf16 %v567_v0  ;;  %v572_v45 = vld [vmem:[%s986_s0 + $0xb0] sm:$0xff]  ;;  %v922_v46 = vld [vmem:[%s986_s0 + $0xe0] sm:$0xff]  ;;  %v22_v58 = vld [vmem:[%s986_s0 + $0x38] sm:$0xff] }
  0x13   :  { %v106_v1 = vmax.f32 %v65_v54, %v90_v50  ;;  %v92_v15 = vunpack.c.h.bf16 %v567_v0  ;;  %v67_v16 = vmax.f32 %v26_v63, %v51_v7  ;;  %v66_v32 = vmax.f32 %v25_v62, %v50_v6  ;;  %v927_v47 = vld [vmem:[%s986_s0 + $0xf0] sm:$0xff]  ;;  %v565_v59 = vld [vmem:[%s986_s0 + $0x78] sm:$0xff]  ;;  %v571_v0 = vld [vmem:[%s986_s0 + $0xa8] sm:$0xff] }
  0x14   :  { %623 = vmatpush3.bf16.msra.mxu0 %v688_v18  ;;  %v71_v17 = vmax.f32 %v30_v4, %v55_v9  ;;  %v95_v18 = vunpack.c.l.bf16 %v569_v5  ;;  %v70_v33 = vmax.f32 %v29_v3, %v54_v8  ;;  %v61_v50 = vunpack.c.h.bf16 %v564_v36  ;;  %v579_v2 = vld [vmem:[%s986_s0 + $0xe8] sm:$0xff]  ;;  %v581_v7 = vld [vmem:[%s986_s0 + $0xf8] sm:$0xff] }
  0x15   :  { %651 = vmatpush3.bf16.msra.mxu1 %v689_v19  ;;  %624 = vmatprep.subr.bf16.mxu0 %v690_v20  ;;  %v147_v12 = vmax.f32 %v106_v1, %v131_v57  ;;  %v96_v19 = vunpack.c.h.bf16 %v569_v5  ;;  %v893_v20 = vld [vmem:[%s986_s0 + $0x20] sm:$0xff]  ;;  %v102_v62 = vunpack.c.h.bf16 %v572_v45  ;;  %v143_v63 = vunpack.c.h.bf16 %v927_v47  ;;  %v573_v1 = vld [vmem:[%s986_s0 + $0xb8] sm:$0xff] }
  0x16   :  { %652 = vmatprep.subr.bf16.mxu1 %v691_v21  ;;  %v32_v34 = vunpack.c.h.bf16 %v893_v20  ;;  %v111_v43 = vmax.f32 %v70_v33, %v95_v18  ;;  %v34_v6 = vunpack.c.h.bf16 %v933_v52  ;;  %v38_v9 = vunpack.c.h.bf16 %v22_v58 }
  0x17   :  { %v163_v21 = vpack.c.bf16 %v151_v13, %v147_v12  ;;  %v100_v13 = vunpack.c.h.bf16 %v571_v0  ;;  %v101_v33 = vunpack.c.l.bf16 %v572_v45 }
  0x18   :  { %625 = vmatpush3.bf16.msra.mxu0 %v692_v22  ;;  %v132_v22 = vunpack.c.l.bf16 %v575_v10 }
  0x19   :  { %653 = vmatpush3.bf16.msra.mxu1 %v693_v23  ;;  %626 = vmatprep.subr.bf16.mxu0 %v694_v24  ;;  %v133_v23 = vunpack.c.h.bf16 %v575_v10  ;;  %v136_v24 = vunpack.c.l.bf16 %v577_v11 }
  0x1a   :  { %654 = vmatprep.subr.bf16.mxu1 %v695_v25  ;;  %v898_v25 = vld [vmem:[%s986_s0 + $0x30] sm:$0xff]  ;;  %463 = vmatprep.mubr.bf16.mxu0 %v163_v21  ;;  %v31_v21 = vunpack.c.l.bf16 %v893_v20  ;;  %v142_v20 = vunpack.c.l.bf16 %v927_v47 }
  0x1b   :  { %v36_v41 = vunpack.c.h.bf16 %v898_v25  ;;  %v152_v55 = vmax.f32 %v111_v43, %v136_v24  ;;  %v60_v24 = vunpack.c.l.bf16 %v564_v36  ;;  %v37_v36 = vunpack.c.l.bf16 %v22_v58 }
  0x1c   :  { %627 = vmatpush3.bf16.msra.mxu0 %v696_v26  ;;  %v108_v26 = vmax.f32 %v67_v16, %v92_v15  ;;  %v141_v15 = vunpack.c.h.bf16 %v579_v2  ;;  %v99_v43 = vunpack.c.l.bf16 %v571_v0 }
  0x1d   :  { %655 = vmatpush3.bf16.msra.mxu1 %v697_v27  ;;  %628 = vmatprep.subr.bf16.mxu0 %v698_v28  ;;  %v112_v27 = vmax.f32 %v71_v17, %v96_v19  ;;  %v137_v28 = vunpack.c.h.bf16 %v577_v11  ;;  %v77_v61 = vmax.f32 %v36_v41, %v61_v50  ;;  %v63_v11 = vunpack.c.h.bf16 %v565_v59 }
  0x1e   :  { %656 = vmatprep.subr.bf16.mxu1 %v699_v29  ;;  %v64_v29 = vmax.f32 %v23_v35, %v48_v42  ;;  %v149_v35 = vmax.f32 %v108_v26, %v133_v23  ;;  %v145_v19 = vunpack.c.h.bf16 %v581_v7  ;;  %v144_v50 = vunpack.c.l.bf16 %v581_v7 }
  0x1f   :  { %v153_v39 = vmax.f32 %v112_v27, %v137_v28  ;;  %v118_v8 = vmax.f32 %v77_v61, %v102_v62  ;;  %v79_v18 = vmax.f32 %v38_v9, %v63_v11 }
  0x20   :  { %629 = vmatpush3.bf16.msra.mxu0 %v700_v30  ;;  %v903_v30 = vld [vmem:[%s986_s0 + $0x60] sm:$0xff]  ;;  %v105_v40 = vmax.f32 %v64_v29, %v89_v49  ;;  %v97_v29 = vunpack.c.l.bf16 %v912_v38 }
  0x21   :  { %657 = vmatpush3.bf16.msra.mxu1 %v701_v31  ;;  %v68_v31 = vmax.f32 %v27_v37, %v52_v44  ;;  %v107_v37 = vmax.f32 %v66_v32, %v91_v14  ;;  %v57_v44 = vunpack.c.h.bf16 %v903_v30  ;;  %v165_v48 = vpack.c.bf16 %v153_v39, %v149_v35 }
  0x22   :  { %v146_v49 = vmax.f32 %v105_v40, %v130_v56  ;;  %v563_v56 = vld [vmem:[%s986_s0 + $0x68] sm:$0xff]  ;;  %v104_v14 = vunpack.c.h.bf16 %v573_v1  ;;  %v159_v16 = vmax.f32 %v118_v8, %v143_v63  ;;  %v56_v23 = vunpack.c.l.bf16 %v903_v30 }
  0x23   :  { %v109_v42 = vmax.f32 %v68_v31, %v93_v51  ;;  %v98_v51 = vunpack.c.h.bf16 %v912_v38  ;;  %v148_v54 = vmax.f32 %v107_v37, %v132_v22  ;;  %v73_v57 = vmax.f32 %v32_v34, %v57_v44  ;;  %512 = vmatprep.mubr.bf16.mxu1 %v165_v48 }
  0x24   :  { %v59_v10 = vunpack.c.h.bf16 %v563_v56  ;;  %v35_v22 = vunpack.c.l.bf16 %v898_v25  ;;  %v120_v28 = vmax.f32 %v79_v18, %v104_v14  ;;  %v72_v31 = vmax.f32 %v31_v21, %v56_v23 }
  0x25   :  { %v150_v53 = vmax.f32 %v109_v42, %v134_v60  ;;  %v139_v60 = vunpack.c.h.bf16 %v922_v46  ;;  %v164_v4 = vpack.c.bf16 %v152_v55, %v148_v54  ;;  %v114_v5 = vmax.f32 %v73_v57, %v98_v51 }
  0x26   :  { %v75_v17 = vmax.f32 %v34_v6, %v59_v10  ;;  %v76_v32 = vmax.f32 %v35_v22, %v60_v24  ;;  %v138_v34 = vunpack.c.l.bf16 %v922_v46  ;;  %v161_v39 = vmax.f32 %v120_v28, %v145_v19 }
  0x27   :  { %v162_v3 = vpack.c.bf16 %v150_v53, %v146_v49  ;;  %513 = vmatmul.mubr.bf16.vlgmr.msra.gmra.mxu1 %v164_v4  ;;  %v155_v12 = vmax.f32 %v114_v5, %v139_v60  ;;  %v33_v25 = vunpack.c.l.bf16 %v933_v52  ;;  %v113_v40 = vmax.f32 %v72_v31, %v97_v29 }
  0x28   :  { %v116_v27 = vmax.f32 %v75_v17, %v100_v13  ;;  %v117_v30 = vmax.f32 %v76_v32, %v101_v33  ;;  %v58_v41 = vunpack.c.l.bf16 %v563_v56  ;;  %v62_v37 = vunpack.c.l.bf16 %v565_v59  ;;  %v234_v59 = vld [vmem:[%s987_s2] sm:$0x7] }
  0x29   :  { %464 = vmatmul.mubr.bf16.vlgmr.msra.gmra.mxu0 %v162_v3  ;;  %v167_v26 = vpack.c.bf16 %v159_v16, %v155_v12  ;;  %v103_v38 = vunpack.c.l.bf16 %v573_v1  ;;  %v154_v44 = vmax.f32 %v113_v40, %v138_v34  ;;  %v140_v49 = vunpack.c.l.bf16 %v579_v2 }
  0x2a   :  { %v157_v35 = vmax.f32 %v116_v27, %v141_v15  ;;  %v158_v48 = vmax.f32 %v117_v30, %v142_v20  ;;  %v74_v45 = vmax.f32 %v33_v25, %v58_v41  ;;  %v78_v46 = vmax.f32 %v37_v36, %v62_v37 }
  0x2b   :  { %471 = vmatprep.mubr.bf16.mxu0 %v167_v26  ;;  %v235_v57 = vlaneseq }
  0x2c   :  { %v169_v42 = vpack.c.bf16 %v161_v39, %v157_v35  ;;  %v166_v51 = vpack.c.bf16 %v158_v48, %v154_v44  ;;  %v115_v53 = vmax.f32 %v74_v45, %v99_v43  ;;  %v119_v47 = vmax.f32 %v78_v46, %v103_v38 }
  0x2d   :  { %v236_v58 = vshrl.u32 %v235_v57, 7 }
  0x2e   :  { %520 = vmatprep.mubr.bf16.mxu1 %v169_v42  ;;  %v156_v52 = vmax.f32 %v115_v53, %v140_v49  ;;  %v160_v54 = vmax.f32 %v119_v47, %v144_v50 }
  0x2f   :  { %v237_v56 = vsub.s32 0, %v236_v58  ;;  %v535_v2 = vsub.s32 1, %v236_v58  ;;  %v543_v7 = vsub.s32 2, %v236_v58 }
  0x30   :  { %v168_v55 = vpack.c.bf16 %v160_v54, %v156_v52 }
  0x31   :  { %472 = vmatmul.mubr.bf16.gmra.mxu0 %v166_v51  ;;  %v238_v60 = vrot.slane %v234_v59, %v237_v56  ;;  %v536_v11 = vrot.slane %v234_v59, %v535_v2  ;;  %v544_v14 = vrot.slane %v234_v59, %v543_v7 }
  0x32   :  { %521 = vmatmul.mubr.bf16.gmra.mxu1 %v168_v55 }
  0xe7   :  { %v658_v62 = vpop.f32.mrf.mxu1 }
  0xe9   :  { %v630_v61 = vpop.f32.mrf.mxu0  ;;  %v659_v0 = vpop.f32.mrf.mxu1 }
  0xea   :  { %v660_v6 = vadd.f32 %v659_v0, %v658_v62 }
  0xeb   :  { %v631_v63 = vpop.f32.mrf.mxu0  ;;  %v661_v4 = vpop.f32.mrf.mxu1 }
  0xec   :  { %v632_v1 = vadd.f32 %v631_v63, %v630_v61 }
  0xed   :  { %v633_v3 = vpop.f32.mrf.mxu0  ;;  %v662_v9 = vpop.f32.mrf.mxu1 }
  0xee   :  { %v466_v5 = vadd.f32 %v632_v1, %v238_v60  ;;  %v663_v16 = vadd.f32 %v662_v9, %v661_v4 }
  0xef   :  { %v634_v8 = vpop.f32.mrf.mxu0 }
  0xf0   :  { %v515_v10 = vadd.f32 %v660_v6, %v466_v5  ;;  %v635_v12 = vadd.f32 %v634_v8, %v633_v3 }
  0xf1   :  { %v636_v19 = vpop.f32.mrf.mxu0 }
  0xf2   :  { %v529_v13 = vmax.f32 %v515_v10, 0.0  ;;  %v469_v15 = vadd.f32 %v635_v12, %v238_v60  ;;  %v664_v29 = vpop.f32.mrf.mxu1 }
  0xf3   :  { %v637_v23 = vpop.f32.mrf.mxu0 }
  0xf4   :  { %v537_v17 = vmul.f32 %v536_v11, %v529_v13  ;;  %v518_v18 = vadd.f32 %v663_v16, %v469_v15  ;;  %v638_v26 = vadd.f32 %v637_v23, %v636_v19  ;;  %v665_v33 = vpop.f32.mrf.mxu1 }
  0xf5   :  { %v639_v27 = vpop.f32.mrf.mxu0  ;;  %v666_v35 = vadd.f32 %v665_v33, %v664_v29 }
  0xf6   :  { %v545_v21 = vadd.f32 %v544_v14, %v537_v17  ;;  %v530_v22 = vmax.f32 %v518_v18, 0.0  ;;  %v474_v31 = vadd.f32 %v638_v26, %v238_v60  ;;  %v667_v39 = vpop.f32.mrf.mxu1 }
  0xf7   :  { %v640_v32 = vpop.f32.mrf.mxu0 }
  0xf8   :  { %550 = vst.msk [vmem:[%s988_s3] sm:$0xff] %vm549_vm0, %v545_v21  ;;  %v538_v24 = vmul.f32 %v536_v11, %v530_v22  ;;  %v641_v34 = vadd.f32 %v640_v32, %v639_v27  ;;  %v523_v20 = vadd.f32 %v666_v35, %v474_v31  ;;  %v668_v40 = vpop.f32.mrf.mxu1 }
  0xf9   :  { %v669_v36 = vadd.f32 %v668_v40, %v667_v39 }
  0xfa   :  { %v546_v28 = vadd.f32 %v544_v14, %v538_v24  ;;  %v477_v25 = vadd.f32 %v641_v34, %v238_v60  ;;  %v531_v30 = vmax.f32 %v523_v20, 0.0 }
  0xfc   :  { %551 = vst.msk [vmem:[%s988_s3 + $0x8] sm:$0xff] %vm549_vm0, %v546_v28  ;;  %v539_v41 = vmul.f32 %v536_v11, %v531_v30  ;;  %v526_v42 = vadd.f32 %v669_v36, %v477_v25 }
  0xfe   :  { %v547_v37 = vadd.f32 %v544_v14, %v539_v41  ;;  %v532_v43 = vmax.f32 %v526_v42, 0.0 }
 0x100   :  { %552 = vst.msk [vmem:[%s988_s3 + $0x10] sm:$0xff] %vm549_vm0, %v547_v37  ;;  %v540_v38 = vmul.f32 %v536_v11, %v532_v43 }
 0x102   :  { %v548_v44 = vadd.f32 %v544_v14, %v540_v38 }
 0x104   :  { %553 = vst.msk [vmem:[%s988_s3 + $0x18] sm:$0xff] %vm549_vm0, %v548_v44 }

// kernel: fcn_adf_forward.9
= control target key start
LH: loop header
LB: loop body
LE: loop exit
PB: predicated region body
PF: predicated region fallthrough
CT: control target
= control target key end

     0   :  { %vm410_vm0 = vcmask 130048   ;;  %s676_s1 = inlined_call_operand.vmem [shape: bf16[512,16], index: 1, kind: input, shape index: {}]   ;;  %s677_s0 = inlined_call_operand.vmem [shape: bf16[4,8,512], index: 0, kind: input, shape index: {}]   ;;  %s678_s2 = inlined_call_operand.vmem [shape: f32[3,16], index: 2, kind: input, shape index: {}]   ;;  %s679_s3 = inlined_call_operand.vmem [shape: f32[8,16], index: 3, kind: output, shape index: {}]  }
   0x1   :  { %v498_v0 = vld [vmem:[%s676_s1 + $0x78] sm:$0xff]   ;;  %v502_v4 = vld [vmem:[%s676_s1 + $0x70] sm:$0xff]   ;;  %v506_v8 = vld [vmem:[%s676_s1 + $0x68] sm:$0xff]  }
   0x2   :  { %v499_v1 = vld [vmem:[%s676_s1 + $0xf8] sm:$0xff]   ;;  %454 = vmatprep.subr.bf16.mxu0 %v498_v0  ;;  %v503_v5 = vld [vmem:[%s676_s1 + $0xf0] sm:$0xff]   ;;  %v507_v9 = vld [vmem:[%s676_s1 + $0xe8] sm:$0xff]  }
   0x3   :  { %v500_v2 = vld [vmem:[%s676_s1 + $0x38] sm:$0xff]   ;;  %476 = vmatprep.subr.bf16.mxu1 %v499_v1  ;;  %v504_v6 = vld [vmem:[%s676_s1 + $0x30] sm:$0xff]   ;;  %v508_v10 = vld [vmem:[%s676_s1 + $0x28] sm:$0xff]  }
   0x4   :  { %v501_v3 = vld [vmem:[%s676_s1 + $0xb8] sm:$0xff]   ;;  %455 = vmatpush3.bf16.msra.mxu0 %v500_v2  ;;  %v505_v7 = vld [vmem:[%s676_s1 + $0xb0] sm:$0xff]   ;;  %v509_v11 = vld [vmem:[%s676_s1 + $0xa8] sm:$0xff]  }
   0x5   :  { %477 = vmatpush3.bf16.msra.mxu1 %v501_v3  ;;  %456 = vmatprep.subr.bf16.mxu0 %v502_v4  ;;  %v510_v12 = vld [vmem:[%s676_s1 + $0x60] sm:$0xff]   ;;  %v514_v16 = vld [vmem:[%s676_s1 + $0x58] sm:$0xff]   ;;  %v518_v20 = vld [vmem:[%s676_s1 + $0x50] sm:$0xff]  }
   0x6   :  { %478 = vmatprep.subr.bf16.mxu1 %v503_v5  ;;  %v511_v13 = vld [vmem:[%s676_s1 + $0xe0] sm:$0xff]   ;;  %v515_v17 = vld [vmem:[%s676_s1 + $0xd8] sm:$0xff]   ;;  %v519_v21 = vld [vmem:[%s676_s1 + $0xd0] sm:$0xff]  }
   0x7   :  { %v512_v14 = vld [vmem:[%s676_s1 + $0x20] sm:$0xff]   ;;  %v516_v18 = vld [vmem:[%s676_s1 + $0x18] sm:$0xff]   ;;  %v520_v22 = vld [vmem:[%s676_s1 + $0x10] sm:$0xff]  }
   0x8   :  { %457 = vmatpush3.bf16.msra.mxu0 %v504_v6  ;;  %v513_v15 = vld [vmem:[%s676_s1 + $0xa0] sm:$0xff]   ;;  %v517_v19 = vld [vmem:[%s676_s1 + $0x98] sm:$0xff]   ;;  %v521_v23 = vld [vmem:[%s676_s1 + $0x90] sm:$0xff]  }
   0x9   :  { %479 = vmatpush3.bf16.msra.mxu1 %v505_v7  ;;  %458 = vmatprep.subr.bf16.mxu0 %v506_v8  ;;  %v522_v24 = vld [vmem:[%s676_s1 + $0x48] sm:$0xff]   ;;  %v526_v28 = vld [vmem:[%s676_s1 + $0x40] sm:$0xff]   ;;  %v416_v33 = vld [vmem:[%s677_s0 + $0x10] sm:$0xff]  ;;  %v123_v8 = vlaneseq }
   0xa   :  { %480 = vmatprep.subr.bf16.mxu1 %v507_v9  ;;  %v523_v25 = vld [vmem:[%s676_s1 + $0xc8] sm:$0xff]   ;;  %v527_v29 = vld [vmem:[%s676_s1 + $0xc0] sm:$0xff]   ;;  %v24_v37 = vunpack.c.l.bf16 %v416_v33  ;;  %v25_v38 = vunpack.c.h.bf16 %v416_v33  ;;  %v420_v39 = vld [vmem:[%s677_s0 + $0x30] sm:$0xff] }
   0xb   :  { %v524_v26 = vld [vmem:[%s676_s1 + $0x8] sm:$0xff]   ;;  %v528_v30 = vld [vmem:[%s676_s1] sm:$0xff]   ;;  %v417_v41 = vld [vmem:[%s677_s0 + $0x18] sm:$0xff]  ;;  %v47_v44 = vunpack.c.h.bf16 %v420_v39  ;;  %v46_v51 = vunpack.c.l.bf16 %v420_v39  ;;  %v124_v9 = vshrl.u32 %v123_v8, 7 }
   0xc   :  { %459 = vmatpush3.bf16.msra.mxu0 %v508_v10  ;;  %v525_v27 = vld [vmem:[%s676_s1 + $0x88] sm:$0xff]   ;;  %v529_v31 = vld [vmem:[%s676_s1 + $0x80] sm:$0xff]   ;;  %v421_v46 = vld [vmem:[%s677_s0 + $0x38] sm:$0xff]  ;;  %v26_v50 = vunpack.c.l.bf16 %v417_v41  ;;  %v27_v52 = vunpack.c.h.bf16 %v417_v41 }
   0xd   :  { %481 = vmatpush3.bf16.msra.mxu1 %v509_v11  ;;  %460 = vmatprep.subr.bf16.mxu0 %v510_v12  ;;  %v15_v32 = vld [vmem:[%s677_s0] sm:$0xff]  ;;  %v16_v40 = vld [vmem:[%s677_s0 + $0x8] sm:$0xff]  ;;  %v48_v56 = vunpack.c.l.bf16 %v421_v46  ;;  %v49_v60 = vunpack.c.h.bf16 %v421_v46  ;;  %v125_v10 = vsub.s32 0, %v124_v9 }
   0xe   :  { %482 = vmatprep.subr.bf16.mxu1 %v511_v13  ;;  %v418_v34 = vld [vmem:[%s677_s0 + $0x20] sm:$0xff]  ;;  %v17_v35 = vunpack.c.l.bf16 %v15_v32  ;;  %v18_v36 = vunpack.c.h.bf16 %v15_v32  ;;  %v419_v45 = vld [vmem:[%s677_s0 + $0x28] sm:$0xff]  ;;  %v19_v48 = vunpack.c.l.bf16 %v16_v40  ;;  %v20_v49 = vunpack.c.h.bf16 %v16_v40 }
   0xf   :  { %v35_v42 = vunpack.c.l.bf16 %v418_v34  ;;  %v36_v43 = vunpack.c.h.bf16 %v418_v34  ;;  %v37_v53 = vunpack.c.l.bf16 %v419_v45  ;;  %v38_v54 = vunpack.c.h.bf16 %v419_v45  ;;  %v122_v11 = vld [vmem:[%s678_s2] sm:$0x7] }
  0x10   :  { %461 = vmatpush3.bf16.msra.mxu0 %v512_v14  ;;  %v29_v47 = vmax.f32 %v18_v36, %v25_v38  ;;  %v28_v57 = vmax.f32 %v17_v35, %v24_v37  ;;  %v30_v58 = vmax.f32 %v19_v48, %v26_v50  ;;  %v31_v59 = vmax.f32 %v20_v49, %v27_v52 }
  0x11   :  { %483 = vmatpush3.bf16.msra.mxu1 %v513_v15  ;;  %462 = vmatprep.subr.bf16.mxu0 %v514_v16  ;;  %v126_v13 = vrot.slane %v122_v11, %v125_v10 }
  0x12   :  { %484 = vmatprep.subr.bf16.mxu1 %v515_v17  ;;  %v40_v55 = vmax.f32 %v29_v47, %v36_v43  ;;  %v39_v62 = vmax.f32 %v28_v57, %v35_v42  ;;  %v41_v63 = vmax.f32 %v30_v58, %v37_v53  ;;  %v42_v0 = vmax.f32 %v31_v59, %v38_v54 }
  0x13   :  { %v402_v17 = vsub.s32 1, %v124_v9 }
  0x14   :  { %463 = vmatpush3.bf16.msra.mxu0 %v516_v18  ;;  %v51_v61 = vmax.f32 %v40_v55, %v47_v44  ;;  %v50_v2 = vmax.f32 %v39_v62, %v46_v51  ;;  %v52_v3 = vmax.f32 %v41_v63, %v48_v56  ;;  %v53_v4 = vmax.f32 %v42_v0, %v49_v60 }
  0x15   :  { %485 = vmatpush3.bf16.msra.mxu1 %v517_v19  ;;  %464 = vmatprep.subr.bf16.mxu0 %v518_v20 }
  0x16   :  { %486 = vmatprep.subr.bf16.mxu1 %v519_v21  ;;  %v55_v1 = vpack.c.bf16 %v51_v61, %v51_v61  ;;  %v54_v5 = vpack.c.bf16 %v50_v2, %v50_v2  ;;  %v56_v6 = vpack.c.bf16 %v52_v3, %v52_v3  ;;  %v57_v7 = vpack.c.bf16 %v53_v4, %v53_v4 }
  0x18   :  { %465 = vmatpush3.bf16.msra.mxu0 %v520_v22  ;;  %351 = vmatprep.mubr.bf16.mxu0 %v55_v1  ;;  %v407_v22 = vsub.s32 2, %v124_v9 }
  0x19   :  { %487 = vmatpush3.bf16.msra.mxu1 %v521_v23  ;;  %466 = vmatprep.subr.bf16.mxu0 %v522_v24 }
  0x1a   :  { %488 = vmatprep.subr.bf16.mxu1 %v523_v25  ;;  %391 = vmatprep.mubr.bf16.mxu1 %v57_v7 }
  0x1c   :  { %467 = vmatpush3.bf16.msra.mxu0 %v524_v26  ;;  %v403_v26 = vrot.slane %v122_v11, %v402_v17 }
  0x1d   :  { %489 = vmatpush3.bf16.msra.mxu1 %v525_v27  ;;  %468 = vmatprep.subr.bf16.mxu0 %v526_v28 }
  0x1e   :  { %490 = vmatprep.subr.bf16.mxu1 %v527_v29  ;;  %v408_v29 = vrot.slane %v122_v11, %v407_v22 }
  0x20   :  { %469 = vmatpush3.bf16.msra.mxu0 %v528_v30 }
  0x21   :  { %491 = vmatpush3.bf16.msra.mxu1 %v529_v31 }
  0x23   :  { %352 = vmatmul.mubr.bf16.vlgmr.msra.gmra.mxu0 %v54_v5 }
  0x24   :  { %392 = vmatmul.mubr.bf16.vlgmr.msra.gmra.mxu1 %v56_v6 }
  0xe3   :  { %v470_v12 = vpop.f32.mrf.mxu0 }
  0xe4   :  { %v492_v14 = vpop.f32.mrf.mxu1 }
  0xe5   :  { %v471_v15 = vpop.f32.mrf.mxu0 }
  0xe6   :  { %v472_v16 = vadd.f32 %v471_v15, %v470_v12  ;;  %v493_v18 = vpop.f32.mrf.mxu1 }
  0xe7   :  { %v473_v19 = vpop.f32.mrf.mxu0  ;;  %v494_v21 = vadd.f32 %v493_v18, %v492_v14 }
  0xe8   :  { %v354_v20 = vadd.f32 %v472_v16, %v126_v13  ;;  %v495_v23 = vpop.f32.mrf.mxu1 }
  0xe9   :  { %v474_v24 = vpop.f32.mrf.mxu0 }
  0xea   :  { %v394_v25 = vadd.f32 %v494_v21, %v354_v20  ;;  %v496_v27 = vpop.f32.mrf.mxu1 }
  0xec   :  { %v399_v28 = vmax.f32 %v394_v25, 0.0 }
  0xee   :  { %v404_v30 = vmul.f32 %v403_v26, %v399_v28 }
  0xf0   :  { %v409_v31 = vadd.f32 %v408_v29, %v404_v30 }
  0xf2   :  { %411 = vst.msk [vmem:[%s679_s3] sm:$0xff] %vm410_vm0, %v409_v31 }

// kernel: fcn_adf_forward.10
= control target key start
LH: loop header
LB: loop body
LE: loop exit
PB: predicated region body
PF: predicated region fallthrough
CT: control target
= control target key end

     0   :  { %v42_v28 = vlaneseq  ;;  %v928_v30 = vmov 1983009808   ;;  %v929_v48 = vmov 0.0   ;;  %vm930_vm0 = vmmov 0   ;;  %s1169_s1 = inlined_call_operand.vmem [shape: bf16[896,16], index: 1, kind: input, shape index: {}]   ;;  %s1170_s0 = inlined_call_operand.vmem [shape: bf16[4,2,896], index: 0, kind: input, shape index: {}]   ;;  %s1171_s2 = inlined_call_operand.vmem [shape: f32[3,16], index: 2, kind: input, shape index: {}]   ;;  %s1172_s3 = inlined_call_operand.vmem [shape: f32[2,16], index: 3, kind: output, shape index: {}]  }
   0x1   :  { %v872_v0 = vld [vmem:[%s1169_s1 + $0x78] sm:$0xff]   ;;  %v876_v4 = vld [vmem:[%s1169_s1 + $0x70] sm:$0xff]   ;;  %v880_v8 = vld [vmem:[%s1169_s1 + $0x68] sm:$0xff]   ;;  %v40_v31 = vunpack.c.l.s4 %v928_v30  ;;  %vm709_vm1 = vcmask 123904  }
   0x2   :  { %v873_v1 = vld [vmem:[%s1169_s1 + $0xf8] sm:$0xff]   ;;  %774 = vmatprep.subr.bf16.mxu0 %v872_v0  ;;  %v877_v5 = vld [vmem:[%s1169_s1 + $0xf0] sm:$0xff]   ;;  %v881_v9 = vld [vmem:[%s1169_s1 + $0xe8] sm:$0xff]   ;;  %v1047_v35 = vshrl.u32 %v42_v28, 7 }
   0x3   :  { %v874_v2 = vld [vmem:[%s1169_s1 + $0x38] sm:$0xff]   ;;  %796 = vmatprep.subr.bf16.mxu1 %v873_v1  ;;  %v878_v6 = vld [vmem:[%s1169_s1 + $0x30] sm:$0xff]   ;;  %v882_v10 = vld [vmem:[%s1169_s1 + $0x28] sm:$0xff]   ;;  %v41_v39 = vunpack.c.0.s8 %v40_v31 }
   0x4   :  { %v875_v3 = vld [vmem:[%s1169_s1 + $0xb8] sm:$0xff]   ;;  %775 = vmatpush3.bf16.msra.mxu0 %v874_v2  ;;  %v879_v7 = vld [vmem:[%s1169_s1 + $0xb0] sm:$0xff]   ;;  %v883_v11 = vld [vmem:[%s1169_s1 + $0xa8] sm:$0xff]  }
   0x5   :  { %797 = vmatpush3.bf16.msra.mxu1 %v875_v3  ;;  %776 = vmatprep.subr.bf16.mxu0 %v876_v4  ;;  %v884_v12 = vld [vmem:[%s1169_s1 + $0x60] sm:$0xff]   ;;  %v888_v16 = vld [vmem:[%s1169_s1 + $0x58] sm:$0xff]   ;;  %v892_v20 = vld [vmem:[%s1169_s1 + $0x50] sm:$0xff]   ;;  %v1066_v54 = vsub.s32 %v41_v39, %v1047_v35 }
   0x6   :  { %798 = vmatprep.subr.bf16.mxu1 %v877_v5  ;;  %v885_v13 = vld [vmem:[%s1169_s1 + $0xe0] sm:$0xff]   ;;  %v889_v17 = vld [vmem:[%s1169_s1 + $0xd8] sm:$0xff]   ;;  %v893_v21 = vld [vmem:[%s1169_s1 + $0xd0] sm:$0xff]  }
   0x7   :  { %v886_v14 = vld [vmem:[%s1169_s1 + $0x20] sm:$0xff]   ;;  %v890_v18 = vld [vmem:[%s1169_s1 + $0x18] sm:$0xff]   ;;  %v894_v22 = vld [vmem:[%s1169_s1 + $0x10] sm:$0xff]  }
   0x8   :  { %777 = vmatpush3.bf16.msra.mxu0 %v878_v6  ;;  %v887_v15 = vld [vmem:[%s1169_s1 + $0xa0] sm:$0xff]   ;;  %v891_v19 = vld [vmem:[%s1169_s1 + $0x98] sm:$0xff]   ;;  %v895_v23 = vld [vmem:[%s1169_s1 + $0x90] sm:$0xff]  }
   0x9   :  { %799 = vmatpush3.bf16.msra.mxu1 %v879_v7  ;;  %778 = vmatprep.subr.bf16.mxu0 %v880_v8  ;;  %v896_v24 = vld [vmem:[%s1169_s1 + $0x48] sm:$0xff]   ;;  %v900_v29 = vld [vmem:[%s1169_s1 + $0x40] sm:$0xff]   ;;  %v717_v44 = vld [vmem:[%s1170_s0 + $0x15] sm:$0x7f] }
   0xa   :  { %800 = vmatprep.subr.bf16.mxu1 %v881_v9  ;;  %v897_v25 = vld [vmem:[%s1169_s1 + $0xc8] sm:$0xff]   ;;  %v901_v32 = vld [vmem:[%s1169_s1 + $0xc0] sm:$0xff]   ;;  %v904_v47 = vld [vmem:[%s1169_s1 + $0x178] sm:$0xff]   ;;  %v32_v50 = vunpack.c.l.bf16 %v717_v44  ;;  %v33_v51 = vunpack.c.h.bf16 %v717_v44 }
   0xb   :  { %v898_v26 = vld [vmem:[%s1169_s1 + $0x8] sm:$0xff]   ;;  %v902_v33 = vld [vmem:[%s1169_s1] sm:$0xff]   ;;  %v905_v3 = vld [vmem:[%s1169_s1 + $0x138] sm:$0xff]  }
   0xc   :  { %779 = vmatpush3.bf16.msra.mxu0 %v882_v10  ;;  %v899_v27 = vld [vmem:[%s1169_s1 + $0x88] sm:$0xff]   ;;  %v903_v34 = vld [vmem:[%s1169_s1 + $0x80] sm:$0xff]   ;;  %v907_v5 = vld [vmem:[%s1169_s1 + $0x170] sm:$0xff]  }
   0xd   :  { %801 = vmatpush3.bf16.msra.mxu1 %v883_v11  ;;  %780 = vmatprep.subr.bf16.mxu0 %v884_v12  ;;  %v15_v36 = vld [vmem:[%s1170_s0] sm:$0x7f]  ;;  %v715_v37 = vld [vmem:[%s1170_s0 + $0x7] sm:$0x7f]  ;;  %v716_v38 = vld [vmem:[%s1170_s0 + $0xe] sm:$0x7f] }
   0xe   :  { %802 = vmatprep.subr.bf16.mxu1 %v885_v13  ;;  %v16_v40 = vunpack.c.l.bf16 %v15_v36  ;;  %v17_v41 = vunpack.c.h.bf16 %v15_v36  ;;  %v20_v42 = vunpack.c.l.bf16 %v715_v37  ;;  %v21_v43 = vunpack.c.h.bf16 %v715_v37  ;;  %v906_v7 = vld [vmem:[%s1169_s1 + $0x1b8] sm:$0xff]   ;;  %v908_v9 = vld [vmem:[%s1169_s1 + $0x130] sm:$0xff]   ;;  %v910_v10 = vld [vmem:[%s1169_s1 + $0x168] sm:$0xff]  }
   0xf   :  { %v26_v45 = vunpack.c.l.bf16 %v716_v38  ;;  %v27_v46 = vunpack.c.h.bf16 %v716_v38  ;;  %v909_v11 = vld [vmem:[%s1169_s1 + $0x1b0] sm:$0xff]   ;;  %v911_v12 = vld [vmem:[%s1169_s1 + $0x128] sm:$0xff]   ;;  %v913_v13 = vld [vmem:[%s1169_s1 + $0x160] sm:$0xff]  }
  0x10   :  { %781 = vmatpush3.bf16.msra.mxu0 %v886_v14  ;;  %v22_v49 = vmax.f32 %v16_v40, %v20_v42  ;;  %v23_v52 = vmax.f32 %v17_v41, %v21_v43  ;;  %v912_v14 = vld [vmem:[%s1169_s1 + $0x1a8] sm:$0xff]   ;;  %v926_v28 = vld [vmem:[%s1169_s1 + $0x100] sm:$0xff]   ;;  %v200_v42 = vsub.s32 0, %v1047_v35 }
  0x11   :  { %803 = vmatpush3.bf16.msra.mxu1 %v887_v15  ;;  %782 = vmatprep.subr.bf16.mxu0 %v888_v16  ;;  %v914_v15 = vld [vmem:[%s1169_s1 + $0x120] sm:$0xff]   ;;  %v916_v16 = vld [vmem:[%s1169_s1 + $0x158] sm:$0xff]  }
  0x12   :  { %804 = vmatprep.subr.bf16.mxu1 %v889_v17  ;;  %v28_v53 = vmax.f32 %v22_v49, %v26_v45  ;;  %v29_v55 = vmax.f32 %v23_v52, %v27_v46  ;;  %v915_v17 = vld [vmem:[%s1169_s1 + $0x1a0] sm:$0xff]  }
  0x13   :  { %v927_v30 = vld [vmem:[%s1169_s1 + $0x180] sm:$0xff]  }
  0x14   :  { %783 = vmatpush3.bf16.msra.mxu0 %v890_v18  ;;  %v34_v56 = vmax.f32 %v28_v53, %v32_v50  ;;  %v1068_v57 = vmax.f32 %v29_v55, %v33_v51  ;;  %v917_v18 = vld [vmem:[%s1169_s1 + $0x118] sm:$0xff]   ;;  %v197_v43 = vld [vmem:[%s1171_s2] sm:$0x7]  ;;  %v701_v53 = vsub.s32 1, %v1047_v35 }
  0x15   :  { %805 = vmatpush3.bf16.msra.mxu1 %v891_v19  ;;  %784 = vmatprep.subr.bf16.mxu0 %v892_v20  ;;  %v919_v19 = vld [vmem:[%s1169_s1 + $0x150] sm:$0xff]   ;;  %v918_v20 = vld [vmem:[%s1169_s1 + $0x198] sm:$0xff]   ;;  %v201_v44 = vrot.slane %v197_v43, %v200_v42 }
  0x16   :  { %806 = vmatprep.subr.bf16.mxu1 %v893_v21  ;;  %v45_v58 = vrot.slane %v34_v56, %v1066_v54  ;;  %v38_v59 = vcombine.high %v34_v56, %v34_v56  ;;  %v1073_v60 = vrot.slane %v1068_v57, %v1066_v54  ;;  %v920_v21 = vld [vmem:[%s1169_s1 + $0x110] sm:$0xff]   ;;  %v706_v56 = vsub.s32 2, %v1047_v35 }
  0x18   :  { %785 = vmatpush3.bf16.msra.mxu0 %v894_v22  ;;  %v53_v61 = vcombine.high %v45_v58, %v45_v58  ;;  %v52_v62 = vrot.slane %v38_v59, %v1066_v54  ;;  %v70_v63 = vcombine.high %v1073_v60, %v1073_v60  ;;  %v78_v0 = vpack.c.bf16 %v45_v58, %v45_v58  ;;  %v922_v22 = vld [vmem:[%s1169_s1 + $0x148] sm:$0xff]  }
  0x19   :  { %807 = vmatpush3.bf16.msra.mxu1 %v895_v23  ;;  %786 = vmatprep.subr.bf16.mxu0 %v896_v24  ;;  %v921_v23 = vld [vmem:[%s1169_s1 + $0x190] sm:$0xff]   ;;  %v923_v24 = vld [vmem:[%s1169_s1 + $0x108] sm:$0xff]   ;;  %v82_v31 = vpack.c.bf16 %v1073_v60, %v1073_v60 }
  0x1a   :  { %808 = vmatprep.subr.bf16.mxu1 %v897_v25  ;;  %v79_v1 = vpack.c.bf16 %v53_v61, %v53_v61  ;;  %v54_v2 = vcombine.high %v52_v62, %v52_v62  ;;  %v80_v4 = vpack.c.bf16 %v52_v62, %v52_v62  ;;  %v83_v8 = vpack.c.bf16 %v70_v63, %v70_v63  ;;  %v925_v25 = vld [vmem:[%s1169_s1 + $0x140] sm:$0xff]  }
  0x1b   :  { %v702_v61 = vrot.slane %v197_v43, %v701_v53  ;;  %v707_v63 = vrot.slane %v197_v43, %v706_v56 }
  0x1c   :  { %787 = vmatpush3.bf16.msra.mxu0 %v898_v26  ;;  %570 = vmatprep.mubr.bf16.mxu0 %v79_v1  ;;  %v81_v6 = vpack.c.bf16 %v54_v2, %v54_v2  ;;  %v55_v26 = vcombine.high %v1068_v57, %v1068_v57 }
  0x1d   :  { %809 = vmatpush3.bf16.msra.mxu1 %v899_v27  ;;  %788 = vmatprep.subr.bf16.mxu0 %v900_v29  ;;  %v924_v27 = vld [vmem:[%s1169_s1 + $0x188] sm:$0xff]  }
  0x1e   :  { %810 = vmatprep.subr.bf16.mxu1 %v901_v32  ;;  %610 = vmatprep.mubr.bf16.mxu1 %v81_v6  ;;  %v69_v29 = vrot.slane %v55_v26, %v1066_v54 }
  0x20   :  { %789 = vmatpush3.bf16.msra.mxu0 %v902_v33  ;;  %v84_v32 = vpack.c.bf16 %v69_v29, %v69_v29 }
  0x21   :  { %811 = vmatpush3.bf16.msra.mxu1 %v903_v34  ;;  %818 = vmatprep.subr.bf16.mxu0 %v904_v47 }
  0x22   :  { %849 = vmatprep.subr.bf16.mxu1 %v929_v48 }
  0x23   :  { %571 = vmatmul.mubr.bf16.vlgmr.msra.gmra.mxu0 %v78_v0 }
  0x24   :  { %819 = vmatpush3.bf16.msra.mxu0 %v905_v3  ;;  %611 = vmatmul.mubr.bf16.vlgmr.msra.gmra.mxu1 %v80_v4 }
  0x25   :  { %820 = vmatprep.subr.bf16.mxu0 %v907_v5  ;;  %850 = vmatpush3.bf16.msra.mxu1 %v906_v7 }
  0x26   :  { %650 = vmatprep.mubr.bf16.mxu0 %v83_v8  ;;  %851 = vmatprep.subr.bf16.mxu1 %v929_v48 }
  0x27   :  { %865 = vmatprep.mubr.msk.bf16.mxu1 %vm930_vm0, %v929_v48 }
  0x28   :  { %821 = vmatpush3.bf16.msra.mxu0 %v908_v9 }
  0x29   :  { %822 = vmatprep.subr.bf16.mxu0 %v910_v10  ;;  %852 = vmatpush3.bf16.msra.mxu1 %v909_v11 }
  0x2a   :  { %853 = vmatprep.subr.bf16.mxu1 %v929_v48 }
  0x2c   :  { %823 = vmatpush3.bf16.msra.mxu0 %v911_v12 }
  0x2d   :  { %824 = vmatprep.subr.bf16.mxu0 %v913_v13  ;;  %854 = vmatpush3.bf16.msra.mxu1 %v912_v14 }
  0x2e   :  { %855 = vmatprep.subr.bf16.mxu1 %v929_v48 }
  0x30   :  { %825 = vmatpush3.bf16.msra.mxu0 %v914_v15 }
  0x31   :  { %826 = vmatprep.subr.bf16.mxu0 %v916_v16  ;;  %856 = vmatpush3.bf16.msra.mxu1 %v915_v17 }
  0x32   :  { %857 = vmatprep.subr.bf16.mxu1 %v929_v48 }
  0x34   :  { %827 = vmatpush3.bf16.msra.mxu0 %v917_v18 }
  0x35   :  { %828 = vmatprep.subr.bf16.mxu0 %v919_v19  ;;  %858 = vmatpush3.bf16.msra.mxu1 %v918_v20 }
  0x36   :  { %859 = vmatprep.subr.bf16.mxu1 %v929_v48 }
  0x38   :  { %829 = vmatpush3.bf16.msra.mxu0 %v920_v21 }
  0x39   :  { %830 = vmatprep.subr.bf16.mxu0 %v922_v22  ;;  %860 = vmatpush3.bf16.msra.mxu1 %v921_v23 }
  0x3a   :  { %861 = vmatprep.subr.bf16.mxu1 %v929_v48 }
  0x3c   :  { %831 = vmatpush3.bf16.msra.mxu0 %v923_v24 }
  0x3d   :  { %832 = vmatprep.subr.bf16.mxu0 %v925_v25  ;;  %862 = vmatpush3.bf16.msra.mxu1 %v924_v27 }
  0x3e   :  { %863 = vmatprep.subr.bf16.mxu1 %v929_v48 }
  0x40   :  { %833 = vmatpush3.bf16.msra.mxu0 %v926_v28 }
  0x41   :  { %864 = vmatpush3.bf16.msra.mxu1 %v927_v30 }
  0x43   :  { %651 = vmatmul.mubr.bf16.vlgmr.msra.gmra.mxu0 %v82_v31 }
  0x44   :  { %866 = vmatmul.mubr.bf16.vlgmr.msra.gmra.mxu1 %v84_v32 }
  0xe3   :  { %v790_v33 = vpop.f32.mrf.mxu0 }
  0xe4   :  { %v812_v34 = vpop.f32.mrf.mxu1 }
  0xe5   :  { %v791_v36 = vpop.f32.mrf.mxu0 }
  0xe6   :  { %v813_v37 = vpop.f32.mrf.mxu1  ;;  %v792_v45 = vadd.f32 %v791_v36, %v790_v33 }
  0xe7   :  { %v793_v38 = vpop.f32.mrf.mxu0  ;;  %v814_v47 = vadd.f32 %v813_v37, %v812_v34 }
  0xe8   :  { %v815_v39 = vpop.f32.mrf.mxu1  ;;  %v573_v46 = vadd.f32 %v792_v45, %v201_v44 }
  0xe9   :  { %v794_v40 = vpop.f32.mrf.mxu0 }
  0xea   :  { %v816_v41 = vpop.f32.mrf.mxu1  ;;  %v613_v51 = vadd.f32 %v814_v47, %v573_v46 }
 0x103   :  { %v834_v48 = vpop.f32.mrf.mxu0 }
 0x104   :  { %v692_v49 = vpop.f32.mrf.mxu1 }
 0x105   :  { %v835_v50 = vpop.f32.mrf.mxu0 }
 0x106   :  { %v836_v52 = vadd.f32 %v835_v50, %v834_v48  ;;  %v867_v54 = vpop.f32.mrf.mxu1 }
 0x107   :  { %v837_v55 = vpop.f32.mrf.mxu0 }
 0x108   :  { %v653_v57 = vadd.f32 %v836_v52, %v613_v51  ;;  %v695_v58 = vpop.f32.mrf.mxu1 }
 0x109   :  { %v838_v59 = vpop.f32.mrf.mxu0 }
 0x10a   :  { %v693_v60 = vadd.f32 %v692_v49, %v653_v57  ;;  %v868_v62 = vpop.f32.mrf.mxu1 }
 0x10c   :  { %v698_v0 = vmax.f32 %v693_v60, 0.0 }
 0x10e   :  { %v703_v1 = vmul.f32 %v702_v61, %v698_v0 }
 0x110   :  { %v708_v2 = vadd.f32 %v707_v63, %v703_v1 }
 0x112   :  { %710 = vst.msk [vmem:[%s1172_s3] sm:$0x3] %vm709_vm1, %v708_v2 }

// kernel: fcn_adf_forward.11
= control target key start
LH: loop header
LB: loop body
LE: loop exit
PB: predicated region body
PF: predicated region fallthrough
CT: control target
= control target key end

     0   :  { %s4938_s18 = smov 0   ;;  %s4940_s19 = smov 0   ;;  %s6097_s0 = inlined_call_operand.vmem [shape: bf16[5,512,256], index: 0, kind: input, shape index: {}]   ;;  %s6098_s1 = inlined_call_operand.vmem [shape: bf16[5,256,16], index: 1, kind: input, shape index: {}]   ;;  %s6099_s2 = inlined_call_operand.vmem [shape: f32[5,3,16], index: 2, kind: input, shape index: {}]   ;;  %s6100_s3 = inlined_call_operand.vmem [shape: f32[5,16,8], index: 3, kind: input, shape index: {}]   ;;  %s6101_s4 = inlined_call_operand.vmem [shape: f32[1,8], index: 4, kind: input, shape index: {}]   ;;  %s6102_s5 = inlined_call_operand.vmem [shape: f32[512,8], index: 5, kind: output, shape index: {}]  }
   0x1   :  { %s4942_s20 = smov 0  }
   0x2 LB: > { %s3633_s21 = sadd.s32 4294967295, %s4906_s20   ;;  %s4955_s22 = sadd.s32 1, %s4906_s20   ;;  %s4906_s20 = sphi %s4942_s20, %s6105_s20   ;;  %s4902_s19 = sphi %s4940_s19, %s6104_s19   ;;  %s4898_s18 = sphi %s4938_s18, %s6103_s18  }
   0x3   : > { %s19_s23 = ssub.s32 %s4906_s20, %s4955_s22  ;;  %s22_s24 = sadd.s32 1, %s4902_s19 }
   0x4   : > { %p20_p0 = scmp.eq.s32.totalorder %s19_s23, 0  ;;  %p29_p1 = scmp.ne.s32.totalorder %s4902_s19, %s4898_s18 }
   0x5   : > { %p30_p2 = scmp.eq.s32.totalorder %s4906_s20, 0  ;;  %p3636_p4 = scmp.ge.s32.totalorder %s4906_s20, 4 }
   0x6   : > { %s4964_s25 = scalar_select %p20_p0, %s4902_s19, %s22_s24  }
   0x7   : > { %p31_p3 = por %p30_p2, %p29_p1  ;;  %177 = sbr.rel (%p3636_p4) target bundleno = 57 (0x39), region = 32 }
   0xc   : > { %180 = sbr.rel (!%p31_p3) target bundleno = 57 (0x39), region = 36  ;;  %s182_s26 = sand.u32 (%p31_p3), 1, %s4902_s19  }
   0xd   : > { %s4091_s27 = sshll.u32 (%p31_p3), %s4906_s20, 7  ;;  %s4658_s28 = smul.u32 (%p31_p3), 640, %s182_s26 }
   0xe   : > { %s4972_s6 = scalar_lea.vmem (%p31_p3), %s6097_s0, %s4091_s27 }
   0xf   : > { %v375_v0 = vld [vmem:[%s4972_s6] sm:$0xff] (%p31_p3)  ;;  %v377_v1 = vld [vmem:[%s4972_s6 + $0x8] sm:$0xff] (%p31_p3)  ;;  %v379_v2 = vld [vmem:[%s4972_s6 + $0x10] sm:$0xff] (%p31_p3)  ;;  %s4980_s7 = scalar_lea.vmem (%p31_p3), [#allocation2], %s4658_s28 }
  0x10   : > { %v381_v3 = vld [vmem:[%s4972_s6 + $0x18] sm:$0xff] (%p31_p3)  ;;  %v383_v4 = vld [vmem:[%s4972_s6 + $0x20] sm:$0xff] (%p31_p3)  ;;  %v385_v5 = vld [vmem:[%s4972_s6 + $0x28] sm:$0xff] (%p31_p3)  ;;  %376 = vst [vmem:[%s4980_s7] sm:$0xff] (%p31_p3), %v375_v0 }
  0x11   : > { %378 = vst [vmem:[%s4980_s7 + $0x8] sm:$0xff] %v377_v1  ;;  %380 = vst [vmem:[%s4980_s7 + $0x10] sm:$0xff] %v379_v2  ;;  %v387_v6 = vld [vmem:[%s4972_s6 + $0x30] sm:$0xff]  ;;  %v389_v7 = vld [vmem:[%s4972_s6 + $0x38] sm:$0xff] }
  0x12   : > { %382 = vst [vmem:[%s4980_s7 + $0x18] sm:$0xff] %v381_v3  ;;  %384 = vst [vmem:[%s4980_s7 + $0x20] sm:$0xff] %v383_v4  ;;  %v391_v8 = vld [vmem:[%s4972_s6 + $0x40] sm:$0xff]  ;;  %v393_v9 = vld [vmem:[%s4972_s6 + $0x48] sm:$0xff] }
  0x13   : > { %386 = vst [vmem:[%s4980_s7 + $0x28] sm:$0xff] %v385_v5  ;;  %388 = vst [vmem:[%s4980_s7 + $0x30] sm:$0xff] %v387_v6  ;;  %v395_v10 = vld [vmem:[%s4972_s6 + $0x50] sm:$0xff]  ;;  %v397_v11 = vld [vmem:[%s4972_s6 + $0x58] sm:$0xff] }
  0x14   : > { %390 = vst [vmem:[%s4980_s7 + $0x38] sm:$0xff] %v389_v7  ;;  %392 = vst [vmem:[%s4980_s7 + $0x40] sm:$0xff] %v391_v8  ;;  %v399_v12 = vld [vmem:[%s4972_s6 + $0x60] sm:$0xff]  ;;  %v401_v13 = vld [vmem:[%s4972_s6 + $0x68] sm:$0xff] }
  0x15   : > { %394 = vst [vmem:[%s4980_s7 + $0x48] sm:$0xff] %v393_v9  ;;  %396 = vst [vmem:[%s4980_s7 + $0x50] sm:$0xff] %v395_v10  ;;  %v403_v14 = vld [vmem:[%s4972_s6 + $0x70] sm:$0xff]  ;;  %v405_v15 = vld [vmem:[%s4972_s6 + $0x78] sm:$0xff] }
  0x16   : > { %398 = vst [vmem:[%s4980_s7 + $0x58] sm:$0xff] %v397_v11  ;;  %400 = vst [vmem:[%s4980_s7 + $0x60] sm:$0xff] %v399_v12  ;;  %v407_v16 = vld [vmem:[%s4972_s6 + $0x200] sm:$0xff]  ;;  %v409_v17 = vld [vmem:[%s4972_s6 + $0x208] sm:$0xff] }
  0x17   : > { %402 = vst [vmem:[%s4980_s7 + $0x68] sm:$0xff] %v401_v13  ;;  %404 = vst [vmem:[%s4980_s7 + $0x70] sm:$0xff] %v403_v14  ;;  %v411_v18 = vld [vmem:[%s4972_s6 + $0x210] sm:$0xff]  ;;  %v413_v19 = vld [vmem:[%s4972_s6 + $0x218] sm:$0xff] }
  0x18   : > { %406 = vst [vmem:[%s4980_s7 + $0x78] sm:$0xff] %v405_v15  ;;  %408 = vst [vmem:[%s4980_s7 + $0x80] sm:$0xff] %v407_v16  ;;  %v415_v20 = vld [vmem:[%s4972_s6 + $0x220] sm:$0xff]  ;;  %v417_v21 = vld [vmem:[%s4972_s6 + $0x228] sm:$0xff] }
  0x19   : > { %410 = vst [vmem:[%s4980_s7 + $0x88] sm:$0xff] %v409_v17  ;;  %412 = vst [vmem:[%s4980_s7 + $0x90] sm:$0xff] %v411_v18  ;;  %v419_v22 = vld [vmem:[%s4972_s6 + $0x230] sm:$0xff]  ;;  %v421_v23 = vld [vmem:[%s4972_s6 + $0x238] sm:$0xff] }
  0x1a   : > { %414 = vst [vmem:[%s4980_s7 + $0x98] sm:$0xff] %v413_v19  ;;  %416 = vst [vmem:[%s4980_s7 + $0xa0] sm:$0xff] %v415_v20  ;;  %v423_v24 = vld [vmem:[%s4972_s6 + $0x240] sm:$0xff]  ;;  %v425_v25 = vld [vmem:[%s4972_s6 + $0x248] sm:$0xff] }
  0x1b   : > { %418 = vst [vmem:[%s4980_s7 + $0xa8] sm:$0xff] %v417_v21  ;;  %420 = vst [vmem:[%s4980_s7 + $0xb0] sm:$0xff] %v419_v22  ;;  %v427_v26 = vld [vmem:[%s4972_s6 + $0x250] sm:$0xff]  ;;  %v429_v27 = vld [vmem:[%s4972_s6 + $0x258] sm:$0xff] }
  0x1c   : > { %422 = vst [vmem:[%s4980_s7 + $0xb8] sm:$0xff] %v421_v23  ;;  %424 = vst [vmem:[%s4980_s7 + $0xc0] sm:$0xff] %v423_v24  ;;  %v431_v28 = vld [vmem:[%s4972_s6 + $0x260] sm:$0xff]  ;;  %v433_v29 = vld [vmem:[%s4972_s6 + $0x268] sm:$0xff] }
  0x1d   : > { %426 = vst [vmem:[%s4980_s7 + $0xc8] sm:$0xff] %v425_v25  ;;  %428 = vst [vmem:[%s4980_s7 + $0xd0] sm:$0xff] %v427_v26  ;;  %v435_v30 = vld [vmem:[%s4972_s6 + $0x270] sm:$0xff]  ;;  %v437_v31 = vld [vmem:[%s4972_s6 + $0x278] sm:$0xff] }
  0x1e   : > { %430 = vst [vmem:[%s4980_s7 + $0xd8] sm:$0xff] %v429_v27  ;;  %432 = vst [vmem:[%s4980_s7 + $0xe0] sm:$0xff] %v431_v28  ;;  %v439_v32 = vld [vmem:[%s4972_s6 + $0x400] sm:$0xff]  ;;  %v441_v33 = vld [vmem:[%s4972_s6 + $0x408] sm:$0xff] }
  0x1f   : > { %434 = vst [vmem:[%s4980_s7 + $0xe8] sm:$0xff] %v433_v29  ;;  %436 = vst [vmem:[%s4980_s7 + $0xf0] sm:$0xff] %v435_v30  ;;  %v443_v34 = vld [vmem:[%s4972_s6 + $0x410] sm:$0xff]  ;;  %v445_v35 = vld [vmem:[%s4972_s6 + $0x418] sm:$0xff] }
  0x20   : > { %438 = vst [vmem:[%s4980_s7 + $0xf8] sm:$0xff] %v437_v31  ;;  %440 = vst [vmem:[%s4980_s7 + $0x100] sm:$0xff] %v439_v32  ;;  %v447_v36 = vld [vmem:[%s4972_s6 + $0x420] sm:$0xff]  ;;  %v449_v37 = vld [vmem:[%s4972_s6 + $0x428] sm:$0xff] }
  0x21   : > { %442 = vst [vmem:[%s4980_s7 + $0x108] sm:$0xff] %v441_v33  ;;  %444 = vst [vmem:[%s4980_s7 + $0x110] sm:$0xff] %v443_v34  ;;  %v451_v38 = vld [vmem:[%s4972_s6 + $0x430] sm:$0xff]  ;;  %v453_v39 = vld [vmem:[%s4972_s6 + $0x438] sm:$0xff] }
  0x22   : > { %446 = vst [vmem:[%s4980_s7 + $0x118] sm:$0xff] %v445_v35  ;;  %448 = vst [vmem:[%s4980_s7 + $0x120] sm:$0xff] %v447_v36  ;;  %v455_v40 = vld [vmem:[%s4972_s6 + $0x440] sm:$0xff]  ;;  %v457_v41 = vld [vmem:[%s4972_s6 + $0x448] sm:$0xff] }
  0x23   : > { %450 = vst [vmem:[%s4980_s7 + $0x128] sm:$0xff] %v449_v37  ;;  %452 = vst [vmem:[%s4980_s7 + $0x130] sm:$0xff] %v451_v38  ;;  %v459_v42 = vld [vmem:[%s4972_s6 + $0x450] sm:$0xff]  ;;  %v461_v43 = vld [vmem:[%s4972_s6 + $0x458] sm:$0xff] }
  0x24   : > { %454 = vst [vmem:[%s4980_s7 + $0x138] sm:$0xff] %v453_v39  ;;  %456 = vst [vmem:[%s4980_s7 + $0x140] sm:$0xff] %v455_v40  ;;  %v463_v44 = vld [vmem:[%s4972_s6 + $0x460] sm:$0xff]  ;;  %v465_v45 = vld [vmem:[%s4972_s6 + $0x468] sm:$0xff] }
  0x25   : > { %458 = vst [vmem:[%s4980_s7 + $0x148] sm:$0xff] %v457_v41  ;;  %460 = vst [vmem:[%s4980_s7 + $0x150] sm:$0xff] %v459_v42  ;;  %v467_v46 = vld [vmem:[%s4972_s6 + $0x470] sm:$0xff]  ;;  %v469_v47 = vld [vmem:[%s4972_s6 + $0x478] sm:$0xff] }
  0x26   : > { %462 = vst [vmem:[%s4980_s7 + $0x158] sm:$0xff] %v461_v43  ;;  %464 = vst [vmem:[%s4980_s7 + $0x160] sm:$0xff] %v463_v44  ;;  %v471_v48 = vld [vmem:[%s4972_s6 + $0x600] sm:$0xff]  ;;  %v473_v49 = vld [vmem:[%s4972_s6 + $0x608] sm:$0xff] }
  0x27   : > { %466 = vst [vmem:[%s4980_s7 + $0x168] sm:$0xff] %v465_v45  ;;  %468 = vst [vmem:[%s4980_s7 + $0x170] sm:$0xff] %v467_v46  ;;  %v475_v50 = vld [vmem:[%s4972_s6 + $0x610] sm:$0xff]  ;;  %v477_v51 = vld [vmem:[%s4972_s6 + $0x618] sm:$0xff] }
  0x28   : > { %470 = vst [vmem:[%s4980_s7 + $0x178] sm:$0xff] %v469_v47  ;;  %472 = vst [vmem:[%s4980_s7 + $0x180] sm:$0xff] %v471_v48  ;;  %v479_v52 = vld [vmem:[%s4972_s6 + $0x620] sm:$0xff]  ;;  %v481_v53 = vld [vmem:[%s4972_s6 + $0x628] sm:$0xff] }
  0x29   : > { %474 = vst [vmem:[%s4980_s7 + $0x188] sm:$0xff] %v473_v49  ;;  %476 = vst [vmem:[%s4980_s7 + $0x190] sm:$0xff] %v475_v50  ;;  %v483_v54 = vld [vmem:[%s4972_s6 + $0x630] sm:$0xff]  ;;  %v485_v55 = vld [vmem:[%s4972_s6 + $0x638] sm:$0xff] }
  0x2a   : > { %478 = vst [vmem:[%s4980_s7 + $0x198] sm:$0xff] %v477_v51  ;;  %480 = vst [vmem:[%s4980_s7 + $0x1a0] sm:$0xff] %v479_v52  ;;  %v487_v56 = vld [vmem:[%s4972_s6 + $0x640] sm:$0xff]  ;;  %v489_v57 = vld [vmem:[%s4972_s6 + $0x648] sm:$0xff] }
  0x2b   : > { %482 = vst [vmem:[%s4980_s7 + $0x1a8] sm:$0xff] %v481_v53  ;;  %484 = vst [vmem:[%s4980_s7 + $0x1b0] sm:$0xff] %v483_v54  ;;  %v491_v58 = vld [vmem:[%s4972_s6 + $0x650] sm:$0xff]  ;;  %v493_v59 = vld [vmem:[%s4972_s6 + $0x658] sm:$0xff] }
  0x2c   : > { %486 = vst [vmem:[%s4980_s7 + $0x1b8] sm:$0xff] %v485_v55  ;;  %488 = vst [vmem:[%s4980_s7 + $0x1c0] sm:$0xff] %v487_v56  ;;  %v495_v60 = vld [vmem:[%s4972_s6 + $0x660] sm:$0xff]  ;;  %v497_v61 = vld [vmem:[%s4972_s6 + $0x668] sm:$0xff] }
  0x2d   : > { %490 = vst [vmem:[%s4980_s7 + $0x1c8] sm:$0xff] %v489_v57  ;;  %492 = vst [vmem:[%s4980_s7 + $0x1d0] sm:$0xff] %v491_v58  ;;  %v499_v62 = vld [vmem:[%s4972_s6 + $0x670] sm:$0xff]  ;;  %v501_v63 = vld [vmem:[%s4972_s6 + $0x678] sm:$0xff] }
  0x2e   : > { %494 = vst [vmem:[%s4980_s7 + $0x1d8] sm:$0xff] %v493_v59  ;;  %496 = vst [vmem:[%s4980_s7 + $0x1e0] sm:$0xff] %v495_v60  ;;  %v503_v0 = vld [vmem:[%s4972_s6 + $0x800] sm:$0xff]  ;;  %v505_v1 = vld [vmem:[%s4972_s6 + $0x808] sm:$0xff] }
  0x2f   : > { %498 = vst [vmem:[%s4980_s7 + $0x1e8] sm:$0xff] %v497_v61  ;;  %500 = vst [vmem:[%s4980_s7 + $0x1f0] sm:$0xff] %v499_v62  ;;  %v507_v2 = vld [vmem:[%s4972_s6 + $0x810] sm:$0xff]  ;;  %v509_v3 = vld [vmem:[%s4972_s6 + $0x818] sm:$0xff] }
  0x30   : > { %502 = vst [vmem:[%s4980_s7 + $0x1f8] sm:$0xff] %v501_v63  ;;  %504 = vst [vmem:[%s4980_s7 + $0x200] sm:$0xff] %v503_v0  ;;  %v511_v4 = vld [vmem:[%s4972_s6 + $0x820] sm:$0xff]  ;;  %v513_v5 = vld [vmem:[%s4972_s6 + $0x828] sm:$0xff] }
  0x31   : > { %506 = vst [vmem:[%s4980_s7 + $0x208] sm:$0xff] %v505_v1  ;;  %508 = vst [vmem:[%s4980_s7 + $0x210] sm:$0xff] %v507_v2  ;;  %v515_v6 = vld [vmem:[%s4972_s6 + $0x830] sm:$0xff]  ;;  %v517_v7 = vld [vmem:[%s4972_s6 + $0x838] sm:$0xff] }
  0x32   : > { %510 = vst [vmem:[%s4980_s7 + $0x218] sm:$0xff] %v509_v3  ;;  %512 = vst [vmem:[%s4980_s7 + $0x220] sm:$0xff] %v511_v4  ;;  %v519_v8 = vld [vmem:[%s4972_s6 + $0x840] sm:$0xff]  ;;  %v521_v9 = vld [vmem:[%s4972_s6 + $0x848] sm:$0xff] }
  0x33   : > { %514 = vst [vmem:[%s4980_s7 + $0x228] sm:$0xff] %v513_v5  ;;  %516 = vst [vmem:[%s4980_s7 + $0x230] sm:$0xff] %v515_v6  ;;  %v523_v10 = vld [vmem:[%s4972_s6 + $0x850] sm:$0xff]  ;;  %v525_v11 = vld [vmem:[%s4972_s6 + $0x858] sm:$0xff] }
  0x34   : > { %518 = vst [vmem:[%s4980_s7 + $0x238] sm:$0xff] %v517_v7  ;;  %520 = vst [vmem:[%s4980_s7 + $0x240] sm:$0xff] %v519_v8  ;;  %v527_v12 = vld [vmem:[%s4972_s6 + $0x860] sm:$0xff]  ;;  %v529_v13 = vld [vmem:[%s4972_s6 + $0x868] sm:$0xff] }
  0x35   : > { %522 = vst [vmem:[%s4980_s7 + $0x248] sm:$0xff] %v521_v9  ;;  %524 = vst [vmem:[%s4980_s7 + $0x250] sm:$0xff] %v523_v10  ;;  %v531_v14 = vld [vmem:[%s4972_s6 + $0x870] sm:$0xff]  ;;  %v533_v15 = vld [vmem:[%s4972_s6 + $0x878] sm:$0xff] }
  0x36   : > { %526 = vst [vmem:[%s4980_s7 + $0x258] sm:$0xff] %v525_v11  ;;  %528 = vst [vmem:[%s4980_s7 + $0x260] sm:$0xff] %v527_v12 }
  0x37   : > { %530 = vst [vmem:[%s4980_s7 + $0x268] sm:$0xff] %v529_v13  ;;  %532 = vst [vmem:[%s4980_s7 + $0x270] sm:$0xff] %v531_v14 }
  0x38   : > { %534 = vst [vmem:[%s4980_s7 + $0x278] sm:$0xff] %v533_v15 }
  0x39 PF: > { %p3640_p5 = scmp.ge.s32.totalorder %s4906_s20, 1  ;;  %p539_p6 = scmp.lt.s32.totalorder %s4906_s20, 5 }
  0x3b   : > { %p540_p7 = pnand %p3640_p5, %p539_p6 }
  0x3c   : > { %s546_s16 = sand.u32 (!%p540_p7), 1, %s4898_s18   ;;  %s3641_s8 = sshll.u32 (!%p540_p7), %s3633_s21, 4 }
  0x3d   : > { %543 = sbr.rel (%p540_p7) target bundleno = 1365 (0x555), region = 74  ;;  %p575_p8 = scmp.lt.s32.totalorder (!%p540_p7), %s3641_s8, 63 }
  0x3e   : > { %s4659_s29 = smul.u32 (!%p540_p7), 640, %s546_s16 }
  0x40   : > { %s5235_s16 = scalar_lea.vmem (!%p540_p7), [#allocation2], %s4659_s29 }
  0x42   : > { %v4684_v16 = vld [vmem:[%s6098_s1 + $0x78] sm:$0xff]   ;;  %v4688_v20 = vld [vmem:[%s6098_s1 + $0x70] sm:$0xff]   ;;  %v4692_v24 = vld [vmem:[%s6098_s1 + $0x68] sm:$0xff]   ;;  %vm1353_vm0 = vcmask 130048   ;;  %s6107_s8 = smov (!%p575_p8, %s3641_s8), 63  ;;  %vm3554_vm1 = vcmask 64512  }
  0x43   : > { %v4685_v17 = vld [vmem:[%s6098_s1 + $0xf8] sm:$0xff]   ;;  %4092 = vmatprep.subr.bf16.mxu0 %v4684_v16  ;;  %v4689_v21 = vld [vmem:[%s6098_s1 + $0xf0] sm:$0xff]   ;;  %v4693_v25 = vld [vmem:[%s6098_s1 + $0xe8] sm:$0xff]   ;;  %s3642_s9 = sshll.u32 %s6107_s8, 3 }
  0x44   : > { %v4686_v18 = vld [vmem:[%s6098_s1 + $0x38] sm:$0xff]   ;;  %4156 = vmatprep.subr.bf16.mxu1 %v4685_v17  ;;  %v4690_v22 = vld [vmem:[%s6098_s1 + $0x30] sm:$0xff]   ;;  %v4694_v26 = vld [vmem:[%s6098_s1 + $0x28] sm:$0xff]   ;;  %s6022_s14 = scalar_lea.vmem %s6102_s5, %s3642_s9 }
  0x45   : > { %v4687_v19 = vld [vmem:[%s6098_s1 + $0xb8] sm:$0xff]   ;;  %4093 = vmatpush3.bf16.msra.mxu0 %v4686_v18  ;;  %v4691_v23 = vld [vmem:[%s6098_s1 + $0xb0] sm:$0xff]   ;;  %v4695_v27 = vld [vmem:[%s6098_s1 + $0xa8] sm:$0xff]  }
  0x46   : > { %4157 = vmatpush3.bf16.msra.mxu1 %v4687_v19  ;;  %4094 = vmatprep.subr.bf16.mxu0 %v4688_v20  ;;  %v4696_v28 = vld [vmem:[%s6098_s1 + $0x60] sm:$0xff]   ;;  %v4700_v32 = vld [vmem:[%s6098_s1 + $0x58] sm:$0xff]   ;;  %v4704_v36 = vld [vmem:[%s6098_s1 + $0x50] sm:$0xff]  }
  0x47   : > { %4158 = vmatprep.subr.bf16.mxu1 %v4689_v21  ;;  %v4697_v29 = vld [vmem:[%s6098_s1 + $0xe0] sm:$0xff]   ;;  %v4701_v33 = vld [vmem:[%s6098_s1 + $0xd8] sm:$0xff]   ;;  %v4705_v37 = vld [vmem:[%s6098_s1 + $0xd0] sm:$0xff]   ;;  %v630_v21 = vlaneseq }
  0x48   : > { %v4698_v30 = vld [vmem:[%s6098_s1 + $0x20] sm:$0xff]   ;;  %v4702_v34 = vld [vmem:[%s6098_s1 + $0x18] sm:$0xff]   ;;  %v4706_v38 = vld [vmem:[%s6098_s1 + $0x10] sm:$0xff]  }
  0x49   : > { %4095 = vmatpush3.bf16.msra.mxu0 %v4690_v22  ;;  %v4699_v31 = vld [vmem:[%s6098_s1 + $0xa0] sm:$0xff]   ;;  %v4703_v35 = vld [vmem:[%s6098_s1 + $0x98] sm:$0xff]   ;;  %v4707_v39 = vld [vmem:[%s6098_s1 + $0x90] sm:$0xff]   ;;  %v631_v22 = vshrl.u32 %v630_v21, 7 }
  0x4a   : > { %4159 = vmatpush3.bf16.msra.mxu1 %v4691_v23  ;;  %4096 = vmatprep.subr.bf16.mxu0 %v4692_v24  ;;  %v4708_v40 = vld [vmem:[%s6098_s1 + $0x48] sm:$0xff]   ;;  %v4712_v44 = vld [vmem:[%s6098_s1 + $0x40] sm:$0xff]   ;;  %v4722_v52 = vld [vmem:[%s5235_s16 + $0x14] ss:$8 sps:$4 sm:$0xff]  }
  0x4b   : > { %4160 = vmatprep.subr.bf16.mxu1 %v4693_v25  ;;  %v4709_v41 = vld [vmem:[%s6098_s1 + $0xc8] sm:$0xff]   ;;  %v4713_v45 = vld [vmem:[%s6098_s1 + $0xc0] sm:$0xff]   ;;  %v4724_v53 = vld [vmem:[%s5235_s16 + $0x94] ss:$8 sps:$4 sm:$0xff]   ;;  %v5287_v24 = vsub.s32 0, %v631_v22 }
  0x4c   : > { %v4710_v42 = vld [vmem:[%s6098_s1 + $0x8] sm:$0xff]   ;;  %v4714_v46 = vld [vmem:[%s6098_s1] sm:$0xff]   ;;  %v4726_v54 = vld [vmem:[%s5235_s16 + $0x10] ss:$8 sps:$4 sm:$0xff]  }
  0x4d   : > { %4097 = vmatpush3.bf16.msra.mxu0 %v4694_v26  ;;  %v4711_v43 = vld [vmem:[%s6098_s1 + $0x88] sm:$0xff]   ;;  %v4715_v47 = vld [vmem:[%s6098_s1 + $0x80] sm:$0xff]   ;;  %v4727_v55 = vld [vmem:[%s5235_s16 + $0x90] ss:$8 sps:$4 sm:$0xff]  }
  0x4e   : > { %4161 = vmatpush3.bf16.msra.mxu1 %v4695_v27  ;;  %4098 = vmatprep.subr.bf16.mxu0 %v4696_v28  ;;  %v4716_v48 = vld [vmem:[%s5235_s16] ss:$8 sps:$4 sm:$0xff]   ;;  %v4718_v49 = vld [vmem:[%s5235_s16 + $0x4] ss:$8 sps:$4 sm:$0xff]   ;;  %v4734_v60 = vld [vmem:[%s5235_s16 + $0x34] ss:$8 sps:$4 sm:$0xff]  }
  0x4f   : > { %4162 = vmatprep.subr.bf16.mxu1 %v4697_v29  ;;  %v4719_v50 = vld [vmem:[%s5235_s16 + $0x80] ss:$8 sps:$4 sm:$0xff]   ;;  %v4721_v51 = vld [vmem:[%s5235_s16 + $0x84] ss:$8 sps:$4 sm:$0xff]   ;;  %842 = vmatprep.mubr.bf16.mxu0 %v4718_v49  ;;  %v4736_v61 = vld [vmem:[%s5235_s16 + $0xb4] ss:$8 sps:$4 sm:$0xff]  }
  0x50   : > { %1229 = vmatprep.mubr.bf16.mxu1 %v4721_v51  ;;  %v4728_v56 = vld [vmem:[%s5235_s16 + $0x24] ss:$8 sps:$4 sm:$0xff]   ;;  %v4732_v58 = vld [vmem:[%s5235_s16 + $0x20] ss:$8 sps:$4 sm:$0xff]   ;;  %v3757_v62 = vld [vmem:[%s6100_s3 + $0x18] sm:$0xff] }
  0x51   : > { %4099 = vmatpush3.bf16.msra.mxu0 %v4698_v30  ;;  %v4730_v57 = vld [vmem:[%s5235_s16 + $0xa4] ss:$8 sps:$4 sm:$0xff]   ;;  %v4733_v59 = vld [vmem:[%s5235_s16 + $0xa0] ss:$8 sps:$4 sm:$0xff]   ;;  %v4738_v63 = vld [vmem:[%s5235_s16 + $0x30] ss:$8 sps:$4 sm:$0xff]  }
  0x52   : > { %4163 = vmatpush3.bf16.msra.mxu1 %v4699_v31  ;;  %4100 = vmatprep.subr.bf16.mxu0 %v4700_v32  ;;  %v4739_v0 = vld [vmem:[%s5235_s16 + $0xb0] ss:$8 sps:$4 sm:$0xff]   ;;  %v4740_v1 = vld [vmem:[%s5235_s16 + $0x44] ss:$8 sps:$4 sm:$0xff]   ;;  %v4744_v3 = vld [vmem:[%s5235_s16 + $0x40] ss:$8 sps:$4 sm:$0xff]  }
  0x53   : > { %4164 = vmatprep.subr.bf16.mxu1 %v4701_v33  ;;  %v4742_v2 = vld [vmem:[%s5235_s16 + $0xc4] ss:$8 sps:$4 sm:$0xff]   ;;  %v4745_v4 = vld [vmem:[%s5235_s16 + $0xc0] ss:$8 sps:$4 sm:$0xff]   ;;  %v4746_v5 = vld [vmem:[%s5235_s16 + $0x54] ss:$8 sps:$4 sm:$0xff]  }
  0x54   : > { %v4748_v6 = vld [vmem:[%s5235_s16 + $0xd4] ss:$8 sps:$4 sm:$0xff]   ;;  %v4750_v7 = vld [vmem:[%s5235_s16 + $0x50] ss:$8 sps:$4 sm:$0xff]   ;;  %v4752_v9 = vld [vmem:[%s5235_s16 + $0x64] ss:$8 sps:$4 sm:$0xff]  }
  0x55   : > { %4101 = vmatpush3.bf16.msra.mxu0 %v4702_v34  ;;  %v4751_v8 = vld [vmem:[%s5235_s16 + $0xd0] ss:$8 sps:$4 sm:$0xff]   ;;  %v4754_v10 = vld [vmem:[%s5235_s16 + $0xe4] ss:$8 sps:$4 sm:$0xff]   ;;  %v4756_v11 = vld [vmem:[%s5235_s16 + $0x60] ss:$8 sps:$4 sm:$0xff]  }
  0x56   : > { %4165 = vmatpush3.bf16.msra.mxu1 %v4703_v35  ;;  %4102 = vmatprep.subr.bf16.mxu0 %v4704_v36  ;;  %v4757_v12 = vld [vmem:[%s5235_s16 + $0xe0] ss:$8 sps:$4 sm:$0xff]   ;;  %v4758_v13 = vld [vmem:[%s5235_s16 + $0x74] ss:$8 sps:$4 sm:$0xff]   ;;  %v4762_v15 = vld [vmem:[%s5235_s16 + $0x70] ss:$8 sps:$4 sm:$0xff]  }
  0x57   : > { %4166 = vmatprep.subr.bf16.mxu1 %v4705_v37  ;;  %v4760_v14 = vld [vmem:[%s5235_s16 + $0xf4] ss:$8 sps:$4 sm:$0xff]   ;;  %v4763_v16 = vld [vmem:[%s5235_s16 + $0xf0] ss:$8 sps:$4 sm:$0xff]   ;;  %v964_v17 = vld [vmem:[%s6100_s3 + $0x8] sm:$0xff]  ;;  %v5295_v30 = vsub.s32 1, %v631_v22 }
  0x58   : > { %v3756_v18 = vld [vmem:[%s6100_s3 + $0x10] sm:$0xff]  ;;  %v963_v19 = vld [vmem:[%s6100_s3] sm:$0xff]  ;;  %v4764_v20 = vld [vmem:[%s6098_s1 + $0x178] sm:$0xff]   ;;  %v5300_v34 = vsub.s32 2, %v631_v22 }
  0x59   : > { %4103 = vmatpush3.bf16.msra.mxu0 %v4706_v38  ;;  %v629_v23 = vld [vmem:[%s6099_s2] sm:$0x7]  ;;  %v3723_v25 = vld [vmem:[%s6099_s2 + $0x4] sm:$0x7] }
  0x5a   : > { %4167 = vmatpush3.bf16.msra.mxu1 %v4707_v39  ;;  %4104 = vmatprep.subr.bf16.mxu0 %v4708_v40  ;;  %v5293_v28 = vrot.slane %v629_v23, %v5287_v24  ;;  %v5298_v31 = vrot.slane %v3723_v25, %v5287_v24  ;;  %v5304_v38 = vrot.slane %v629_v23, %v5295_v30 }
  0x5b   : > { %4168 = vmatprep.subr.bf16.mxu1 %v4709_v41  ;;  %v5308_v41 = vrot.slane %v3723_v25, %v5295_v30  ;;  %v5314_v49 = vrot.slane %v3723_v25, %v5300_v34 }
  0x5d   : > { %4105 = vmatpush3.bf16.msra.mxu0 %v4710_v42 }
  0x5e   : > { %4169 = vmatpush3.bf16.msra.mxu1 %v4711_v43  ;;  %4106 = vmatprep.subr.bf16.mxu0 %v4712_v44  ;;  %v5311_v44 = vrot.slane %v629_v23, %v5300_v34 }
  0x5f   : > { %4170 = vmatprep.subr.bf16.mxu1 %v4713_v45 }
  0x61   : > { %4107 = vmatpush3.bf16.msra.mxu0 %v4714_v46 }
  0x62   : > { %4171 = vmatpush3.bf16.msra.mxu1 %v4715_v47  ;;  %4502 = vmatprep.subr.mxu0 %v3757_v62 }
  0x63   : > { %4530 = vmatprep.subr.mxu1 %v964_v17 }
  0x64   : > { %843 = vmatmul.mubr.bf16.vlgmr.msra.gmra.mxu0 %v4716_v48 }
  0x65   : > { %1230 = vmatmul.mubr.bf16.vlgmr.msra.gmra.mxu1 %v4719_v50  ;;  %850 = vmatprep.mubr.bf16.mxu0 %v4722_v52 }
  0x66   : > { %1237 = vmatprep.mubr.bf16.mxu1 %v4724_v53  ;;  %4503 = vmatpush3.msra.mxu0 %v3757_v62 }
  0x67   : > { %4531 = vmatpush3.msra.mxu1 %v964_v17  ;;  %4504 = vmatprep.subr.mxu0 %v3756_v18 }
  0x68   : > { %4532 = vmatprep.subr.mxu1 %v963_v19  ;;  %4505 = vmatpush3.msra.mxu0 %v3756_v18 }
  0x69   : > { %4533 = vmatpush3.msra.mxu1 %v963_v19  ;;  %4256 = vmatprep.subr.bf16.mxu0 %v4764_v20 }
  0x6a   : > { %4642 = vmatprep.subr.bf16.mxu1 %v4764_v20 }
  0x6c   : > { %851 = vmatmul.mubr.bf16.gmra.mxu0 %v4726_v54 }
  0x6d   : > { %1238 = vmatmul.mubr.bf16.gmra.mxu1 %v4727_v55  ;;  %858 = vmatprep.mubr.bf16.mxu0 %v4728_v56 }
  0x6e   : > { %1245 = vmatprep.mubr.bf16.mxu1 %v4730_v57 }
  0x74   : > { %859 = vmatmul.mubr.bf16.gmra.mxu0 %v4732_v58 }
  0x75   : > { %1246 = vmatmul.mubr.bf16.gmra.mxu1 %v4733_v59  ;;  %866 = vmatprep.mubr.bf16.mxu0 %v4734_v60 }
  0x76   : > { %1253 = vmatprep.mubr.bf16.mxu1 %v4736_v61 }
  0x7c   : > { %867 = vmatmul.mubr.bf16.gmra.mxu0 %v4738_v63 }
  0x7d   : > { %1254 = vmatmul.mubr.bf16.gmra.mxu1 %v4739_v0  ;;  %874 = vmatprep.mubr.bf16.mxu0 %v4740_v1 }
  0x7e   : > { %1261 = vmatprep.mubr.bf16.mxu1 %v4742_v2 }
  0x84   : > { %875 = vmatmul.mubr.bf16.gmra.mxu0 %v4744_v3 }
  0x85   : > { %1262 = vmatmul.mubr.bf16.gmra.mxu1 %v4745_v4  ;;  %882 = vmatprep.mubr.bf16.mxu0 %v4746_v5 }
  0x86   : > { %1269 = vmatprep.mubr.bf16.mxu1 %v4748_v6 }
  0x8c   : > { %883 = vmatmul.mubr.bf16.gmra.mxu0 %v4750_v7 }
  0x8d   : > { %1270 = vmatmul.mubr.bf16.gmra.mxu1 %v4751_v8  ;;  %890 = vmatprep.mubr.bf16.mxu0 %v4752_v9 }
  0x8e   : > { %1277 = vmatprep.mubr.bf16.mxu1 %v4754_v10 }
  0x94   : > { %891 = vmatmul.mubr.bf16.gmra.mxu0 %v4756_v11  ;;  %v4765_v11 = vld [vmem:[%s6098_s1 + $0x138] sm:$0xff]  }
  0x95   : > { %1278 = vmatmul.mubr.bf16.gmra.mxu1 %v4757_v12  ;;  %898 = vmatprep.mubr.bf16.mxu0 %v4758_v13 }
  0x96   : > { %1285 = vmatprep.mubr.bf16.mxu1 %v4760_v14 }
  0x9c   : > { %899 = vmatmul.mubr.bf16.gmra.mxu0 %v4762_v15 }
  0x9d   : > { %1286 = vmatmul.mubr.bf16.gmra.mxu1 %v4763_v16  ;;  %v4766_v16 = vld [vmem:[%s6098_s1 + $0x170] sm:$0xff]  }
 0x124   : > { %v4108_v26 = vpop.f32.mrf.mxu0 }
 0x125   : > { %v4172_v27 = vpop.f32.mrf.mxu1 }
 0x126   : > { %v4109_v29 = vpop.f32.mrf.mxu0 }
 0x127   : > { %v4110_v32 = vadd.f32 %v4109_v29, %v4108_v26  ;;  %v4173_v33 = vpop.f32.mrf.mxu1  ;;  %v4767_v29 = vld [vmem:[%s6098_s1 + $0x130] sm:$0xff]  }
 0x128   : > { %v4174_v35 = vadd.f32 %v4173_v33, %v4172_v27  ;;  %v4111_v36 = vpop.f32.mrf.mxu0 }
 0x129   : > { %v845_v37 = vadd.f32 %v4110_v32, %v5293_v28  ;;  %v4175_v39 = vpop.f32.mrf.mxu1 }
 0x12a   : > { %v1232_v40 = vadd.f32 %v4174_v35, %v5298_v31  ;;  %v4112_v42 = vpop.f32.mrf.mxu0 }
 0x12b   : > { %v907_v43 = vmax.f32 %v845_v37, 0.0  ;;  %v4113_v45 = vadd.f32 %v4112_v42, %v4111_v36  ;;  %v4176_v46 = vpop.f32.mrf.mxu1  ;;  %v4768_v37 = vld [vmem:[%s6098_s1 + $0x168] sm:$0xff]  }
 0x12c   : > { %v1294_v47 = vmax.f32 %v1232_v40, 0.0  ;;  %v4177_v48 = vadd.f32 %v4176_v46, %v4175_v39  ;;  %v4114_v50 = vpop.f32.mrf.mxu0 }
 0x12d   : > { %v927_v51 = vmul.f32 %v5304_v38, %v907_v43  ;;  %v848_v52 = vadd.f32 %v4113_v45, %v5293_v28  ;;  %v4178_v53 = vpop.f32.mrf.mxu1 }
 0x12e   : > { %v1314_v54 = vmul.f32 %v5308_v41, %v1294_v47  ;;  %v1235_v55 = vadd.f32 %v4177_v48, %v5298_v31  ;;  %v4115_v56 = vpop.f32.mrf.mxu0 }
 0x12f   : > { %v947_v57 = vadd.f32 %v5311_v44, %v927_v51  ;;  %v908_v58 = vmax.f32 %v848_v52, 0.0  ;;  %v4116_v59 = vadd.f32 %v4115_v56, %v4114_v50  ;;  %v4179_v60 = vpop.f32.mrf.mxu1  ;;  %v4769_v52 = vld [vmem:[%s6098_s1 + $0x128] sm:$0xff]  }
 0x130   : > { %v1295_v61 = vmax.f32 %v1235_v55, 0.0  ;;  %v4180_v62 = vadd.f32 %v4179_v60, %v4178_v53  ;;  %v4117_v63 = vpop.f32.mrf.mxu0  ;;  %v1334_v0 = vadd.f32 %v5314_v49, %v1314_v54 }
 0x131   : > { %v928_v1 = vmul.f32 %v5304_v38, %v908_v58  ;;  %v853_v2 = vadd.f32 %v4116_v59, %v5293_v28  ;;  %v4181_v3 = vpop.f32.mrf.mxu1  ;;  %4534 = vmatprep.mubr.msk.f32.mxu1 %vm1353_vm0, %v947_v57  ;;  %v4770_v57 = vld [vmem:[%s6098_s1 + $0x160] sm:$0xff]  }
 0x132   : > { %v1315_v4 = vmul.f32 %v5308_v41, %v1295_v61  ;;  %v1240_v5 = vadd.f32 %v4180_v62, %v5298_v31  ;;  %4506 = vmatprep.mubr.msk.f32.mxu0 %vm1353_vm0, %v1334_v0  ;;  %v4118_v6 = vpop.f32.mrf.mxu0 }
 0x133   : > { %v948_v7 = vadd.f32 %v5311_v44, %v928_v1  ;;  %v909_v8 = vmax.f32 %v853_v2, 0.0  ;;  %v4119_v9 = vadd.f32 %v4118_v6, %v4117_v63  ;;  %v4182_v10 = vpop.f32.mrf.mxu1 }
 0x134   : > { %v1335_v12 = vadd.f32 %v5314_v49, %v1315_v4  ;;  %v1296_v13 = vmax.f32 %v1240_v5, 0.0  ;;  %v4183_v14 = vadd.f32 %v4182_v10, %v4181_v3  ;;  %v4120_v15 = vpop.f32.mrf.mxu0  ;;  %v4771_v4 = vld [vmem:[%s6098_s1 + $0x120] sm:$0xff]  }
 0x135   : > { %v929_v17 = vmul.f32 %v5304_v38, %v909_v8  ;;  %v856_v18 = vadd.f32 %v4119_v9, %v5293_v28  ;;  %v4184_v19 = vpop.f32.mrf.mxu1  ;;  %4535 = vmatmul.mubr.msk.f32.vlgmr.msra.gmra.mxu1 %vm1353_vm0, %v948_v7  ;;  %v4772_v9 = vld [vmem:[%s6098_s1 + $0x158] sm:$0xff]  }
 0x136   : > { %v1316_v20 = vmul.f32 %v5308_v41, %v1296_v13  ;;  %v1243_v21 = vadd.f32 %v4183_v14, %v5298_v31  ;;  %4507 = vmatmul.mubr.msk.f32.vlgmr.msra.gmra.mxu0 %vm1353_vm0, %v1335_v12  ;;  %v4121_v22 = vpop.f32.mrf.mxu0  ;;  %4650 = vmatpush3.bf16.msra.mxu1 %v4765_v11 }
 0x137   : > { %v949_v23 = vadd.f32 %v5311_v44, %v929_v17  ;;  %v910_v25 = vmax.f32 %v856_v18, 0.0  ;;  %v4122_v26 = vadd.f32 %v4121_v22, %v4120_v15  ;;  %v4185_v27 = vpop.f32.mrf.mxu1  ;;  %4257 = vmatpush3.bf16.msra.mxu0 %v4765_v11  ;;  %4643 = vmatprep.subr.bf16.mxu1 %v4766_v16 }
 0x138   : > { %v1297_v32 = vmax.f32 %v1243_v21, 0.0  ;;  %v4186_v33 = vadd.f32 %v4185_v27, %v4184_v19  ;;  %v4123_v35 = vpop.f32.mrf.mxu0  ;;  %v1336_v36 = vadd.f32 %v5314_v49, %v1316_v20  ;;  %4258 = vmatprep.subr.bf16.mxu0 %v4766_v16  ;;  %v4773_v20 = vld [vmem:[%s6098_s1 + $0x118] sm:$0xff]  }
 0x139   : > { %v930_v39 = vmul.f32 %v5304_v38, %v910_v25  ;;  %v861_v40 = vadd.f32 %v4122_v26, %v5293_v28  ;;  %v4187_v42 = vpop.f32.mrf.mxu1  ;;  %4537 = vmatprep.mubr.msk.f32.mxu1 %vm1353_vm0, %v949_v23  ;;  %v4774_v26 = vld [vmem:[%s6098_s1 + $0x150] sm:$0xff]  }
 0x13a   : > { %v1317_v43 = vmul.f32 %v5308_v41, %v1297_v32  ;;  %v1248_v45 = vadd.f32 %v4186_v33, %v5298_v31  ;;  %4509 = vmatprep.mubr.msk.f32.mxu0 %vm1353_vm0, %v1336_v36  ;;  %v4124_v46 = vpop.f32.mrf.mxu0  ;;  %4651 = vmatpush3.bf16.msra.mxu1 %v4767_v29 }
 0x13b   : > { %v911_v47 = vmax.f32 %v861_v40, 0.0  ;;  %v4125_v48 = vadd.f32 %v4124_v46, %v4123_v35  ;;  %v4188_v50 = vpop.f32.mrf.mxu1  ;;  %v950_v51 = vadd.f32 %v5311_v44, %v930_v39  ;;  %4259 = vmatpush3.bf16.msra.mxu0 %v4767_v29  ;;  %4644 = vmatprep.subr.bf16.mxu1 %v4768_v37 }
 0x13c   : > { %v1298_v53 = vmax.f32 %v1248_v45, 0.0  ;;  %v4189_v54 = vadd.f32 %v4188_v50, %v4187_v42  ;;  %v4126_v55 = vpop.f32.mrf.mxu0  ;;  %v1337_v56 = vadd.f32 %v5314_v49, %v1317_v43  ;;  %4260 = vmatprep.subr.bf16.mxu0 %v4768_v37  ;;  %v4775_v43 = vld [vmem:[%s6098_s1 + $0x110] sm:$0xff]   ;;  %v4776_v50 = vld [vmem:[%s6098_s1 + $0x148] sm:$0xff]  }
 0x13d   : > { %v931_v58 = vmul.f32 %v5304_v38, %v911_v47  ;;  %v864_v59 = vadd.f32 %v4125_v48, %v5293_v28  ;;  %v4190_v60 = vpop.f32.mrf.mxu1  ;;  %4538 = vmatmul.mubr.msk.f32.gmra.mxu1 %vm1353_vm0, %v950_v51 }
 0x13e   : > { %v1318_v61 = vmul.f32 %v5308_v41, %v1298_v53  ;;  %v1251_v62 = vadd.f32 %v4189_v54, %v5298_v31  ;;  %4510 = vmatmul.mubr.msk.f32.gmra.mxu0 %vm1353_vm0, %v1337_v56  ;;  %v4127_v63 = vpop.f32.mrf.mxu0  ;;  %4652 = vmatpush3.bf16.msra.mxu1 %v4769_v52 }
 0x13f   : > { %v951_v0 = vadd.f32 %v5311_v44, %v931_v58  ;;  %v912_v1 = vmax.f32 %v864_v59, 0.0  ;;  %v4128_v2 = vadd.f32 %v4127_v63, %v4126_v55  ;;  %v4191_v3 = vpop.f32.mrf.mxu1  ;;  %4261 = vmatpush3.bf16.msra.mxu0 %v4769_v52  ;;  %4645 = vmatprep.subr.bf16.mxu1 %v4770_v57 }
 0x140   : > { %v1338_v5 = vadd.f32 %v5314_v49, %v1318_v61  ;;  %v1299_v6 = vmax.f32 %v1251_v62, 0.0  ;;  %v4192_v7 = vadd.f32 %v4191_v3, %v4190_v60  ;;  %v4129_v8 = vpop.f32.mrf.mxu0  ;;  %4262 = vmatprep.subr.bf16.mxu0 %v4770_v57  ;;  %v4777_v61 = vld [vmem:[%s6098_s1 + $0x108] sm:$0xff]  }
 0x141   : > { %v932_v10 = vmul.f32 %v5304_v38, %v912_v1  ;;  %v869_v11 = vadd.f32 %v4128_v2, %v5293_v28  ;;  %v4193_v12 = vpop.f32.mrf.mxu1  ;;  %4540 = vmatprep.mubr.msk.f32.mxu1 %vm1353_vm0, %v951_v0  ;;  %v4778_v2 = vld [vmem:[%s6098_s1 + $0x140] sm:$0xff]  }
 0x142   : > { %v1319_v13 = vmul.f32 %v5308_v41, %v1299_v6  ;;  %v1256_v14 = vadd.f32 %v4192_v7, %v5298_v31  ;;  %4512 = vmatprep.mubr.msk.f32.mxu0 %vm1353_vm0, %v1338_v5  ;;  %v4130_v15 = vpop.f32.mrf.mxu0  ;;  %4653 = vmatpush3.bf16.msra.mxu1 %v4771_v4 }
 0x143   : > { %v952_v16 = vadd.f32 %v5311_v44, %v932_v10  ;;  %v913_v17 = vmax.f32 %v869_v11, 0.0  ;;  %v4131_v18 = vadd.f32 %v4130_v15, %v4129_v8  ;;  %v4194_v19 = vpop.f32.mrf.mxu1  ;;  %4263 = vmatpush3.bf16.msra.mxu0 %v4771_v4  ;;  %4646 = vmatprep.subr.bf16.mxu1 %v4772_v9 }
 0x144   : > { %v1339_v21 = vadd.f32 %v5314_v49, %v1319_v13  ;;  %v1300_v22 = vmax.f32 %v1256_v14, 0.0  ;;  %v4195_v23 = vadd.f32 %v4194_v19, %v4193_v12  ;;  %v4132_v25 = vpop.f32.mrf.mxu0  ;;  %4264 = vmatprep.subr.bf16.mxu0 %v4772_v9  ;;  %v4779_v13 = vld [vmem:[%s6098_s1 + $0x100] sm:$0xff]  }
 0x145   : > { %v933_v27 = vmul.f32 %v5304_v38, %v913_v17  ;;  %v872_v29 = vadd.f32 %v4131_v18, %v5293_v28  ;;  %v4196_v32 = vpop.f32.mrf.mxu1  ;;  %4541 = vmatmul.mubr.msk.f32.gmra.mxu1 %vm1353_vm0, %v952_v16 }
 0x146   : > { %v1320_v33 = vmul.f32 %v5308_v41, %v1300_v22  ;;  %v1259_v35 = vadd.f32 %v4195_v23, %v5298_v31  ;;  %4513 = vmatmul.mubr.msk.f32.gmra.mxu0 %vm1353_vm0, %v1339_v21  ;;  %v4133_v36 = vpop.f32.mrf.mxu0  ;;  %4654 = vmatpush3.bf16.msra.mxu1 %v4773_v20 }
 0x147   : > { %v953_v37 = vadd.f32 %v5311_v44, %v933_v27  ;;  %v914_v39 = vmax.f32 %v872_v29, 0.0  ;;  %v4134_v40 = vadd.f32 %v4133_v36, %v4132_v25  ;;  %v4197_v42 = vpop.f32.mrf.mxu1  ;;  %4265 = vmatpush3.bf16.msra.mxu0 %v4773_v20  ;;  %4647 = vmatprep.subr.bf16.mxu1 %v4774_v26 }
 0x148   : > { %v1340_v45 = vadd.f32 %v5314_v49, %v1320_v33  ;;  %v1301_v46 = vmax.f32 %v1259_v35, 0.0  ;;  %v4198_v47 = vadd.f32 %v4197_v42, %v4196_v32  ;;  %v4135_v48 = vpop.f32.mrf.mxu0  ;;  %4266 = vmatprep.subr.bf16.mxu0 %v4774_v26 }
 0x149   : > { %v934_v51 = vmul.f32 %v5304_v38, %v914_v39  ;;  %v877_v52 = vadd.f32 %v4134_v40, %v5293_v28  ;;  %v4199_v53 = vpop.f32.mrf.mxu1  ;;  %4543 = vmatprep.mubr.msk.f32.mxu1 %vm1353_vm0, %v953_v37 }
 0x14a   : > { %v1321_v54 = vmul.f32 %v5308_v41, %v1301_v46  ;;  %v1264_v55 = vadd.f32 %v4198_v47, %v5298_v31  ;;  %4515 = vmatprep.mubr.msk.f32.mxu0 %vm1353_vm0, %v1340_v45  ;;  %v4136_v56 = vpop.f32.mrf.mxu0  ;;  %4655 = vmatpush3.bf16.msra.mxu1 %v4775_v43 }
 0x14b   : > { %v954_v57 = vadd.f32 %v5311_v44, %v934_v51  ;;  %v915_v58 = vmax.f32 %v877_v52, 0.0  ;;  %v4137_v59 = vadd.f32 %v4136_v56, %v4135_v48  ;;  %v4200_v60 = vpop.f32.mrf.mxu1  ;;  %4267 = vmatpush3.bf16.msra.mxu0 %v4775_v43  ;;  %4648 = vmatprep.subr.bf16.mxu1 %v4776_v50 }
 0x14c   : > { %v1341_v62 = vadd.f32 %v5314_v49, %v1321_v54  ;;  %v1302_v63 = vmax.f32 %v1264_v55, 0.0  ;;  %v4201_v0 = vadd.f32 %v4200_v60, %v4199_v53  ;;  %v4138_v1 = vpop.f32.mrf.mxu0  ;;  %4268 = vmatprep.subr.bf16.mxu0 %v4776_v50 }
 0x14d   : > { %v935_v3 = vmul.f32 %v5304_v38, %v915_v58  ;;  %v880_v4 = vadd.f32 %v4137_v59, %v5293_v28  ;;  %v4202_v5 = vpop.f32.mrf.mxu1  ;;  %4544 = vmatmul.mubr.msk.f32.gmra.mxu1 %vm1353_vm0, %v954_v57 }
 0x14e   : > { %v1322_v6 = vmul.f32 %v5308_v41, %v1302_v63  ;;  %v1267_v7 = vadd.f32 %v4201_v0, %v5298_v31  ;;  %4516 = vmatmul.mubr.msk.f32.gmra.mxu0 %vm1353_vm0, %v1341_v62  ;;  %v4139_v8 = vpop.f32.mrf.mxu0  ;;  %4656 = vmatpush3.bf16.msra.mxu1 %v4777_v61 }
 0x14f   : > { %v955_v9 = vadd.f32 %v5311_v44, %v935_v3  ;;  %v916_v10 = vmax.f32 %v880_v4, 0.0  ;;  %v4140_v11 = vadd.f32 %v4139_v8, %v4138_v1  ;;  %v4203_v12 = vpop.f32.mrf.mxu1  ;;  %4269 = vmatpush3.bf16.msra.mxu0 %v4777_v61  ;;  %4649 = vmatprep.subr.bf16.mxu1 %v4778_v2 }
 0x150   : > { %v1342_v14 = vadd.f32 %v5314_v49, %v1322_v6  ;;  %v1303_v15 = vmax.f32 %v1267_v7, 0.0  ;;  %v4204_v16 = vadd.f32 %v4203_v12, %v4202_v5  ;;  %v4141_v17 = vpop.f32.mrf.mxu0  ;;  %4270 = vmatprep.subr.bf16.mxu0 %v4778_v2 }
 0x151   : > { %v936_v18 = vmul.f32 %v5304_v38, %v916_v10  ;;  %v885_v19 = vadd.f32 %v4140_v11, %v5293_v28  ;;  %v4205_v20 = vpop.f32.mrf.mxu1  ;;  %4546 = vmatprep.mubr.msk.f32.mxu1 %vm1353_vm0, %v955_v9 }
 0x152   : > { %v1323_v21 = vmul.f32 %v5308_v41, %v1303_v15  ;;  %v1272_v22 = vadd.f32 %v4204_v16, %v5298_v31  ;;  %4518 = vmatprep.mubr.msk.f32.mxu0 %vm1353_vm0, %v1342_v14  ;;  %v4142_v23 = vpop.f32.mrf.mxu0  ;;  %4657 = vmatpush3.bf16.msra.mxu1 %v4779_v13 }
 0x153   : > { %v956_v25 = vadd.f32 %v5311_v44, %v936_v18  ;;  %v917_v26 = vmax.f32 %v885_v19, 0.0  ;;  %v4143_v27 = vadd.f32 %v4142_v23, %v4141_v17  ;;  %v4206_v29 = vpop.f32.mrf.mxu1  ;;  %4271 = vmatpush3.bf16.msra.mxu0 %v4779_v13 }
 0x154   : > { %v1343_v32 = vadd.f32 %v5314_v49, %v1323_v21  ;;  %v1304_v33 = vmax.f32 %v1272_v22, 0.0  ;;  %v4207_v35 = vadd.f32 %v4206_v29, %v4205_v20  ;;  %v4144_v36 = vpop.f32.mrf.mxu0 }
 0x155   : > { %v937_v37 = vmul.f32 %v5304_v38, %v917_v26  ;;  %v888_v39 = vadd.f32 %v4143_v27, %v5293_v28  ;;  %v4208_v40 = vpop.f32.mrf.mxu1  ;;  %4547 = vmatmul.mubr.msk.f32.gmra.mxu1 %vm1353_vm0, %v956_v25 }
 0x156   : > { %v1324_v42 = vmul.f32 %v5308_v41, %v1304_v33  ;;  %v1275_v43 = vadd.f32 %v4207_v35, %v5298_v31  ;;  %4519 = vmatmul.mubr.msk.f32.gmra.mxu0 %vm1353_vm0, %v1343_v32  ;;  %v4145_v45 = vpop.f32.mrf.mxu0 }
 0x157   : > { %v957_v46 = vadd.f32 %v5311_v44, %v937_v37  ;;  %v918_v47 = vmax.f32 %v888_v39, 0.0  ;;  %v4146_v48 = vadd.f32 %v4145_v45, %v4144_v36  ;;  %v4209_v50 = vpop.f32.mrf.mxu1 }
 0x158   : > { %v1344_v51 = vadd.f32 %v5314_v49, %v1324_v42  ;;  %v1305_v52 = vmax.f32 %v1275_v43, 0.0  ;;  %v4210_v53 = vadd.f32 %v4209_v50, %v4208_v40  ;;  %v4147_v54 = vpop.f32.mrf.mxu0 }
 0x159   : > { %v938_v55 = vmul.f32 %v5304_v38, %v918_v47  ;;  %v893_v56 = vadd.f32 %v4146_v48, %v5293_v28  ;;  %v4211_v57 = vpop.f32.mrf.mxu1  ;;  %4549 = vmatprep.mubr.msk.f32.mxu1 %vm1353_vm0, %v957_v46 }
 0x15a   : > { %v1325_v58 = vmul.f32 %v5308_v41, %v1305_v52  ;;  %v1280_v59 = vadd.f32 %v4210_v53, %v5298_v31  ;;  %4521 = vmatprep.mubr.msk.f32.mxu0 %vm1353_vm0, %v1344_v51  ;;  %v4148_v60 = vpop.f32.mrf.mxu0  ;;  %v4782_v51 = vld [vmem:[%s5235_s16 + $0x104] ss:$8 sps:$4 sm:$0xff]   ;;  %v4795_v53 = vld [vmem:[%s5235_s16 + $0x160] ss:$8 sps:$4 sm:$0xff]  }
 0x15b   : > { %v958_v61 = vadd.f32 %v5311_v44, %v938_v55  ;;  %v919_v62 = vmax.f32 %v893_v56, 0.0  ;;  %v4149_v63 = vadd.f32 %v4148_v60, %v4147_v54  ;;  %v4212_v0 = vpop.f32.mrf.mxu1  ;;  %v4783_v54 = vld [vmem:[%s5235_s16 + $0x114] ss:$8 sps:$4 sm:$0xff]   ;;  %v4786_v55 = vld [vmem:[%s5235_s16 + $0x124] ss:$8 sps:$4 sm:$0xff]  }
 0x15c   : > { %v1345_v1 = vadd.f32 %v5314_v49, %v1325_v58  ;;  %v1306_v2 = vmax.f32 %v1280_v59, 0.0  ;;  %v4213_v3 = vadd.f32 %v4212_v0, %v4211_v57  ;;  %v4150_v4 = vpop.f32.mrf.mxu0  ;;  %v4788_v56 = vld [vmem:[%s5235_s16 + $0x120] ss:$8 sps:$4 sm:$0xff]   ;;  %v4789_v57 = vld [vmem:[%s5235_s16 + $0x134] ss:$8 sps:$4 sm:$0xff]  }
 0x15d   : > { %v939_v5 = vmul.f32 %v5304_v38, %v919_v62  ;;  %v896_v6 = vadd.f32 %v4149_v63, %v5293_v28  ;;  %v4214_v7 = vpop.f32.mrf.mxu1  ;;  %4550 = vmatmul.mubr.msk.f32.gmra.mxu1 %vm1353_vm0, %v958_v61  ;;  %v4791_v58 = vld [vmem:[%s5235_s16 + $0x130] ss:$8 sps:$4 sm:$0xff]   ;;  %v4792_v59 = vld [vmem:[%s5235_s16 + $0x144] ss:$8 sps:$4 sm:$0xff]   ;;  %v4794_v60 = vld [vmem:[%s5235_s16 + $0x140] ss:$8 sps:$4 sm:$0xff]  }
 0x15e   : > { %v1326_v8 = vmul.f32 %v5308_v41, %v1306_v2  ;;  %v1283_v9 = vadd.f32 %v4213_v3, %v5298_v31  ;;  %4522 = vmatmul.mubr.msk.f32.gmra.mxu0 %vm1353_vm0, %v1345_v1  ;;  %v4151_v10 = vpop.f32.mrf.mxu0  ;;  %v4798_v61 = vld [vmem:[%s5235_s16 + $0x154] ss:$8 sps:$4 sm:$0xff]   ;;  %v4800_v62 = vld [vmem:[%s5235_s16 + $0x150] ss:$8 sps:$4 sm:$0xff]   ;;  %v3872_v63 = vld [vmem:[%s6100_s3 + $0x28] sm:$0xff] }
 0x15f   : > { %v959_v11 = vadd.f32 %v5311_v44, %v939_v5  ;;  %v920_v12 = vmax.f32 %v896_v6, 0.0  ;;  %v4152_v13 = vadd.f32 %v4151_v10, %v4150_v4  ;;  %v4215_v14 = vpop.f32.mrf.mxu1  ;;  %4558 = vmatprep.subr.mxu1 %v3872_v63  ;;  %v3871_v0 = vld [vmem:[%s6100_s3 + $0x20] sm:$0xff]  ;;  %v4804_v1 = vld [vmem:[%s6098_s1 + $0x1f8] sm:$0xff]  }
 0x160   : > { %v1346_v15 = vadd.f32 %v5314_v49, %v1326_v8  ;;  %v1307_v16 = vmax.f32 %v1283_v9, 0.0  ;;  %v4216_v17 = vadd.f32 %v4215_v14, %v4214_v7  ;;  %v4153_v18 = vpop.f32.mrf.mxu0 }
 0x161   : > { %v940_v19 = vmul.f32 %v5304_v38, %v920_v12  ;;  %v901_v20 = vadd.f32 %v4152_v13, %v5293_v28  ;;  %v4217_v21 = vpop.f32.mrf.mxu1  ;;  %4552 = vmatprep.mubr.msk.f32.mxu1 %vm1353_vm0, %v959_v11 }
 0x162   : > { %v1327_v22 = vmul.f32 %v5308_v41, %v1307_v16  ;;  %v1288_v23 = vadd.f32 %v4216_v17, %v5298_v31  ;;  %4524 = vmatprep.mubr.msk.f32.mxu0 %vm1353_vm0, %v1346_v15  ;;  %v4154_v25 = vpop.f32.mrf.mxu0 }
 0x163   : > { %v960_v26 = vadd.f32 %v5311_v44, %v940_v19  ;;  %v921_v27 = vmax.f32 %v901_v20, 0.0  ;;  %v4155_v29 = vadd.f32 %v4154_v25, %v4153_v18  ;;  %v4218_v32 = vpop.f32.mrf.mxu1 }
 0x164   : > { %v1347_v33 = vadd.f32 %v5314_v49, %v1327_v22  ;;  %v1308_v35 = vmax.f32 %v1288_v23, 0.0  ;;  %v4219_v36 = vadd.f32 %v4218_v32, %v4217_v21 }
 0x165   : > { %v941_v37 = vmul.f32 %v5304_v38, %v921_v27  ;;  %v904_v39 = vadd.f32 %v4155_v29, %v5293_v28  ;;  %4553 = vmatmul.mubr.msk.f32.gmra.mxu1 %vm1353_vm0, %v960_v26 }
 0x166   : > { %v1328_v40 = vmul.f32 %v5308_v41, %v1308_v35  ;;  %v1291_v42 = vadd.f32 %v4219_v36, %v5298_v31  ;;  %4525 = vmatmul.mubr.msk.f32.gmra.mxu0 %vm1353_vm0, %v1347_v33  ;;  %v4797_v31 = vld [vmem:[%s5235_s16 + $0x164] ss:$8 sps:$4 sm:$0xff]  }
 0x167   : > { %v961_v43 = vadd.f32 %v5311_v44, %v941_v37  ;;  %v922_v45 = vmax.f32 %v904_v39, 0.0 }
 0x168   : > { %v1348_v46 = vadd.f32 %v5314_v49, %v1328_v40  ;;  %v1309_v47 = vmax.f32 %v1291_v42, 0.0 }
 0x169   : > { %v942_v28 = vmul.f32 %v5304_v38, %v922_v45  ;;  %4555 = vmatprep.mubr.msk.f32.mxu1 %vm1353_vm0, %v961_v43  ;;  %v4780_v38 = vld [vmem:[%s5235_s16 + $0x100] ss:$8 sps:$4 sm:$0xff]  }
 0x16a   : > { %v1329_v48 = vmul.f32 %v5308_v41, %v1309_v47  ;;  %4527 = vmatprep.mubr.msk.f32.mxu0 %vm1353_vm0, %v1348_v46  ;;  %v4801_v41 = vld [vmem:[%s5235_s16 + $0x174] ss:$8 sps:$4 sm:$0xff]  }
 0x16b   : > { %v962_v50 = vadd.f32 %v5311_v44, %v942_v28  ;;  %v4803_v44 = vld [vmem:[%s5235_s16 + $0x170] ss:$8 sps:$4 sm:$0xff]  }
 0x16c   : > { %v1349_v52 = vadd.f32 %v5314_v49, %v1329_v48  ;;  %v4785_v49 = vld [vmem:[%s5235_s16 + $0x110] ss:$8 sps:$4 sm:$0xff]  }
 0x16d   : > { %4556 = vmatmul.mubr.msk.f32.gmra.mxu1 %vm1353_vm0, %v962_v50 }
 0x16e   : > { %4528 = vmatmul.mubr.msk.f32.gmra.mxu0 %vm1353_vm0, %v1349_v52  ;;  %2052 = vmatprep.mubr.bf16.mxu1 %v4797_v31 }
 0x16f   : > { %2004 = vmatprep.mubr.bf16.mxu0 %v4782_v51 }
 0x171   : > { %2053 = vmatmul.mubr.bf16.vlgmr.msra.gmra.mxu1 %v4795_v53 }
 0x172   : > { %2005 = vmatmul.mubr.bf16.vlgmr.msra.gmra.mxu0 %v4780_v38  ;;  %2060 = vmatprep.mubr.bf16.mxu1 %v4801_v41 }
 0x173   : > { %2012 = vmatprep.mubr.bf16.mxu0 %v4783_v54  ;;  %4559 = vmatpush3.msra.mxu1 %v3872_v63  ;;  %v3838_v54 = vld [vmem:[%s6099_s2 + $0x8] sm:$0x7] }
 0x174   : > { %4560 = vmatprep.subr.mxu1 %v3871_v0  ;;  %v5555_v63 = vrot.slane %v3838_v54, %v5300_v34 }
 0x175   : > { %4561 = vmatpush3.msra.mxu1 %v3871_v0 }
 0x176   : > { %4338 = vmatprep.subr.bf16.mxu1 %v4804_v1 }
 0x179   : > { %2061 = vmatmul.mubr.bf16.gmra.mxu1 %v4803_v44 }
 0x17a   : > { %2013 = vmatmul.mubr.bf16.gmra.mxu0 %v4785_v49 }
 0x17b   : > { %2020 = vmatprep.mubr.bf16.mxu0 %v4786_v55  ;;  %v5548_v55 = vrot.slane %v3838_v54, %v5287_v24 }
 0x182   : > { %2021 = vmatmul.mubr.bf16.gmra.mxu0 %v4788_v56 }
 0x183   : > { %2028 = vmatprep.mubr.bf16.mxu0 %v4789_v57 }
 0x18a   : > { %2029 = vmatmul.mubr.bf16.gmra.mxu0 %v4791_v58 }
 0x18b   : > { %2036 = vmatprep.mubr.bf16.mxu0 %v4792_v59 }
 0x192   : > { %2037 = vmatmul.mubr.bf16.gmra.mxu0 %v4794_v60  ;;  %v5552_v60 = vrot.slane %v3838_v54, %v5295_v30 }
 0x193   : > { %2044 = vmatprep.mubr.bf16.mxu0 %v4798_v61 }
 0x19a   : > { %2045 = vmatmul.mubr.bf16.gmra.mxu0 %v4800_v62 }
 0x1f5   : > { %v4536_v2 = vpop.f32.mrf.mxu1 }
 0x1f6   : > { %v4508_v3 = vpop.f32.mrf.mxu0 }
 0x1f7   : > { %v5512_v4 = vadd.f32 %v4536_v2, %v4508_v3  ;;  %v1661_v5 = vpop.f32.mrf.mxu1 }
 0x1f8   : > { %v1468_v6 = vpop.f32.mrf.mxu0 }
 0x1f9   : > { %v5514_v7 = vadd.f32 %v1661_v5, %v1468_v6 }
 0x1fd   : > { %v4539_v8 = vpop.f32.mrf.mxu1 }
 0x1fe   : > { %v4511_v9 = vpop.f32.mrf.mxu0 }
 0x1ff   : > { %v5516_v10 = vadd.f32 %v4539_v8, %v4511_v9  ;;  %v1671_v11 = vpop.f32.mrf.mxu1 }
 0x200   : > { %v1478_v12 = vpop.f32.mrf.mxu0 }
 0x201   : > { %v5518_v13 = vadd.f32 %v1671_v11, %v1478_v12 }
 0x205   : > { %v4542_v14 = vpop.f32.mrf.mxu1 }
 0x206   : > { %v4514_v15 = vpop.f32.mrf.mxu0 }
 0x207   : > { %v5520_v16 = vadd.f32 %v4542_v14, %v4514_v15  ;;  %v1681_v17 = vpop.f32.mrf.mxu1 }
 0x208   : > { %v1488_v18 = vpop.f32.mrf.mxu0 }
 0x209   : > { %v5522_v19 = vadd.f32 %v1681_v17, %v1488_v18  ;;  %v4805_v17 = vld [vmem:[%s6098_s1 + $0x1b8] sm:$0xff]  }
 0x20d   : > { %v4545_v20 = vpop.f32.mrf.mxu1 }
 0x20e   : > { %v4517_v21 = vpop.f32.mrf.mxu0 }
 0x20f   : > { %v5524_v22 = vadd.f32 %v4545_v20, %v4517_v21  ;;  %v1691_v23 = vpop.f32.mrf.mxu1 }
 0x210   : > { %v1498_v25 = vpop.f32.mrf.mxu0 }
 0x211   : > { %v5526_v26 = vadd.f32 %v1691_v23, %v1498_v25  ;;  %v4806_v23 = vld [vmem:[%s6098_s1 + $0x1f0] sm:$0xff]  }
 0x215   : > { %v4548_v27 = vpop.f32.mrf.mxu1 }
 0x216   : > { %v4520_v29 = vpop.f32.mrf.mxu0 }
 0x217   : > { %v5528_v32 = vadd.f32 %v4548_v27, %v4520_v29  ;;  %v1701_v33 = vpop.f32.mrf.mxu1 }
 0x218   : > { %v1508_v35 = vpop.f32.mrf.mxu0 }
 0x219   : > { %v5530_v36 = vadd.f32 %v1701_v33, %v1508_v35 }
 0x21d   : > { %v4551_v37 = vpop.f32.mrf.mxu1 }
 0x21e   : > { %v4523_v39 = vpop.f32.mrf.mxu0 }
 0x21f   : > { %v5532_v40 = vadd.f32 %v4551_v37, %v4523_v39  ;;  %v1711_v42 = vpop.f32.mrf.mxu1  ;;  %v4807_v37 = vld [vmem:[%s6098_s1 + $0x1b0] sm:$0xff]  }
 0x220   : > { %v1518_v43 = vpop.f32.mrf.mxu0 }
 0x221   : > { %v5534_v45 = vadd.f32 %v1711_v42, %v1518_v43 }
 0x225   : > { %v4554_v46 = vpop.f32.mrf.mxu1 }
 0x226   : > { %v4526_v47 = vpop.f32.mrf.mxu0 }
 0x227   : > { %v5536_v28 = vadd.f32 %v4554_v46, %v4526_v47  ;;  %v1721_v48 = vpop.f32.mrf.mxu1  ;;  %v4808_v46 = vld [vmem:[%s6098_s1 + $0x1e8] sm:$0xff]  }
 0x228   : > { %v1528_v31 = vpop.f32.mrf.mxu0 }
 0x229   : > { %v5538_v50 = vadd.f32 %v1721_v48, %v1528_v31 }
 0x22d   : > { %v4557_v51 = vpop.f32.mrf.mxu1 }
 0x22e   : > { %v4529_v52 = vpop.f32.mrf.mxu0 }
 0x22f   : > { %v5540_v53 = vadd.f32 %v4557_v51, %v4529_v52  ;;  %v1731_v38 = vpop.f32.mrf.mxu1 }
 0x230   : > { %v1538_v41 = vpop.f32.mrf.mxu0 }
 0x231   : > { %v5545_v44 = vadd.f32 %v1731_v38, %v1538_v41  ;;  %v5570_v27 = vpop.f32.mrf.mxu1  ;;  %v4809_v38 = vld [vmem:[%s6098_s1 + $0x1a8] sm:$0xff]  }
 0x232   : > { %v4272_v49 = vpop.f32.mrf.mxu0 }
 0x233   : > { %v5582_v48 = vpop.f32.mrf.mxu1 }
 0x234   : > { %v4273_v56 = vpop.f32.mrf.mxu0 }
 0x235   : > { %v4274_v57 = vadd.f32 %v4273_v56, %v4272_v49  ;;  %v4810_v56 = vld [vmem:[%s6098_s1 + $0x1e0] sm:$0xff]  }
 0x236   : > { %v4275_v58 = vpop.f32.mrf.mxu0 }
 0x237   : > { %v2007_v59 = vadd.f32 %v4274_v57, %v5548_v55 }
 0x238   : > { %v4276_v61 = vpop.f32.mrf.mxu0 }
 0x239   : > { %v2069_v62 = vmax.f32 %v2007_v59, 0.0  ;;  %v4277_v0 = vadd.f32 %v4276_v61, %v4275_v58  ;;  %v4311_v58 = vpop.f32.mrf.mxu1 }
 0x23a   : > { %v4278_v1 = vpop.f32.mrf.mxu0 }
 0x23b   : > { %v2089_v2 = vmul.f32 %v5552_v60, %v2069_v62  ;;  %v2010_v3 = vadd.f32 %v4277_v0, %v5548_v55  ;;  %v4811_v0 = vld [vmem:[%s6098_s1 + $0x1a0] sm:$0xff]  }
 0x23c   : > { %v4279_v5 = vpop.f32.mrf.mxu0 }
 0x23d   : > { %v2109_v6 = vadd.f32 %v5555_v63, %v2089_v2  ;;  %v2070_v8 = vmax.f32 %v2010_v3, 0.0  ;;  %v4280_v9 = vadd.f32 %v4279_v5, %v4278_v1  ;;  %v4812_v5 = vld [vmem:[%s6098_s1 + $0x1d8] sm:$0xff]  }
 0x23e   : > { %v4281_v11 = vpop.f32.mrf.mxu0 }
 0x23f   : > { %v2090_v12 = vmul.f32 %v5552_v60, %v2070_v8  ;;  %v2015_v14 = vadd.f32 %v4280_v9, %v5548_v55  ;;  %4562 = vmatprep.mubr.msk.f32.mxu1 %vm1353_vm0, %v2109_v6  ;;  %v4312_v8 = vpop.f32.mrf.mxu1 }
 0x240   : > { %v4282_v15 = vpop.f32.mrf.mxu0 }
 0x241   : > { %v2110_v18 = vadd.f32 %v5555_v63, %v2090_v12  ;;  %v2071_v20 = vmax.f32 %v2015_v14, 0.0  ;;  %v4283_v21 = vadd.f32 %v4282_v15, %v4281_v11  ;;  %v4813_v14 = vld [vmem:[%s6098_s1 + $0x198] sm:$0xff]  }
 0x242   : > { %v4284_v25 = vpop.f32.mrf.mxu0 }
 0x243   : > { %v2091_v29 = vmul.f32 %v5552_v60, %v2071_v20  ;;  %v2018_v33 = vadd.f32 %v4283_v21, %v5548_v55  ;;  %4563 = vmatmul.mubr.msk.f32.vlgmr.msra.gmra.mxu1 %vm1353_vm0, %v2110_v18  ;;  %v4814_v20 = vld [vmem:[%s6098_s1 + $0x1d0] sm:$0xff]  }
 0x244   : > { %v4285_v35 = vpop.f32.mrf.mxu0  ;;  %4339 = vmatpush3.bf16.msra.mxu1 %v4805_v17 }
 0x245   : > { %v2111_v39 = vadd.f32 %v5555_v63, %v2091_v29  ;;  %v2072_v42 = vmax.f32 %v2018_v33, 0.0  ;;  %v4286_v43 = vadd.f32 %v4285_v35, %v4284_v25  ;;  %4340 = vmatprep.subr.bf16.mxu1 %v4806_v23  ;;  %v4314_v23 = vpop.f32.mrf.mxu1  ;;  %v4815_v35 = vld [vmem:[%s6098_s1 + $0x190] sm:$0xff]  }
 0x246   : > { %v4287_v47 = vpop.f32.mrf.mxu0 }
 0x247   : > { %v2092_v31 = vmul.f32 %v5552_v60, %v2072_v42  ;;  %v2023_v51 = vadd.f32 %v4286_v43, %v5548_v55  ;;  %4565 = vmatprep.mubr.msk.f32.mxu1 %vm1353_vm0, %v2111_v39  ;;  %v4816_v43 = vld [vmem:[%s6098_s1 + $0x1c8] sm:$0xff]  }
 0x248   : > { %v4288_v52 = vpop.f32.mrf.mxu0  ;;  %4341 = vmatpush3.bf16.msra.mxu1 %v4807_v37 }
 0x249   : > { %v2112_v41 = vadd.f32 %v5555_v63, %v2092_v31  ;;  %v2073_v54 = vmax.f32 %v2023_v51, 0.0  ;;  %v4289_v49 = vadd.f32 %v4288_v52, %v4287_v47  ;;  %4342 = vmatprep.subr.bf16.mxu1 %v4808_v46  ;;  %v4315_v47 = vpop.f32.mrf.mxu1 }
 0x24a   : > { %v4290_v57 = vpop.f32.mrf.mxu0 }
 0x24b   : > { %v2093_v59 = vmul.f32 %v5552_v60, %v2073_v54  ;;  %v2026_v61 = vadd.f32 %v4289_v49, %v5548_v55  ;;  %4566 = vmatmul.mubr.msk.f32.gmra.mxu1 %vm1353_vm0, %v2112_v41 }
 0x24c   : > { %v4291_v62 = vpop.f32.mrf.mxu0  ;;  %4343 = vmatpush3.bf16.msra.mxu1 %v4809_v38  ;;  %v4817_v38 = vld [vmem:[%s6098_s1 + $0x188] sm:$0xff]  }
 0x24d   : > { %v2113_v1 = vadd.f32 %v5555_v63, %v2093_v59  ;;  %v2074_v2 = vmax.f32 %v2026_v61, 0.0  ;;  %v4292_v3 = vadd.f32 %v4291_v62, %v4290_v57  ;;  %4344 = vmatprep.subr.bf16.mxu1 %v4810_v56  ;;  %v4818_v56 = vld [vmem:[%s6098_s1 + $0x1c0] sm:$0xff]   ;;  %v4310_v57 = vadd.f32 %v5582_v48, %v5570_v27  ;;  %v4317_v61 = vpop.f32.mrf.mxu1 }
 0x24e   : > { %v4293_v6 = vpop.f32.mrf.mxu0 }
 0x24f   : > { %v2094_v9 = vmul.f32 %v5552_v60, %v2074_v2  ;;  %v2031_v11 = vadd.f32 %v4292_v3, %v5548_v55  ;;  %4568 = vmatprep.mubr.msk.f32.mxu1 %vm1353_vm0, %v2113_v1  ;;  %v4313_v1 = vadd.f32 %v4312_v8, %v4311_v58  ;;  %v4819_v3 = vld [vmem:[%s6098_s1 + $0x180] sm:$0xff]   ;;  %v2055_v27 = vadd.f32 %v4310_v57, %v5548_v55 }
 0x250   : > { %v4294_v12 = vpop.f32.mrf.mxu0  ;;  %4345 = vmatpush3.bf16.msra.mxu1 %v4811_v0 }
 0x251   : > { %v2114_v15 = vadd.f32 %v5555_v63, %v2094_v9  ;;  %v2075_v17 = vmax.f32 %v2031_v11, 0.0  ;;  %v4295_v18 = vadd.f32 %v4294_v12, %v4293_v6  ;;  %4346 = vmatprep.subr.bf16.mxu1 %v4812_v5  ;;  %v4316_v11 = vadd.f32 %v4315_v47, %v4314_v23  ;;  %v4318_v12 = vpop.f32.mrf.mxu1 }
 0x252   : > { %v4296_v21 = vpop.f32.mrf.mxu0  ;;  %v2058_v8 = vadd.f32 %v4313_v1, %v5548_v55  ;;  %v4829_v1 = vld [vmem:[%s5235_s16 + $0x1b4] ss:$8 sps:$4 sm:$0xff]  }
 0x253   : > { %v2095_v25 = vmul.f32 %v5552_v60, %v2075_v17  ;;  %v2034_v29 = vadd.f32 %v4295_v18, %v5548_v55  ;;  %4569 = vmatmul.mubr.msk.f32.gmra.mxu1 %vm1353_vm0, %v2114_v15 }
 0x254   : > { %v4297_v33 = vpop.f32.mrf.mxu0  ;;  %4347 = vmatpush3.bf16.msra.mxu1 %v4813_v14 }
 0x255   : > { %v2115_v37 = vadd.f32 %v5555_v63, %v2095_v25  ;;  %v2076_v39 = vmax.f32 %v2034_v29, 0.0  ;;  %v4298_v42 = vadd.f32 %v4297_v33, %v4296_v21  ;;  %4348 = vmatprep.subr.bf16.mxu1 %v4814_v20  ;;  %v4319_v21 = vadd.f32 %v4318_v12, %v4317_v61  ;;  %v4823_v61 = vld [vmem:[%s5235_s16 + $0x194] ss:$8 sps:$4 sm:$0xff]  }
 0x256   : > { %v4299_v46 = vpop.f32.mrf.mxu0  ;;  %v2081_v25 = vmax.f32 %v2055_v27, 0.0  ;;  %v2063_v29 = vadd.f32 %v4316_v11, %v5548_v55  ;;  %v4840_v27 = vld [vmem:[%s5235_s16 + $0x1e0] ss:$8 sps:$4 sm:$0xff]   ;;  %v4843_v11 = vld [vmem:[%s5235_s16 + $0x1f0] ss:$8 sps:$4 sm:$0xff]  }
 0x257   : > { %v2096_v31 = vmul.f32 %v5552_v60, %v2076_v39  ;;  %v2039_v51 = vadd.f32 %v4298_v42, %v5548_v55  ;;  %4571 = vmatprep.mubr.msk.f32.mxu1 %vm1353_vm0, %v2115_v37  ;;  %v2066_v42 = vadd.f32 %v4319_v21, %v5548_v55  ;;  %v3971_v12 = vld [vmem:[%s6100_s3 + $0x38] sm:$0xff] }
 0x258   : > { %v4300_v52 = vpop.f32.mrf.mxu0  ;;  %4349 = vmatpush3.bf16.msra.mxu1 %v4815_v35  ;;  %v2082_v35 = vmax.f32 %v2058_v8, 0.0  ;;  %4586 = vmatprep.subr.mxu0 %v3971_v12 }
 0x259   : > { %v2116_v41 = vadd.f32 %v5555_v63, %v2096_v31  ;;  %v2077_v54 = vmax.f32 %v2039_v51, 0.0  ;;  %v4301_v49 = vadd.f32 %v4300_v52, %v4299_v46  ;;  %4350 = vmatprep.subr.bf16.mxu1 %v4816_v43  ;;  %v2101_v43 = vmul.f32 %v5552_v60, %v2081_v25  ;;  %4587 = vmatpush3.msra.mxu0 %v3971_v12 }
 0x25a   : > { %v4302_v59 = vpop.f32.mrf.mxu0  ;;  %v2083_v46 = vmax.f32 %v2063_v29, 0.0  ;;  %v2102_v31 = vmul.f32 %v5552_v60, %v2082_v35  ;;  %v2084_v52 = vmax.f32 %v2066_v42, 0.0 }
 0x25b   : > { %v2097_v62 = vmul.f32 %v5552_v60, %v2077_v54  ;;  %v2042_v0 = vadd.f32 %v4301_v49, %v5548_v55  ;;  %4572 = vmatmul.mubr.msk.f32.gmra.mxu1 %vm1353_vm0, %v2116_v41 }
 0x25c   : > { %v4303_v2 = vpop.f32.mrf.mxu0  ;;  %4351 = vmatpush3.bf16.msra.mxu1 %v4817_v38  ;;  %v2121_v38 = vadd.f32 %v5555_v63, %v2101_v43  ;;  %v2103_v41 = vmul.f32 %v5552_v60, %v2083_v46  ;;  %v2104_v54 = vmul.f32 %v5552_v60, %v2084_v52 }
 0x25d   : > { %v2117_v5 = vadd.f32 %v5555_v63, %v2097_v62  ;;  %v2078_v6 = vmax.f32 %v2042_v0, 0.0  ;;  %v4304_v9 = vadd.f32 %v4303_v2, %v4302_v59  ;;  %4352 = vmatprep.subr.bf16.mxu1 %v4818_v56  ;;  %v4822_v56 = vld [vmem:[%s5235_s16 + $0x184] ss:$8 sps:$4 sm:$0xff]   ;;  %v4820_v59 = vld [vmem:[%s5235_s16 + $0x180] ss:$8 sps:$4 sm:$0xff]  }
 0x25e   : > { %v4305_v48 = vpop.f32.mrf.mxu0  ;;  %v2123_v49 = vadd.f32 %v5555_v63, %v2103_v41  ;;  %v2124_v57 = vadd.f32 %v5555_v63, %v2104_v54  ;;  %v4826_v62 = vld [vmem:[%s5235_s16 + $0x1a4] ss:$8 sps:$4 sm:$0xff]   ;;  %v4828_v0 = vld [vmem:[%s5235_s16 + $0x1a0] ss:$8 sps:$4 sm:$0xff]  }
 0x25f   : > { %v2098_v14 = vmul.f32 %v5552_v60, %v2078_v6  ;;  %v2047_v58 = vadd.f32 %v4304_v9, %v5548_v55  ;;  %4574 = vmatprep.mubr.msk.f32.mxu1 %vm1353_vm0, %v2117_v5  ;;  %v4832_v2 = vld [vmem:[%s5235_s16 + $0x1c4] ss:$8 sps:$4 sm:$0xff]   ;;  %v4835_v5 = vld [vmem:[%s5235_s16 + $0x1d4] ss:$8 sps:$4 sm:$0xff]   ;;  %v4837_v6 = vld [vmem:[%s5235_s16 + $0x1d0] ss:$8 sps:$4 sm:$0xff]  }
 0x260   : > { %v4306_v15 = vpop.f32.mrf.mxu0  ;;  %4353 = vmatpush3.bf16.msra.mxu1 %v4819_v3  ;;  %v4834_v3 = vld [vmem:[%s5235_s16 + $0x1c0] ss:$8 sps:$4 sm:$0xff]   ;;  %v4838_v9 = vld [vmem:[%s5235_s16 + $0x1e4] ss:$8 sps:$4 sm:$0xff]  }
 0x261   : > { %v2118_v17 = vadd.f32 %v5555_v63, %v2098_v14  ;;  %v2079_v18 = vmax.f32 %v2047_v58, 0.0  ;;  %v4307_v20 = vadd.f32 %v4306_v15, %v4305_v48  ;;  %v4841_v48 = vld [vmem:[%s5235_s16 + $0x1f4] ss:$8 sps:$4 sm:$0xff]  }
 0x262   : > { %v3970_v14 = vld [vmem:[%s6100_s3 + $0x30] sm:$0xff]  ;;  %v4844_v58 = vld [vmem:[%s6098_s1 + $0x278] sm:$0xff]  }
 0x263   : > { %v2099_v23 = vmul.f32 %v5552_v60, %v2079_v18  ;;  %v2050_v33 = vadd.f32 %v4307_v20, %v5548_v55  ;;  %4575 = vmatmul.mubr.msk.f32.gmra.mxu1 %vm1353_vm0, %v2118_v17  ;;  %v2122_v55 = vadd.f32 %v5555_v63, %v2102_v31  ;;  %4588 = vmatprep.subr.mxu0 %v3970_v14 }
 0x264   : > { %4589 = vmatpush3.msra.mxu0 %v3970_v14  ;;  %v4846_v14 = vld [vmem:[%s6098_s1 + $0x270] sm:$0xff]  }
 0x265   : > { %v2119_v37 = vadd.f32 %v5555_v63, %v2099_v23  ;;  %v2080_v39 = vmax.f32 %v2050_v33, 0.0  ;;  %4420 = vmatprep.subr.bf16.mxu0 %v4844_v58 }
 0x267   : > { %v2100_v47 = vmul.f32 %v5552_v60, %v2080_v39  ;;  %4577 = vmatprep.mubr.msk.f32.mxu1 %vm1353_vm0, %v2119_v37  ;;  %v4825_v60 = vld [vmem:[%s5235_s16 + $0x190] ss:$8 sps:$4 sm:$0xff]  }
 0x269   : > { %v2120_v51 = vadd.f32 %v5555_v63, %v2100_v47  ;;  %v4831_v63 = vld [vmem:[%s5235_s16 + $0x1b0] ss:$8 sps:$4 sm:$0xff]  }
 0x26b   : > { %4578 = vmatmul.mubr.msk.f32.gmra.mxu1 %vm1353_vm0, %v2120_v51 }
 0x26c   : > { %4580 = vmatprep.mubr.msk.f32.mxu1 %vm1353_vm0, %v2121_v38 }
 0x26f   : > { %4581 = vmatmul.mubr.msk.f32.gmra.mxu1 %vm1353_vm0, %v2122_v55 }
 0x270   : > { %4583 = vmatprep.mubr.msk.f32.mxu1 %vm1353_vm0, %v2123_v49 }
 0x273   : > { %4584 = vmatmul.mubr.msk.f32.gmra.mxu1 %vm1353_vm0, %v2124_v57 }
 0x274   : > { %2601 = vmatprep.mubr.bf16.mxu1 %v4822_v56 }
 0x277   : > { %2602 = vmatmul.mubr.bf16.vlgmr.msra.gmra.mxu1 %v4820_v59 }
 0x278   : > { %2609 = vmatprep.mubr.bf16.mxu1 %v4823_v61 }
 0x27f   : > { %2610 = vmatmul.mubr.bf16.gmra.mxu1 %v4825_v60 }
 0x280   : > { %2617 = vmatprep.mubr.bf16.mxu1 %v4826_v62 }
 0x287   : > { %2618 = vmatmul.mubr.bf16.gmra.mxu1 %v4828_v0 }
 0x288   : > { %2625 = vmatprep.mubr.bf16.mxu1 %v4829_v1 }
 0x28f   : > { %2626 = vmatmul.mubr.bf16.gmra.mxu1 %v4831_v63 }
 0x290   : > { %2633 = vmatprep.mubr.bf16.mxu1 %v4832_v2 }
 0x297   : > { %2634 = vmatmul.mubr.bf16.gmra.mxu1 %v4834_v3 }
 0x298   : > { %2641 = vmatprep.mubr.bf16.mxu1 %v4835_v5 }
 0x29f   : > { %2642 = vmatmul.mubr.bf16.gmra.mxu1 %v4837_v6 }
 0x2a0   : > { %2649 = vmatprep.mubr.bf16.mxu1 %v4838_v9 }
 0x2a7   : > { %2650 = vmatmul.mubr.bf16.gmra.mxu1 %v4840_v27  ;;  %v4845_v27 = vld [vmem:[%s6098_s1 + $0x238] sm:$0xff]  }
 0x2a8   : > { %2657 = vmatprep.mubr.bf16.mxu1 %v4841_v48 }
 0x2af   : > { %2658 = vmatmul.mubr.bf16.gmra.mxu1 %v4843_v11 }
 0x303   : > { %v4564_v8 = vpop.f32.mrf.mxu1 }
 0x304   : > { %v5697_v15 = vadd.f32 %v4564_v8, %v5512_v4 }
 0x305   : > { %v2242_v17 = vpop.f32.mrf.mxu1 }
 0x306   : > { %v5700_v18 = vadd.f32 %v2242_v17, %v5514_v7 }
 0x30b   : > { %v4567_v20 = vpop.f32.mrf.mxu1 }
 0x30c   : > { %v5703_v21 = vadd.f32 %v4567_v20, %v5516_v10 }
 0x30d   : > { %v2252_v25 = vpop.f32.mrf.mxu1 }
 0x30e   : > { %v5706_v29 = vadd.f32 %v2252_v25, %v5518_v13  ;;  %v4847_v25 = vld [vmem:[%s6098_s1 + $0x230] sm:$0xff]  }
 0x313   : > { %v4570_v23 = vpop.f32.mrf.mxu1 }
 0x314   : > { %v5709_v33 = vadd.f32 %v4570_v23, %v5520_v16 }
 0x315   : > { %v2262_v35 = vpop.f32.mrf.mxu1 }
 0x316   : > { %v5712_v4 = vadd.f32 %v2262_v35, %v5522_v19 }
 0x31b   : > { %v4573_v37 = vpop.f32.mrf.mxu1 }
 0x31c   : > { %v5715_v7 = vadd.f32 %v4573_v37, %v5524_v22 }
 0x31d   : > { %v2272_v39 = vpop.f32.mrf.mxu1 }
 0x31e   : > { %v5718_v10 = vadd.f32 %v2272_v39, %v5526_v26  ;;  %v4848_v39 = vld [vmem:[%s6098_s1 + $0x268] sm:$0xff]  }
 0x323   : > { %v4576_v42 = vpop.f32.mrf.mxu1 }
 0x324   : > { %v5721_v13 = vadd.f32 %v4576_v42, %v5528_v32 }
 0x325   : > { %v2282_v43 = vpop.f32.mrf.mxu1 }
 0x326   : > { %v5724_v16 = vadd.f32 %v2282_v43, %v5530_v36 }
 0x32b   : > { %v4579_v46 = vpop.f32.mrf.mxu1 }
 0x32c   : > { %v5727_v19 = vadd.f32 %v4579_v46, %v5532_v40  ;;  %v3937_v40 = vld [vmem:[%s6099_s2 + $0xc] sm:$0x7] }
 0x32d   : > { %v2292_v47 = vpop.f32.mrf.mxu1  ;;  %v5755_v59 = vrot.slane %v3937_v40, %v5300_v34 }
 0x32e   : > { %v5730_v22 = vadd.f32 %v2292_v47, %v5534_v45 }
 0x32f   : > { %v4582_v31 = vpop.f32.mrf.mxu1 }
 0x330   : > { %v5733_v26 = vadd.f32 %v4582_v31, %v5536_v28  ;;  %v5748_v28 = vrot.slane %v3937_v40, %v5287_v24  ;;  %v4849_v31 = vld [vmem:[%s6098_s1 + $0x228] sm:$0xff]  }
 0x331   : > { %v2302_v51 = vpop.f32.mrf.mxu1 }
 0x332   : > { %v5736_v32 = vadd.f32 %v2302_v51, %v5538_v50 }
 0x333   : > { %v4585_v52 = vpop.f32.mrf.mxu1 }
 0x334   : > { %v5739_v36 = vadd.f32 %v4585_v52, %v5540_v53  ;;  %v5752_v53 = vrot.slane %v3937_v40, %v5295_v30  ;;  %v4850_v40 = vld [vmem:[%s6098_s1 + $0x260] sm:$0xff]  }
 0x335   : > { %v2312_v38 = vpop.f32.mrf.mxu1 }
 0x336   : > { %v5745_v45 = vadd.f32 %v2312_v38, %v5545_v44 }
 0x337   : > { %v4354_v41 = vpop.f32.mrf.mxu1 }
 0x339   : > { %v4355_v55 = vpop.f32.mrf.mxu1 }
 0x33a   : > { %v4356_v54 = vadd.f32 %v4355_v55, %v4354_v41 }
 0x33b   : > { %v4357_v50 = vpop.f32.mrf.mxu1 }
 0x33c   : > { %v2604_v49 = vadd.f32 %v4356_v54, %v5748_v28 }
 0x33d   : > { %v4358_v56 = vpop.f32.mrf.mxu1 }
 0x33e   : > { %v2666_v57 = vmax.f32 %v2604_v49, 0.0  ;;  %v4359_v61 = vadd.f32 %v4358_v56, %v4357_v50  ;;  %v4851_v49 = vld [vmem:[%s6098_s1 + $0x220] sm:$0xff]  }
 0x33f   : > { %v4360_v44 = vpop.f32.mrf.mxu1 }
 0x340   : > { %v2686_v60 = vmul.f32 %v5752_v53, %v2666_v57  ;;  %v2607_v62 = vadd.f32 %v4359_v61, %v5748_v28 }
 0x341   : > { %v4361_v0 = vpop.f32.mrf.mxu1 }
 0x342   : > { %v2706_v1 = vadd.f32 %v5755_v59, %v2686_v60  ;;  %v2667_v63 = vmax.f32 %v2607_v62, 0.0  ;;  %v4362_v2 = vadd.f32 %v4361_v0, %v4360_v44  ;;  %v4852_v44 = vld [vmem:[%s6098_s1 + $0x258] sm:$0xff]  }
 0x343   : > { %v4363_v3 = vpop.f32.mrf.mxu1 }
 0x344   : > { %v2687_v5 = vmul.f32 %v5752_v53, %v2667_v63  ;;  %v2612_v6 = vadd.f32 %v4362_v2, %v5748_v28  ;;  %4590 = vmatprep.mubr.msk.f32.mxu0 %vm1353_vm0, %v2706_v1  ;;  %v4853_v63 = vld [vmem:[%s6098_s1 + $0x218] sm:$0xff]  }
 0x345   : > { %v4364_v9 = vpop.f32.mrf.mxu1 }
 0x346   : > { %v2707_v48 = vadd.f32 %v5755_v59, %v2687_v5  ;;  %v2668_v11 = vmax.f32 %v2612_v6, 0.0  ;;  %v4365_v12 = vadd.f32 %v4364_v9, %v4363_v3  ;;  %v4854_v6 = vld [vmem:[%s6098_s1 + $0x250] sm:$0xff]  }
 0x347   : > { %v4366_v58 = vpop.f32.mrf.mxu1 }
 0x348   : > { %v2688_v8 = vmul.f32 %v5752_v53, %v2668_v11  ;;  %v2615_v17 = vadd.f32 %v4365_v12, %v5748_v28  ;;  %4591 = vmatmul.mubr.msk.f32.vlgmr.msra.gmra.mxu0 %vm1353_vm0, %v2707_v48  ;;  %v4855_v12 = vld [vmem:[%s6098_s1 + $0x210] sm:$0xff]  }
 0x349   : > { %v4367_v20 = vpop.f32.mrf.mxu1  ;;  %4421 = vmatpush3.bf16.msra.mxu0 %v4845_v27 }
 0x34a   : > { %v2708_v23 = vadd.f32 %v5755_v59, %v2688_v8  ;;  %v2669_v35 = vmax.f32 %v2615_v17, 0.0  ;;  %v4368_v37 = vadd.f32 %v4367_v20, %v4366_v58  ;;  %4422 = vmatprep.subr.bf16.mxu0 %v4846_v14  ;;  %v4856_v17 = vld [vmem:[%s6098_s1 + $0x248] sm:$0xff]  }
 0x34b   : > { %v4369_v42 = vpop.f32.mrf.mxu1 }
 0x34c   : > { %v2689_v43 = vmul.f32 %v5752_v53, %v2669_v35  ;;  %v2620_v46 = vadd.f32 %v4368_v37, %v5748_v28  ;;  %4593 = vmatprep.mubr.msk.f32.mxu0 %vm1353_vm0, %v2708_v23  ;;  %v4857_v37 = vld [vmem:[%s6098_s1 + $0x208] sm:$0xff]  }
 0x34d   : > { %v4370_v47 = vpop.f32.mrf.mxu1  ;;  %4423 = vmatpush3.bf16.msra.mxu0 %v4847_v25 }
 0x34e   : > { %v2709_v51 = vadd.f32 %v5755_v59, %v2689_v43  ;;  %v2670_v52 = vmax.f32 %v2620_v46, 0.0  ;;  %v4371_v38 = vadd.f32 %v4370_v47, %v4369_v42  ;;  %4424 = vmatprep.subr.bf16.mxu0 %v4848_v39  ;;  %v4858_v46 = vld [vmem:[%s6098_s1 + $0x240] sm:$0xff]  }
 0x34f   : > { %v4372_v41 = vpop.f32.mrf.mxu1 }
 0x350   : > { %v2690_v55 = vmul.f32 %v5752_v53, %v2670_v52  ;;  %v2623_v54 = vadd.f32 %v4371_v38, %v5748_v28  ;;  %4594 = vmatmul.mubr.msk.f32.gmra.mxu0 %vm1353_vm0, %v2709_v51  ;;  %v4859_v38 = vld [vmem:[%s6098_s1 + $0x200] sm:$0xff]  }
 0x351   : > { %v4373_v50 = vpop.f32.mrf.mxu1  ;;  %4425 = vmatpush3.bf16.msra.mxu0 %v4849_v31 }
 0x352   : > { %v2710_v56 = vadd.f32 %v5755_v59, %v2690_v55  ;;  %v2671_v57 = vmax.f32 %v2623_v54, 0.0  ;;  %v4374_v61 = vadd.f32 %v4373_v50, %v4372_v41  ;;  %4426 = vmatprep.subr.bf16.mxu0 %v4850_v40 }
 0x353   : > { %v4375_v60 = vpop.f32.mrf.mxu1 }
 0x354   : > { %v2691_v62 = vmul.f32 %v5752_v53, %v2671_v57  ;;  %v2628_v0 = vadd.f32 %v4374_v61, %v5748_v28  ;;  %4596 = vmatprep.mubr.msk.f32.mxu0 %vm1353_vm0, %v2710_v56 }
 0x355   : > { %v4376_v1 = vpop.f32.mrf.mxu1  ;;  %4427 = vmatpush3.bf16.msra.mxu0 %v4851_v49 }
 0x356   : > { %v2711_v2 = vadd.f32 %v5755_v59, %v2691_v62  ;;  %v2672_v3 = vmax.f32 %v2628_v0, 0.0  ;;  %v4377_v5 = vadd.f32 %v4376_v1, %v4375_v60  ;;  %4428 = vmatprep.subr.bf16.mxu0 %v4852_v44 }
 0x357   : > { %v4378_v9 = vpop.f32.mrf.mxu1 }
 0x358   : > { %v2692_v27 = vmul.f32 %v5752_v53, %v2672_v3  ;;  %v2631_v48 = vadd.f32 %v4377_v5, %v5748_v28  ;;  %4597 = vmatmul.mubr.msk.f32.gmra.mxu0 %vm1353_vm0, %v2711_v2 }
 0x359   : > { %v4379_v11 = vpop.f32.mrf.mxu1  ;;  %4429 = vmatpush3.bf16.msra.mxu0 %v4853_v63 }
 0x35a   : > { %v2712_v14 = vadd.f32 %v5755_v59, %v2692_v27  ;;  %v2673_v58 = vmax.f32 %v2631_v48, 0.0  ;;  %v4380_v8 = vadd.f32 %v4379_v11, %v4378_v9  ;;  %4430 = vmatprep.subr.bf16.mxu0 %v4854_v6 }
 0x35b   : > { %v4381_v20 = vpop.f32.mrf.mxu1 }
 0x35c   : > { %v2693_v25 = vmul.f32 %v5752_v53, %v2673_v58  ;;  %v2636_v23 = vadd.f32 %v4380_v8, %v5748_v28  ;;  %4599 = vmatprep.mubr.msk.f32.mxu0 %vm1353_vm0, %v2712_v14 }
 0x35d   : > { %v4382_v35 = vpop.f32.mrf.mxu1  ;;  %4431 = vmatpush3.bf16.msra.mxu0 %v4855_v12 }
 0x35e   : > { %v2713_v39 = vadd.f32 %v5755_v59, %v2693_v25  ;;  %v2674_v42 = vmax.f32 %v2636_v23, 0.0  ;;  %v4383_v43 = vadd.f32 %v4382_v35, %v4381_v20  ;;  %4432 = vmatprep.subr.bf16.mxu0 %v4856_v17 }
 0x35f   : > { %v4384_v47 = vpop.f32.mrf.mxu1 }
 0x360   : > { %v2694_v31 = vmul.f32 %v5752_v53, %v2674_v42  ;;  %v2639_v51 = vadd.f32 %v4383_v43, %v5748_v28  ;;  %4600 = vmatmul.mubr.msk.f32.gmra.mxu0 %vm1353_vm0, %v2713_v39 }
 0x361   : > { %v4385_v52 = vpop.f32.mrf.mxu1  ;;  %4433 = vmatpush3.bf16.msra.mxu0 %v4857_v37 }
 0x362   : > { %v2714_v40 = vadd.f32 %v5755_v59, %v2694_v31  ;;  %v2675_v41 = vmax.f32 %v2639_v51, 0.0  ;;  %v4386_v55 = vadd.f32 %v4385_v52, %v4384_v47  ;;  %4434 = vmatprep.subr.bf16.mxu0 %v4858_v46 }
 0x363   : > { %v4387_v54 = vpop.f32.mrf.mxu1 }
 0x364   : > { %v2695_v50 = vmul.f32 %v5752_v53, %v2675_v41  ;;  %v2644_v49 = vadd.f32 %v4386_v55, %v5748_v28  ;;  %4602 = vmatprep.mubr.msk.f32.mxu0 %vm1353_vm0, %v2714_v40  ;;  %v4862_v41 = vld [vmem:[%s5235_s16 + $0x204] ss:$8 sps:$4 sm:$0xff]  }
 0x365   : > { %v4388_v56 = vpop.f32.mrf.mxu1  ;;  %4435 = vmatpush3.bf16.msra.mxu0 %v4859_v38 }
 0x366   : > { %v2715_v57 = vadd.f32 %v5755_v59, %v2695_v50  ;;  %v2676_v61 = vmax.f32 %v2644_v49, 0.0  ;;  %v4389_v44 = vadd.f32 %v4388_v56, %v4387_v54  ;;  %v4860_v54 = vld [vmem:[%s5235_s16 + $0x200] ss:$8 sps:$4 sm:$0xff]   ;;  %v4865_v50 = vld [vmem:[%s5235_s16 + $0x210] ss:$8 sps:$4 sm:$0xff]  }
 0x367   : > { %v4390_v60 = vpop.f32.mrf.mxu1  ;;  %v4866_v49 = vld [vmem:[%s5235_s16 + $0x224] ss:$8 sps:$4 sm:$0xff]   ;;  %v4869_v56 = vld [vmem:[%s5235_s16 + $0x234] ss:$8 sps:$4 sm:$0xff]  }
 0x368   : > { %v2696_v62 = vmul.f32 %v5752_v53, %v2676_v61  ;;  %v2647_v0 = vadd.f32 %v4389_v44, %v5748_v28  ;;  %4603 = vmatmul.mubr.msk.f32.gmra.mxu0 %vm1353_vm0, %v2715_v57  ;;  %v4872_v57 = vld [vmem:[%s5235_s16 + $0x244] ss:$8 sps:$4 sm:$0xff]   ;;  %v4874_v61 = vld [vmem:[%s5235_s16 + $0x240] ss:$8 sps:$4 sm:$0xff]   ;;  %v4875_v44 = vld [vmem:[%s5235_s16 + $0x254] ss:$8 sps:$4 sm:$0xff]  }
 0x369   : > { %v4391_v1 = vpop.f32.mrf.mxu1 }
 0x36a   : > { %v2716_v63 = vadd.f32 %v5755_v59, %v2696_v62  ;;  %v2677_v2 = vmax.f32 %v2647_v0, 0.0  ;;  %v4392_v3 = vadd.f32 %v4391_v1, %v4390_v60  ;;  %v4877_v60 = vld [vmem:[%s5235_s16 + $0x250] ss:$8 sps:$4 sm:$0xff]   ;;  %v4880_v62 = vld [vmem:[%s5235_s16 + $0x264] ss:$8 sps:$4 sm:$0xff]  }
 0x36b   : > { %v4393_v5 = vpop.f32.mrf.mxu1  ;;  %v4878_v0 = vld [vmem:[%s5235_s16 + $0x260] ss:$8 sps:$4 sm:$0xff]   ;;  %v4883_v1 = vld [vmem:[%s5235_s16 + $0x274] ss:$8 sps:$4 sm:$0xff]  }
 0x36c   : > { %v2697_v6 = vmul.f32 %v5752_v53, %v2677_v2  ;;  %v2652_v9 = vadd.f32 %v4392_v3, %v5748_v28  ;;  %4605 = vmatprep.mubr.msk.f32.mxu0 %vm1353_vm0, %v2716_v63  ;;  %v4070_v63 = vld [vmem:[%s6100_s3 + $0x48] sm:$0xff]  ;;  %v4881_v2 = vld [vmem:[%s5235_s16 + $0x270] ss:$8 sps:$4 sm:$0xff]   ;;  %v4069_v3 = vld [vmem:[%s6100_s3 + $0x40] sm:$0xff] }
 0x36d   : > { %v4394_v27 = vpop.f32.mrf.mxu1  ;;  %4614 = vmatprep.subr.mxu1 %v4070_v63 }
 0x36e   : > { %v2717_v48 = vadd.f32 %v5755_v59, %v2697_v6  ;;  %v2678_v11 = vmax.f32 %v2652_v9, 0.0  ;;  %v4395_v12 = vadd.f32 %v4394_v27, %v4393_v5  ;;  %4615 = vmatpush3.msra.mxu1 %v4070_v63 }
 0x36f   : > { %v4396_v14 = vpop.f32.mrf.mxu1  ;;  %4616 = vmatprep.subr.mxu1 %v4069_v3 }
 0x370   : > { %v2698_v58 = vmul.f32 %v5752_v53, %v2678_v11  ;;  %v2655_v8 = vadd.f32 %v4395_v12, %v5748_v28  ;;  %4606 = vmatmul.mubr.msk.f32.gmra.mxu0 %vm1353_vm0, %v2717_v48  ;;  %4617 = vmatpush3.msra.mxu1 %v4069_v3 }
 0x371   : > { %v4397_v17 = vpop.f32.mrf.mxu1 }
 0x372   : > { %v2718_v20 = vadd.f32 %v5755_v59, %v2698_v58  ;;  %v2679_v25 = vmax.f32 %v2655_v8, 0.0  ;;  %v4398_v23 = vadd.f32 %v4397_v17, %v4396_v14 }
 0x373   : > { %v4399_v35 = vpop.f32.mrf.mxu1 }
 0x374   : > { %v2699_v37 = vmul.f32 %v5752_v53, %v2679_v25  ;;  %v2660_v39 = vadd.f32 %v4398_v23, %v5748_v28  ;;  %4608 = vmatprep.mubr.msk.f32.mxu0 %vm1353_vm0, %v2718_v20 }
 0x375   : > { %v4400_v42 = vpop.f32.mrf.mxu1 }
 0x376   : > { %v2719_v43 = vadd.f32 %v5755_v59, %v2699_v37  ;;  %v2680_v46 = vmax.f32 %v2660_v39, 0.0  ;;  %v4401_v47 = vadd.f32 %v4400_v42, %v4399_v35 }
 0x378   : > { %v2700_v31 = vmul.f32 %v5752_v53, %v2680_v46  ;;  %v2663_v51 = vadd.f32 %v4401_v47, %v5748_v28  ;;  %4609 = vmatmul.mubr.msk.f32.gmra.mxu0 %vm1353_vm0, %v2719_v43  ;;  %v4863_v28 = vld [vmem:[%s5235_s16 + $0x214] ss:$8 sps:$4 sm:$0xff]  }
 0x37a   : > { %v2720_v52 = vadd.f32 %v5755_v59, %v2700_v31  ;;  %v2681_v38 = vmax.f32 %v2663_v51, 0.0 }
 0x37c   : > { %v2701_v40 = vmul.f32 %v5752_v53, %v2681_v38  ;;  %4611 = vmatprep.mubr.msk.f32.mxu0 %vm1353_vm0, %v2720_v52  ;;  %v4868_v53 = vld [vmem:[%s5235_s16 + $0x220] ss:$8 sps:$4 sm:$0xff]  }
 0x37e   : > { %v2721_v55 = vadd.f32 %v5755_v59, %v2701_v40  ;;  %v4871_v59 = vld [vmem:[%s5235_s16 + $0x230] ss:$8 sps:$4 sm:$0xff]  }
 0x380   : > { %4612 = vmatmul.mubr.msk.f32.gmra.mxu0 %vm1353_vm0, %v2721_v55 }
 0x381   : > { %3198 = vmatprep.mubr.bf16.mxu0 %v4862_v41 }
 0x384   : > { %3199 = vmatmul.mubr.bf16.vlgmr.msra.gmra.mxu0 %v4860_v54 }
 0x385   : > { %3206 = vmatprep.mubr.bf16.mxu0 %v4863_v28 }
 0x38c   : > { %3207 = vmatmul.mubr.bf16.gmra.mxu0 %v4865_v50 }
 0x38d   : > { %3214 = vmatprep.mubr.bf16.mxu0 %v4866_v49 }
 0x394   : > { %3215 = vmatmul.mubr.bf16.gmra.mxu0 %v4868_v53 }
 0x395   : > { %3222 = vmatprep.mubr.bf16.mxu0 %v4869_v56 }
 0x39c   : > { %3223 = vmatmul.mubr.bf16.gmra.mxu0 %v4871_v59 }
 0x39d   : > { %3230 = vmatprep.mubr.bf16.mxu0 %v4872_v57 }
 0x3a4   : > { %3231 = vmatmul.mubr.bf16.gmra.mxu0 %v4874_v61 }
 0x3a5   : > { %3238 = vmatprep.mubr.bf16.mxu0 %v4875_v44 }
 0x3ac   : > { %3239 = vmatmul.mubr.bf16.gmra.mxu0 %v4877_v60 }
 0x3ad   : > { %3246 = vmatprep.mubr.bf16.mxu0 %v4880_v62 }
 0x3b4   : > { %3247 = vmatmul.mubr.bf16.gmra.mxu0 %v4878_v0 }
 0x3b5   : > { %3254 = vmatprep.mubr.bf16.mxu0 %v4883_v1 }
 0x3bc   : > { %3255 = vmatmul.mubr.bf16.gmra.mxu0 %v4881_v2 }
 0x408   : > { %v4592_v5 = vpop.f32.mrf.mxu0 }
 0x409   : > { %v5888_v6 = vadd.f32 %v4592_v5, %v5697_v15 }
 0x40a   : > { %v2839_v9 = vpop.f32.mrf.mxu0 }
 0x40b   : > { %v5891_v27 = vadd.f32 %v2839_v9, %v5700_v18 }
 0x410   : > { %v4595_v48 = vpop.f32.mrf.mxu0 }
 0x411   : > { %v5894_v11 = vadd.f32 %v4595_v48, %v5703_v21 }
 0x412   : > { %v2849_v12 = vpop.f32.mrf.mxu0 }
 0x413   : > { %v5897_v14 = vadd.f32 %v2849_v12, %v5706_v29 }
 0x418   : > { %v4598_v58 = vpop.f32.mrf.mxu0 }
 0x419   : > { %v5900_v8 = vadd.f32 %v4598_v58, %v5709_v33 }
 0x41a   : > { %v2859_v17 = vpop.f32.mrf.mxu0 }
 0x41b   : > { %v5903_v15 = vadd.f32 %v2859_v17, %v5712_v4 }
 0x420   : > { %v4601_v20 = vpop.f32.mrf.mxu0 }
 0x421   : > { %v5906_v18 = vadd.f32 %v4601_v20, %v5715_v7 }
 0x422   : > { %v2869_v25 = vpop.f32.mrf.mxu0 }
 0x423   : > { %v5909_v21 = vadd.f32 %v2869_v25, %v5718_v10 }
 0x428   : > { %v4604_v23 = vpop.f32.mrf.mxu0 }
 0x429   : > { %v5912_v29 = vadd.f32 %v4604_v23, %v5721_v13 }
 0x42a   : > { %v2879_v35 = vpop.f32.mrf.mxu0 }
 0x42b   : > { %v5915_v33 = vadd.f32 %v2879_v35, %v5724_v16 }
 0x430   : > { %v4607_v37 = vpop.f32.mrf.mxu0 }
 0x431   : > { %v5918_v4 = vadd.f32 %v4607_v37, %v5727_v19  ;;  %v4036_v19 = vld [vmem:[%s6099_s2 + $0x10] sm:$0x7] }
 0x432   : > { %v2889_v39 = vpop.f32.mrf.mxu0  ;;  %v5946_v55 = vrot.slane %v4036_v19, %v5300_v34 }
 0x433   : > { %v5921_v7 = vadd.f32 %v2889_v39, %v5730_v22 }
 0x438   : > { %v4610_v42 = vpop.f32.mrf.mxu0 }
 0x439   : > { %v5924_v10 = vadd.f32 %v4610_v42, %v5733_v26  ;;  %v5939_v26 = vrot.slane %v4036_v19, %v5287_v24 }
 0x43a   : > { %v2899_v43 = vpop.f32.mrf.mxu0 }
 0x43b   : > { %v5927_v13 = vadd.f32 %v2899_v43, %v5736_v32 }
 0x440   : > { %v4613_v46 = vpop.f32.mrf.mxu0 }
 0x441   : > { %v5930_v16 = vadd.f32 %v4613_v46, %v5739_v36  ;;  %v5943_v36 = vrot.slane %v4036_v19, %v5295_v30 }
 0x442   : > { %v2909_v47 = vpop.f32.mrf.mxu0 }
 0x443   : > { %v5936_v22 = vadd.f32 %v2909_v47, %v5745_v45 }
 0x444   : > { %v4436_v31 = vpop.f32.mrf.mxu0 }
 0x446   : > { %v4437_v51 = vpop.f32.mrf.mxu0 }
 0x447   : > { %v4438_v52 = vadd.f32 %v4437_v51, %v4436_v31 }
 0x448   : > { %v4439_v32 = vpop.f32.mrf.mxu0 }
 0x449   : > { %v3201_v38 = vadd.f32 %v4438_v52, %v5939_v26 }
 0x44a   : > { %v4440_v40 = vpop.f32.mrf.mxu0 }
 0x44b   : > { %v3263_v41 = vmax.f32 %v3201_v38, 0.0  ;;  %v4441_v54 = vadd.f32 %v4440_v40, %v4439_v32 }
 0x44c   : > { %v4442_v45 = vpop.f32.mrf.mxu0 }
 0x44d   : > { %v3283_v28 = vmul.f32 %v5943_v36, %v3263_v41  ;;  %v3204_v24 = vadd.f32 %v4441_v54, %v5939_v26 }
 0x44e   : > { %v4443_v50 = vpop.f32.mrf.mxu0 }
 0x44f   : > { %v3303_v49 = vadd.f32 %v5946_v55, %v3283_v28  ;;  %v3264_v53 = vmax.f32 %v3204_v24, 0.0  ;;  %v4444_v56 = vadd.f32 %v4443_v50, %v4442_v45 }
 0x450   : > { %v4445_v59 = vpop.f32.mrf.mxu0 }
 0x451   : > { %v3284_v30 = vmul.f32 %v5943_v36, %v3264_v53  ;;  %v3209_v57 = vadd.f32 %v4444_v56, %v5939_v26  ;;  %4618 = vmatprep.mubr.msk.f32.mxu1 %vm1353_vm0, %v3303_v49 }
 0x452   : > { %v4446_v34 = vpop.f32.mrf.mxu0 }
 0x453   : > { %v3304_v61 = vadd.f32 %v5946_v55, %v3284_v30  ;;  %v3265_v44 = vmax.f32 %v3209_v57, 0.0  ;;  %v4447_v60 = vadd.f32 %v4446_v34, %v4445_v59 }
 0x454   : > { %v4448_v62 = vpop.f32.mrf.mxu0 }
 0x455   : > { %v3285_v0 = vmul.f32 %v5943_v36, %v3265_v44  ;;  %v3212_v1 = vadd.f32 %v4447_v60, %v5939_v26  ;;  %4619 = vmatmul.mubr.msk.f32.vlgmr.msra.gmra.mxu1 %vm1353_vm0, %v3304_v61 }
 0x456   : > { %v4449_v63 = vpop.f32.mrf.mxu0 }
 0x457   : > { %v3305_v2 = vadd.f32 %v5946_v55, %v3285_v0  ;;  %v3266_v3 = vmax.f32 %v3212_v1, 0.0  ;;  %v4450_v5 = vadd.f32 %v4449_v63, %v4448_v62 }
 0x458   : > { %v4451_v9 = vpop.f32.mrf.mxu0 }
 0x459   : > { %v3286_v48 = vmul.f32 %v5943_v36, %v3266_v3  ;;  %v3217_v12 = vadd.f32 %v4450_v5, %v5939_v26  ;;  %4621 = vmatprep.mubr.msk.f32.mxu1 %vm1353_vm0, %v3305_v2 }
 0x45a   : > { %v4452_v58 = vpop.f32.mrf.mxu0 }
 0x45b   : > { %v3306_v17 = vadd.f32 %v5946_v55, %v3286_v48  ;;  %v3267_v20 = vmax.f32 %v3217_v12, 0.0  ;;  %v4453_v25 = vadd.f32 %v4452_v58, %v4451_v9 }
 0x45c   : > { %v4454_v23 = vpop.f32.mrf.mxu0 }
 0x45d   : > { %v3287_v35 = vmul.f32 %v5943_v36, %v3267_v20  ;;  %v3220_v37 = vadd.f32 %v4453_v25, %v5939_v26  ;;  %4622 = vmatmul.mubr.msk.f32.gmra.mxu1 %vm1353_vm0, %v3306_v17 }
 0x45e   : > { %v4455_v39 = vpop.f32.mrf.mxu0 }
 0x45f   : > { %v3307_v42 = vadd.f32 %v5946_v55, %v3287_v35  ;;  %v3268_v43 = vmax.f32 %v3220_v37, 0.0  ;;  %v4456_v46 = vadd.f32 %v4455_v39, %v4454_v23 }
 0x460   : > { %v4457_v47 = vpop.f32.mrf.mxu0 }
 0x461   : > { %v3288_v19 = vmul.f32 %v5943_v36, %v3268_v43  ;;  %v3225_v31 = vadd.f32 %v4456_v46, %v5939_v26  ;;  %4624 = vmatprep.mubr.msk.f32.mxu1 %vm1353_vm0, %v3307_v42 }
 0x462   : > { %v4458_v51 = vpop.f32.mrf.mxu0 }
 0x463   : > { %v3308_v52 = vadd.f32 %v5946_v55, %v3288_v19  ;;  %v3269_v32 = vmax.f32 %v3225_v31, 0.0  ;;  %v4459_v38 = vadd.f32 %v4458_v51, %v4457_v47 }
 0x464   : > { %v4460_v40 = vpop.f32.mrf.mxu0 }
 0x465   : > { %v3289_v41 = vmul.f32 %v5943_v36, %v3269_v32  ;;  %v3228_v54 = vadd.f32 %v4459_v38, %v5939_v26  ;;  %4625 = vmatmul.mubr.msk.f32.gmra.mxu1 %vm1353_vm0, %v3308_v52 }
 0x466   : > { %v4461_v45 = vpop.f32.mrf.mxu0 }
 0x467   : > { %v3309_v28 = vadd.f32 %v5946_v55, %v3289_v41  ;;  %v3270_v24 = vmax.f32 %v3228_v54, 0.0  ;;  %v4462_v50 = vadd.f32 %v4461_v45, %v4460_v40 }
 0x468   : > { %v4463_v49 = vpop.f32.mrf.mxu0 }
 0x469   : > { %v3290_v53 = vmul.f32 %v5943_v36, %v3270_v24  ;;  %v3233_v56 = vadd.f32 %v4462_v50, %v5939_v26  ;;  %4627 = vmatprep.mubr.msk.f32.mxu1 %vm1353_vm0, %v3309_v28 }
 0x46a   : > { %v4464_v59 = vpop.f32.mrf.mxu0 }
 0x46b   : > { %v3310_v30 = vadd.f32 %v5946_v55, %v3290_v53  ;;  %v3271_v57 = vmax.f32 %v3233_v56, 0.0  ;;  %v4465_v34 = vadd.f32 %v4464_v59, %v4463_v49 }
 0x46c   : > { %v4466_v61 = vpop.f32.mrf.mxu0 }
 0x46d   : > { %v3291_v44 = vmul.f32 %v5943_v36, %v3271_v57  ;;  %v3236_v60 = vadd.f32 %v4465_v34, %v5939_v26  ;;  %4628 = vmatmul.mubr.msk.f32.gmra.mxu1 %vm1353_vm0, %v3310_v30 }
 0x46e   : > { %v4467_v62 = vpop.f32.mrf.mxu0 }
 0x46f   : > { %v3311_v0 = vadd.f32 %v5946_v55, %v3291_v44  ;;  %v3272_v1 = vmax.f32 %v3236_v60, 0.0  ;;  %v4468_v63 = vadd.f32 %v4467_v62, %v4466_v61 }
 0x470   : > { %v4469_v2 = vpop.f32.mrf.mxu0 }
 0x471   : > { %v3292_v3 = vmul.f32 %v5943_v36, %v3272_v1  ;;  %v3241_v5 = vadd.f32 %v4468_v63, %v5939_v26  ;;  %4630 = vmatprep.mubr.msk.f32.mxu1 %vm1353_vm0, %v3311_v0 }
 0x472   : > { %v4470_v9 = vpop.f32.mrf.mxu0 }
 0x473   : > { %v3312_v48 = vadd.f32 %v5946_v55, %v3292_v3  ;;  %v3273_v12 = vmax.f32 %v3241_v5, 0.0  ;;  %v4471_v58 = vadd.f32 %v4470_v9, %v4469_v2 }
 0x474   : > { %v4472_v17 = vpop.f32.mrf.mxu0 }
 0x475   : > { %v3293_v20 = vmul.f32 %v5943_v36, %v3273_v12  ;;  %v3244_v25 = vadd.f32 %v4471_v58, %v5939_v26  ;;  %4631 = vmatmul.mubr.msk.f32.gmra.mxu1 %vm1353_vm0, %v3312_v48 }
 0x476   : > { %v4473_v23 = vpop.f32.mrf.mxu0 }
 0x477   : > { %v3313_v35 = vadd.f32 %v5946_v55, %v3293_v20  ;;  %v3274_v37 = vmax.f32 %v3244_v25, 0.0  ;;  %v4474_v39 = vadd.f32 %v4473_v23, %v4472_v17 }
 0x478   : > { %v4475_v42 = vpop.f32.mrf.mxu0 }
 0x479   : > { %v3294_v43 = vmul.f32 %v5943_v36, %v3274_v37  ;;  %v3249_v46 = vadd.f32 %v4474_v39, %v5939_v26  ;;  %4633 = vmatprep.mubr.msk.f32.mxu1 %vm1353_vm0, %v3313_v35 }
 0x47a   : > { %v4476_v47 = vpop.f32.mrf.mxu0 }
 0x47b   : > { %v3314_v19 = vadd.f32 %v5946_v55, %v3294_v43  ;;  %v3275_v31 = vmax.f32 %v3249_v46, 0.0  ;;  %v4477_v51 = vadd.f32 %v4476_v47, %v4475_v42 }
 0x47c   : > { %v4478_v52 = vpop.f32.mrf.mxu0 }
 0x47d   : > { %v3295_v32 = vmul.f32 %v5943_v36, %v3275_v31  ;;  %v3252_v38 = vadd.f32 %v4477_v51, %v5939_v26  ;;  %4634 = vmatmul.mubr.msk.f32.gmra.mxu1 %vm1353_vm0, %v3314_v19 }
 0x47e   : > { %v4479_v40 = vpop.f32.mrf.mxu0 }
 0x47f   : > { %v3315_v41 = vadd.f32 %v5946_v55, %v3295_v32  ;;  %v3276_v54 = vmax.f32 %v3252_v38, 0.0  ;;  %v4480_v45 = vadd.f32 %v4479_v40, %v4478_v52 }
 0x480   : > { %v4481_v28 = vpop.f32.mrf.mxu0 }
 0x481   : > { %v3296_v24 = vmul.f32 %v5943_v36, %v3276_v54  ;;  %v3257_v50 = vadd.f32 %v4480_v45, %v5939_v26  ;;  %4636 = vmatprep.mubr.msk.f32.mxu1 %vm1353_vm0, %v3315_v41 }
 0x482   : > { %v4482_v49 = vpop.f32.mrf.mxu0 }
 0x483   : > { %v3316_v53 = vadd.f32 %v5946_v55, %v3296_v24  ;;  %v3277_v56 = vmax.f32 %v3257_v50, 0.0  ;;  %v4483_v59 = vadd.f32 %v4482_v49, %v4481_v28 }
 0x485   : > { %v3297_v30 = vmul.f32 %v5943_v36, %v3277_v56  ;;  %v3260_v57 = vadd.f32 %v4483_v59, %v5939_v26  ;;  %4637 = vmatmul.mubr.msk.f32.gmra.mxu1 %vm1353_vm0, %v3316_v53  ;;  %v6016_v26 = vld [vmem:[%s6101_s4] ss:$0 sm:$0xff] }
 0x487   : > { %v3317_v34 = vadd.f32 %v5946_v55, %v3297_v30  ;;  %v3278_v61 = vmax.f32 %v3260_v57, 0.0 }
 0x489   : > { %v3298_v44 = vmul.f32 %v5943_v36, %v3278_v61  ;;  %4639 = vmatprep.mubr.msk.f32.mxu1 %vm1353_vm0, %v3317_v34 }
 0x48b   : > { %v3318_v60 = vadd.f32 %v5946_v55, %v3298_v44 }
 0x48d   : > { %4640 = vmatmul.mubr.msk.f32.gmra.mxu1 %vm1353_vm0, %v3318_v60 }
 0x515   : > { %v4620_v62 = vpop.f32.mrf.mxu1 }
 0x516   : > { %v3516_v0 = vadd.f32 %v4620_v62, %v5888_v6 }
 0x517   : > { %v3436_v36 = vpop.f32.mrf.mxu1 }
 0x518   : > { %v3539_v55 = vadd.f32 %v6016_v26, %v3516_v0  ;;  %v3515_v1 = vadd.f32 %v3436_v36, %v5891_v27 }
 0x51a   : > { %3556 = vst.msk [vmem:[%s6022_s14 + $0x8] sm:$0xff] %vm3554_vm1, %v3539_v55  ;;  %v3538_v6 = vadd.f32 %v6016_v26, %v3515_v1 }
 0x51c   : > { %3555 = vst.msk [vmem:[%s6022_s14] sm:$0xff] %vm3554_vm1, %v3538_v6 }
 0x51d   : > { %v4623_v63 = vpop.f32.mrf.mxu1 }
 0x51e   : > { %v3518_v2 = vadd.f32 %v4623_v63, %v5894_v11 }
 0x51f   : > { %v3446_v3 = vpop.f32.mrf.mxu1 }
 0x520   : > { %v3541_v5 = vadd.f32 %v6016_v26, %v3518_v2  ;;  %v3517_v9 = vadd.f32 %v3446_v3, %v5897_v14 }
 0x522   : > { %3558 = vst.msk [vmem:[%s6022_s14 + $0x18] sm:$0xff] %vm3554_vm1, %v3541_v5  ;;  %v3540_v27 = vadd.f32 %v6016_v26, %v3517_v9 }
 0x524   : > { %3557 = vst.msk [vmem:[%s6022_s14 + $0x10] sm:$0xff] %vm3554_vm1, %v3540_v27 }
 0x525   : > { %v4626_v48 = vpop.f32.mrf.mxu1 }
 0x526   : > { %v3520_v12 = vadd.f32 %v4626_v48, %v5900_v8 }
 0x527   : > { %v3456_v58 = vpop.f32.mrf.mxu1 }
 0x528   : > { %v3543_v17 = vadd.f32 %v6016_v26, %v3520_v12  ;;  %v3519_v11 = vadd.f32 %v3456_v58, %v5903_v15 }
 0x52a   : > { %3560 = vst.msk [vmem:[%s6022_s14 + $0x28] sm:$0xff] %vm3554_vm1, %v3543_v17  ;;  %v3542_v14 = vadd.f32 %v6016_v26, %v3519_v11 }
 0x52c   : > { %3559 = vst.msk [vmem:[%s6022_s14 + $0x20] sm:$0xff] %vm3554_vm1, %v3542_v14 }
 0x52d   : > { %v4629_v20 = vpop.f32.mrf.mxu1 }
 0x52e   : > { %v3522_v25 = vadd.f32 %v4629_v20, %v5906_v18 }
 0x52f   : > { %v3466_v23 = vpop.f32.mrf.mxu1 }
 0x530   : > { %v3545_v35 = vadd.f32 %v6016_v26, %v3522_v25  ;;  %v3521_v8 = vadd.f32 %v3466_v23, %v5909_v21 }
 0x532   : > { %3562 = vst.msk [vmem:[%s6022_s14 + $0x38] sm:$0xff] %vm3554_vm1, %v3545_v35  ;;  %v3544_v15 = vadd.f32 %v6016_v26, %v3521_v8 }
 0x534   : > { %3561 = vst.msk [vmem:[%s6022_s14 + $0x30] sm:$0xff] %vm3554_vm1, %v3544_v15 }
 0x535   : > { %v4632_v37 = vpop.f32.mrf.mxu1 }
 0x536   : > { %v3524_v39 = vadd.f32 %v4632_v37, %v5912_v29 }
 0x537   : > { %v3476_v42 = vpop.f32.mrf.mxu1 }
 0x538   : > { %v3547_v43 = vadd.f32 %v6016_v26, %v3524_v39  ;;  %v3523_v18 = vadd.f32 %v3476_v42, %v5915_v33 }
 0x53a   : > { %3564 = vst.msk [vmem:[%s6022_s14 + $0x48] sm:$0xff] %vm3554_vm1, %v3547_v43  ;;  %v3546_v21 = vadd.f32 %v6016_v26, %v3523_v18 }
 0x53c   : > { %3563 = vst.msk [vmem:[%s6022_s14 + $0x40] sm:$0xff] %vm3554_vm1, %v3546_v21 }
 0x53d   : > { %v4635_v46 = vpop.f32.mrf.mxu1 }
 0x53e   : > { %v3526_v47 = vadd.f32 %v4635_v46, %v5918_v4 }
 0x53f   : > { %v3486_v19 = vpop.f32.mrf.mxu1 }
 0x540   : > { %v3549_v31 = vadd.f32 %v6016_v26, %v3526_v47  ;;  %v3525_v29 = vadd.f32 %v3486_v19, %v5921_v7 }
 0x542   : > { %3566 = vst.msk [vmem:[%s6022_s14 + $0x58] sm:$0xff] %vm3554_vm1, %v3549_v31  ;;  %v3548_v33 = vadd.f32 %v6016_v26, %v3525_v29 }
 0x544   : > { %3565 = vst.msk [vmem:[%s6022_s14 + $0x50] sm:$0xff] %vm3554_vm1, %v3548_v33 }
 0x545   : > { %v4638_v51 = vpop.f32.mrf.mxu1 }
 0x546   : > { %v3528_v52 = vadd.f32 %v4638_v51, %v5924_v10 }
 0x547   : > { %v3496_v32 = vpop.f32.mrf.mxu1 }
 0x548   : > { %v3551_v38 = vadd.f32 %v6016_v26, %v3528_v52  ;;  %v3527_v4 = vadd.f32 %v3496_v32, %v5927_v13 }
 0x54a   : > { %3568 = vst.msk [vmem:[%s6022_s14 + $0x68] sm:$0xff] %vm3554_vm1, %v3551_v38  ;;  %v3550_v7 = vadd.f32 %v6016_v26, %v3527_v4 }
 0x54c   : > { %3567 = vst.msk [vmem:[%s6022_s14 + $0x60] sm:$0xff] %vm3554_vm1, %v3550_v7 }
 0x54d   : > { %v4641_v40 = vpop.f32.mrf.mxu1 }
 0x54e   : > { %v3530_v41 = vadd.f32 %v4641_v40, %v5930_v16 }
 0x54f   : > { %v3506_v54 = vpop.f32.mrf.mxu1 }
 0x550   : > { %v3553_v45 = vadd.f32 %v6016_v26, %v3530_v41  ;;  %v3529_v28 = vadd.f32 %v3506_v54, %v5936_v22 }
 0x552   : > { %3570 = vst.msk [vmem:[%s6022_s14 + $0x78] sm:$0xff] %vm3554_vm1, %v3553_v45  ;;  %v3552_v10 = vadd.f32 %v6016_v26, %v3529_v28 }
 0x554   : > { %3569 = vst.msk [vmem:[%s6022_s14 + $0x70] sm:$0xff] %vm3554_vm1, %v3552_v10 }
 0x555 PF: > { %p12_p9 = scmp.ge.s32.totalorder %s4955_s22, 6   ;;  %s6103_s18 = smov %s4902_s19 }
 0x556   : > { %s6104_s19 = smov %s4964_s25  ;;  %s6105_s20 = smov %s4955_s22 }
 0x557   :  { %14 = sbr.rel (!%p12_p9) target bundleno = 2 (0x2), region = 129 }

</bundles_post_ra>
